<compile_context>
chip_gen: v7x
topology: tpu7x:2x2x1
jax: 0.10.0
libtpu: 0.0.40
codegen_flags: <defaults>
</compile_context>

<pallas_src>
import jax
import jax.numpy as jnp
from jax import lax
from jax.experimental import pallas as pl
from jax.experimental.pallas import tpu as pltpu

# ---- small, module-consistent sizes ----------------------------------------
KCNT = 16          # number of knowledge concepts (len(know_list))
KS = 8             # knowledge_hidden_size (know_emb_size)
L = 8              # know_length (30 in the original, shrunk for the demo)
HS = 16            # seq_hidden_size
FT = 16            # ft_embedding output size (50 in the original)
V = 2 * KS         # value_size = knowledge_hidden_size * 2
T = 16             # sequence length processed inside the kernel
T_PAD = 128        # lane-dense width of the prediction output rows (>= T)
B = 16             # number of independent sequences (batch)
B_BLK = 8          # sequences per grid block (sublane count for f32)


# ---- Pallas kernel ----------------------------------------------------------
def dkvmn_seq_kernel(cks_ref,      # (T, B_BLK, 2*KCNT)  per-step [know ; know*score]
                     h0_ref,       # (B_BLK, L*HS)       initial hidden state (flat)
                     w1_ref,       # (2*KCNT, KS+V)      [[ke_w ; 0] | cks_w]
                     b1_ref,       # (1, KS+V)           [ke_b | cks_b]
                     kmT_ref,      # (KS, L)             knowledge_memory^T
                     ft_wr_ref,    # (HS, FT)
                     ft_wk_ref,    # (KS, FT)
                     ft_b_ref,     # (1, FT)
                     sc_wT_ref,    # (1, FT)             score_layer weight (transposed)
                     sc_b_ref,     # (1, 1)
                     w_ea_ref,     # (V, 2*HS)           [erase_w | add_w]
                     ea_b_ref,     # (1, 2*HS)           [erase_b | add_b]
                     rep_a_ref,    # (L, L*HS)    0/1: alpha -> flat (repeat each slot HS times)
                     ctr_ref,      # (L*HS, HS)   0/1: flat -> HS (sum over slots)
                     rep_e_ref,    # (HS, L*HS)   0/1: et/at -> flat (tile across slots)
                     pred_ref,     # (B_BLK, T_PAD)      output: all predictions
                     h_out_ref):   # (B_BLK, L*HS)       output: final hidden state
    f32 = jnp.float32

    # weights read once; they stay resident across the unrolled recurrence
    w1 = w1_ref[...]
    b1 = b1_ref[...]
    km_t = kmT_ref[...]
    ft_wr = ft_wr_ref[...]
    ft_wk = ft_wk_ref[...]
    ft_b = ft_b_ref[...]
    sc_wt = sc_wT_ref[...]
    sc_b = sc_b_ref[...]
    w_ea = w_ea_ref[...]
    ea_b = ea_b_ref[...]
    rep_a = rep_a_ref[...]
    ctr = ctr_ref[...]
    rep_e = rep_e_ref[...]

    # hoisted out of the loop (JAX does not CSE broadcast_in_dim)
    lane = lax.broadcasted_iota(jnp.int32, (B_BLK, T_PAD), 1)

    def step(t, carry):
        h, preds = carry                                                  # (B,L*HS), (B,T_PAD)
        x = cks_ref[t]                                                    # (B, 2*KCNT)

        # fused projection: [know ; know*score] @ [[ke_w;0] | cks_w]  ->  [kn | vt]
        proj = jnp.dot(x, w1, preferred_element_type=f32) + b1            # (B, KS+V)
        kn = proj[:, :KS]                                                 # (B, KS)
        vt = proj[:, KS:]                                                 # (B, V)

        # attention over memory slots: logits = kn @ knowledge_memory^T
        logits = jnp.dot(kn, km_t, preferred_element_type=f32)            # (B, L)
        m = jnp.max(logits, axis=1, keepdims=True)
        e = jnp.exp(logits - m)
        alpha = e / jnp.sum(e, axis=1, keepdims=True)                     # (B, L)

        # expand alpha to the flat (L*HS) layout and read rt = alpha @ h_slots
        alpha_rep = jnp.dot(alpha, rep_a, preferred_element_type=f32)     # (B, L*HS)
        rt = jnp.dot(alpha_rep * h, ctr, preferred_element_type=f32)      # (B, HS)

        # ft = tanh([rt ; kn] @ W_ft + b_ft)  (weight split avoids the concat)
        ft = jnp.tanh(jnp.dot(rt, ft_wr, preferred_element_type=f32)
                      + jnp.dot(kn, ft_wk, preferred_element_type=f32)
                      + ft_b)                                             # (B, FT)

        # prediction: 1-wide matvec on the VPU (mul + lane reduce)
        p_logit = jnp.sum(ft * sc_wt, axis=1, keepdims=True) + sc_b       # (B, 1)
        pred = jax.nn.sigmoid(p_logit)
        preds = jnp.where(lane == t,
                          jnp.broadcast_to(pred, (B_BLK, T_PAD)), preds)

        # fused erase/add projection: vt @ [erase_w | add_w]
        ea = jnp.dot(vt, w_ea, preferred_element_type=f32) + ea_b         # (B, 2*HS)
        et = jax.nn.sigmoid(ea[:, :HS])                                   # (B, HS)
        at = jnp.tanh(ea[:, HS:])                                         # (B, HS)
        et_rep = jnp.dot(et, rep_e, preferred_element_type=f32)           # (B, L*HS)
        at_rep = jnp.dot(at, rep_e, preferred_element_type=f32)           # (B, L*HS)

        # memory update: h <- h * (1 - alpha⊗et) + alpha⊗at  (flat layout)
        h = h * (1.0 - alpha_rep * et_rep) + alpha_rep * at_rep
        return h, preds

    h0 = h0_ref[...]
    preds0 = jnp.zeros((B_BLK, T_PAD), f32)
    h_fin, preds_fin = lax.fori_loop(0, T, step, (h0, preds0), unroll=True)

    # single lane-dense writeback of both outputs
    pred_ref[...] = preds_fin
    h_out_ref[...] = h_fin


# ---- parameter construction (deterministic, PyTorch-style init) -------------
def _linear(key, in_f, out_f):
    kw, kb = jax.random.split(key)
    bound = 1.0 / jnp.sqrt(jnp.asarray(in_f, jnp.float32))
    w_io = jax.random.uniform(kw, (in_f, out_f), jnp.float32, -bound, bound)
    b = jax.random.uniform(kb, (1, out_f), jnp.float32, -bound, bound)
    return w_io, b


def make_params(key):
    keys = jax.random.split(key, 8)
    ke_w, ke_b = _linear(keys[0], KCNT, KS)                     # KnowledgeModel
    km = jax.random.uniform(keys[1], (L, KS), jnp.float32, -1.0, 1.0)
    ft_w, ft_b = _linear(keys[2], HS + KS, FT)                  # ft_embedding
    sc_w, sc_b = _linear(keys[3], FT, 1)                        # score_layer
    cks_w, cks_b = _linear(keys[4], 2 * KCNT, V)                # cks_embedding
    er_w, er_b = _linear(keys[5], V, HS)                        # erase_embedding
    ad_w, ad_b = _linear(keys[6], V, HS)                        # add_embedding
    h_init = jax.random.uniform(keys[7], (L, HS), jnp.float32, -1.0, 1.0)
    return dict(
        ke_w=ke_w, ke_b=ke_b, km=km,
        ft_wr=ft_w[:HS], ft_wk=ft_w[HS:], ft_b=ft_b,
        sc_w=sc_w, sc_b=sc_b,
        cks_wk=cks_w[:KCNT], cks_we=cks_w[KCNT:], cks_b=cks_b,
        er_w=er_w, er_b=er_b, ad_w=ad_w, ad_b=ad_b,
        h_initial=h_init,
    )


# ---- wrapper ----------------------------------------------------------------
@jax.jit
def _dkvmn_seq_call(params, know_seq, scores, h_init_b):
    # cks = [knowledge ; knowledge*score]  -- exactly DKVMN.forward's input prep
    expand = know_seq * scores[..., None]
    cks = jnp.concatenate([know_seq, expand], axis=-1)                  # (B, T, 2*KCNT)
    cks_tbk = jnp.transpose(cks, (1, 0, 2))                             # (T, B, 2*KCNT)

    # fused shared-LHS weights (built once per call by XLA, outside the kernel)
    w1 = jnp.concatenate(
        [jnp.concatenate([params["ke_w"], params["cks_wk"]], axis=1),
         jnp.concatenate([jnp.zeros_like(params["ke_w"]), params["cks_we"]], axis=1)],
        axis=0)                                                         # (2*KCNT, KS+V)
    b1 = jnp.concatenate([params["ke_b"], params["cks_b"]], axis=1)     # (1, KS+V)
    w_ea = jnp.concatenate([params["er_w"], params["ad_w"]], axis=1)    # (V, 2*HS)
    ea_b = jnp.concatenate([params["er_b"], params["ad_b"]], axis=1)    # (1, 2*HS)
    km_t = params["km"].T                                               # (KS, L)
    sc_wt = params["sc_w"].T                                            # (1, FT)

    # constant 0/1 expansion / contraction matrices for the flat (L*HS) state layout
    eye_hs = jnp.eye(HS, dtype=jnp.float32)
    rep_a = jnp.kron(jnp.eye(L, dtype=jnp.float32), jnp.ones((1, HS), jnp.float32))  # (L, L*HS)
    ctr = jnp.tile(eye_hs, (L, 1))                                                    # (L*HS, HS)
    rep_e = jnp.tile(eye_hs, (1, L))                                                  # (HS, L*HS)

    const = lambda i: (0, 0)
    grid_spec = pltpu.PrefetchScalarGridSpec(
        num_scalar_prefetch=0,
        grid=(B // B_BLK,),                                             # batch blocks only
        in_specs=[
            pl.BlockSpec((T, B_BLK, 2 * KCNT), lambda i: (0, i, 0)),    # whole sequence, one DMA
            pl.BlockSpec((B_BLK, L * HS), lambda i: (i, 0)),            # initial hidden
            pl.BlockSpec((2 * KCNT, KS + V), const),                    # fused know/vt weights
            pl.BlockSpec((1, KS + V), const),
            pl.BlockSpec((KS, L), const),                               # knowledge_memory^T
            pl.BlockSpec((HS, FT), const),
            pl.BlockSpec((KS, FT), const),
            pl.BlockSpec((1, FT), const),
            pl.BlockSpec((1, FT), const),
            pl.BlockSpec((1, 1), const),
            pl.BlockSpec((V, 2 * HS), const),                           # fused erase|add W
            pl.BlockSpec((1, 2 * HS), const),
            pl.BlockSpec((L, L * HS), const),
            pl.BlockSpec((L * HS, HS), const),
            pl.BlockSpec((HS, L * HS), const),
        ],
        out_specs=(
            pl.BlockSpec((B_BLK, T_PAD), lambda i: (i, 0)),             # lane-dense preds
            pl.BlockSpec((B_BLK, L * HS), lambda i: (i, 0)),            # lane-dense hidden
        ),
    )

    pred_rows, h_out = pl.pallas_call(
        dkvmn_seq_kernel,
        out_shape=(jax.ShapeDtypeStruct((B, T_PAD), jnp.float32),
                   jax.ShapeDtypeStruct((B, L * HS), jnp.float32)),
        grid_spec=grid_spec,
        compiler_params=pltpu.CompilerParams(
            dimension_semantics=("parallel",)),   # batch blocks -> both TCs on v7x
    )(cks_tbk, h_init_b,
      w1, b1, km_t,
      params["ft_wr"], params["ft_wk"], params["ft_b"],
      sc_wt, params["sc_b"],
      w_ea, ea_b, rep_a, ctr, rep_e)

    return pred_rows[:, :T], h_out


def dkvmn_forward_seq(params, knowledge_seq, scores, hidden=None):
    """Runs DKVMN.forward over B independent T-step sequences in one kernel launch.

    knowledge_seq: (B, T, KCNT) multi-hot float, scores: (B, T) float in [0,1].
    Returns (preds (B, T), final hidden (B, L*HS)) — the per-step outputs of the module.
    """
    assert T <= T_PAD, "prediction row would drop timesteps"
    assert B % B_BLK == 0
    if hidden is None:
        hidden = jnp.tile(params["h_initial"].reshape(1, L * HS), (B, 1))
    return _dkvmn_seq_call(
        params,
        knowledge_seq.astype(jnp.float32).reshape(B, T, KCNT),
        scores.astype(jnp.float32).reshape(B, T),
        hidden.astype(jnp.float32).reshape(B, L * HS))


# ---- pure-JAX reference (unfused, torch-shaped math) for a sanity check -----
def _dkvmn_reference_one(params, knowledge_seq, scores, h0):
    h = h0.reshape(L, HS)
    preds = []
    for t in range(T):
        know = knowledge_seq[t].reshape(1, KCNT)
        score = scores[t]
        kn = know @ params["ke_w"] + params["ke_b"]                       # (1, KS)
        alpha = jax.nn.softmax((params["km"] @ kn.T).reshape(-1))         # (L,)
        rt = alpha.reshape(1, L) @ h                                      # (1, HS)
        ft = jnp.tanh(rt @ params["ft_wr"] + kn @ params["ft_wk"] + params["ft_b"])
        pred = jax.nn.sigmoid(ft @ params["sc_w"] + params["sc_b"])
        expand = know * score
        vt = know @ params["cks_wk"] + expand @ params["cks_we"] + params["cks_b"]
        et = jax.nn.sigmoid(vt @ params["er_w"] + params["er_b"])         # (1, HS)
        at = jnp.tanh(vt @ params["ad_w"] + params["ad_b"])               # (1, HS)
        a = alpha.reshape(L, 1)
        h = h * (1.0 - a * et) + a * at
        preds.append(pred.reshape(()))
    return jnp.stack(preds), h.reshape(-1)


def dkvmn_reference(params, knowledge_seq, scores, h0_b):
    fn = lambda k, s, h: _dkvmn_reference_one(params, k, s, h)
    return jax.vmap(fn)(knowledge_seq, scores, h0_b)


if __name__ == "__main__":
    key = jax.random.PRNGKey(0)
    pkey, kkey, skey = jax.random.split(key, 3)
    params = make_params(pkey)

    # B independent sequences of multi-hot knowledge-concept vectors and 0/1 scores
    knowledge_seq = jax.random.bernoulli(kkey, 0.25, (B, T, KCNT)).astype(jnp.float32)
    scores = jax.random.bernoulli(skey, 0.5, (B, T)).astype(jnp.float32)

    preds, h_final = dkvmn_forward_seq(params, knowledge_seq, scores, hidden=None)
    jax.block_until_ready((preds, h_final))

    h0_b = jnp.tile(params["h_initial"].reshape(1, L * HS), (B, 1))
    preds_ref, h_ref = dkvmn_reference(params, knowledge_seq, scores, h0_b)

    assert preds.shape == (B, T) and h_final.shape == (B, L * HS)
    assert jnp.allclose(preds, preds_ref, atol=3e-3, rtol=3e-3)
    assert jnp.allclose(h_final, h_ref, atol=3e-3, rtol=3e-3)

    print("KERNEL_OK")
</pallas_src>

<mosaic_0001>
module attributes {stable_mosaic.version = 11 : i64} {
  func.func @dkvmn_seq_kernel(%arg0: i32, %arg1: memref<16x8x32xf32, #tpu.memory_space<vmem>>, %arg2: memref<8x128xf32, #tpu.memory_space<vmem>>, %arg3: memref<32x24xf32, #tpu.memory_space<vmem>>, %arg4: memref<1x24xf32, #tpu.memory_space<vmem>>, %arg5: memref<8x8xf32, #tpu.memory_space<vmem>>, %arg6: memref<16x16xf32, #tpu.memory_space<vmem>>, %arg7: memref<8x16xf32, #tpu.memory_space<vmem>>, %arg8: memref<1x16xf32, #tpu.memory_space<vmem>>, %arg9: memref<1x16xf32, #tpu.memory_space<vmem>>, %arg10: memref<1x1xf32, #tpu.memory_space<vmem>>, %arg11: memref<16x32xf32, #tpu.memory_space<vmem>>, %arg12: memref<1x32xf32, #tpu.memory_space<vmem>>, %arg13: memref<8x128xf32, #tpu.memory_space<vmem>>, %arg14: memref<128x16xf32, #tpu.memory_space<vmem>>, %arg15: memref<16x128xf32, #tpu.memory_space<vmem>>, %arg16: memref<8x128xf32, #tpu.memory_space<vmem>>, %arg17: memref<8x128xf32, #tpu.memory_space<vmem>>) attributes {dimension_semantics = [#tpu.dimension_semantics<parallel>], iteration_bounds = array<i64: 2>, scalar_prefetch = 0 : i64, scratch_operands = 0 : i64, tpu.core_type = #tpu.core_type<tc>, window_params = [{transform_indices = @transform_0, window_bounds = array<i64: 16, 8, 32>}, {transform_indices = @transform_1, window_bounds = array<i64: 8, 128>}, {pipeline_mode = #tpu.pipeline_mode<synchronous>, transform_indices = @transform_2, window_bounds = array<i64: 32, 24>}, {pipeline_mode = #tpu.pipeline_mode<synchronous>, transform_indices = @transform_3, window_bounds = array<i64: 1, 24>}, {pipeline_mode = #tpu.pipeline_mode<synchronous>, transform_indices = @transform_4, window_bounds = array<i64: 8, 8>}, {pipeline_mode = #tpu.pipeline_mode<synchronous>, transform_indices = @transform_5, window_bounds = array<i64: 16, 16>}, {pipeline_mode = #tpu.pipeline_mode<synchronous>, transform_indices = @transform_6, window_bounds = array<i64: 8, 16>}, {pipeline_mode = #tpu.pipeline_mode<synchronous>, transform_indices = @transform_7, window_bounds = array<i64: 1, 16>}, {pipeline_mode = #tpu.pipeline_mode<synchronous>, transform_indices = @transform_8, window_bounds = array<i64: 1, 16>}, {pipeline_mode = #tpu.pipeline_mode<synchronous>, transform_indices = @transform_9, window_bounds = array<i64: 1, 1>}, {pipeline_mode = #tpu.pipeline_mode<synchronous>, transform_indices = @transform_10, window_bounds = array<i64: 16, 32>}, {pipeline_mode = #tpu.pipeline_mode<synchronous>, transform_indices = @transform_11, window_bounds = array<i64: 1, 32>}, {pipeline_mode = #tpu.pipeline_mode<synchronous>, transform_indices = @transform_12, window_bounds = array<i64: 8, 128>}, {pipeline_mode = #tpu.pipeline_mode<synchronous>, transform_indices = @transform_13, window_bounds = array<i64: 128, 16>}, {pipeline_mode = #tpu.pipeline_mode<synchronous>, transform_indices = @transform_14, window_bounds = array<i64: 16, 128>}, {transform_indices = @transform_15, window_bounds = array<i64: 8, 128>}, {transform_indices = @transform_16, window_bounds = array<i64: 8, 128>}]} {
    %c0 = arith.constant 0 : index
    %c0_0 = arith.constant 0 : index
    %0 = vector.load %arg3[%c0, %c0_0] : memref<32x24xf32, #tpu.memory_space<vmem>>, vector<32x24xf32>
    %c0_1 = arith.constant 0 : index
    %c0_2 = arith.constant 0 : index
    %1 = vector.load %arg4[%c0_1, %c0_2] : memref<1x24xf32, #tpu.memory_space<vmem>>, vector<1x24xf32>
    %c0_3 = arith.constant 0 : index
    %c0_4 = arith.constant 0 : index
    %2 = vector.load %arg5[%c0_3, %c0_4] : memref<8x8xf32, #tpu.memory_space<vmem>>, vector<8x8xf32>
    %c0_5 = arith.constant 0 : index
    %c0_6 = arith.constant 0 : index
    %3 = vector.load %arg6[%c0_5, %c0_6] : memref<16x16xf32, #tpu.memory_space<vmem>>, vector<16x16xf32>
    %c0_7 = arith.constant 0 : index
    %c0_8 = arith.constant 0 : index
    %4 = vector.load %arg7[%c0_7, %c0_8] : memref<8x16xf32, #tpu.memory_space<vmem>>, vector<8x16xf32>
    %c0_9 = arith.constant 0 : index
    %c0_10 = arith.constant 0 : index
    %5 = vector.load %arg8[%c0_9, %c0_10] : memref<1x16xf32, #tpu.memory_space<vmem>>, vector<1x16xf32>
    %c0_11 = arith.constant 0 : index
    %c0_12 = arith.constant 0 : index
    %6 = vector.load %arg9[%c0_11, %c0_12] : memref<1x16xf32, #tpu.memory_space<vmem>>, vector<1x16xf32>
    %c0_13 = arith.constant 0 : index
    %c0_14 = arith.constant 0 : index
    %7 = vector.load %arg10[%c0_13, %c0_14] : memref<1x1xf32, #tpu.memory_space<vmem>>, vector<1x1xf32>
    %c0_15 = arith.constant 0 : index
    %c0_16 = arith.constant 0 : index
    %8 = vector.load %arg11[%c0_15, %c0_16] : memref<16x32xf32, #tpu.memory_space<vmem>>, vector<16x32xf32>
    %c0_17 = arith.constant 0 : index
    %c0_18 = arith.constant 0 : index
    %9 = vector.load %arg12[%c0_17, %c0_18] : memref<1x32xf32, #tpu.memory_space<vmem>>, vector<1x32xf32>
    %c0_19 = arith.constant 0 : index
    %c0_20 = arith.constant 0 : index
    %10 = vector.load %arg13[%c0_19, %c0_20] : memref<8x128xf32, #tpu.memory_space<vmem>>, vector<8x128xf32>
    %c0_21 = arith.constant 0 : index
    %c0_22 = arith.constant 0 : index
    %11 = vector.load %arg14[%c0_21, %c0_22] : memref<128x16xf32, #tpu.memory_space<vmem>>, vector<128x16xf32>
    %c0_23 = arith.constant 0 : index
    %c0_24 = arith.constant 0 : index
    %12 = vector.load %arg15[%c0_23, %c0_24] : memref<16x128xf32, #tpu.memory_space<vmem>>, vector<16x128xf32>
    %13 = tpu.iota {dimensions = array<i32: 1>} : vector<8x128xi32>
    %c0_25 = arith.constant 0 : index
    %c0_26 = arith.constant 0 : index
    %14 = vector.load %arg2[%c0_25, %c0_26] : memref<8x128xf32, #tpu.memory_space<vmem>>, vector<8x128xf32>
    %cst = arith.constant 0.000000e+00 : f32
    %15 = vector.broadcast %cst : f32 to vector<8x128xf32>
    %c0_i32 = arith.constant 0 : i32
    %16 = arith.index_cast %c0_i32 : i32 to index
    %c0_27 = arith.constant 0 : index
    %c0_28 = arith.constant 0 : index
    %17 = vector.load %arg1[%16, %c0_27, %c0_28] : memref<16x8x32xf32, #tpu.memory_space<vmem>>, vector<1x8x32xf32>
    %18 = vector.shape_cast %17 : vector<1x8x32xf32> to vector<8x32xf32>
    %cst_29 = arith.constant dense<0.000000e+00> : vector<8x24xf32>
    %19 = tpu.matmul %18, %0, %cst_29 {dimension_numbers = #tpu.dot_dimension_numbers<[1], [0], [0], [1], [0, 0, 1, 1], [], []>} : vector<8x32xf32>, vector<32x24xf32>, vector<8x24xf32> -> vector<8x24xf32>
    %20 = vector.broadcast %1 : vector<1x24xf32> to vector<8x24xf32>
    %21 = arith.addf %19, %20 : vector<8x24xf32>
    %22 = vector.extract_strided_slice %21 {offsets = [0, 0], sizes = [8, 8], strides = [1, 1]} : vector<8x24xf32> to vector<8x8xf32>
    %23 = vector.extract_strided_slice %21 {offsets = [0, 8], sizes = [8, 16], strides = [1, 1]} : vector<8x24xf32> to vector<8x16xf32>
    %cst_30 = arith.constant dense<0.000000e+00> : vector<8x8xf32>
    %24 = tpu.matmul %22, %2, %cst_30 {dimension_numbers = #tpu.dot_dimension_numbers<[1], [0], [0], [1], [0, 0, 1, 1], [], []>} : vector<8x8xf32>, vector<8x8xf32>, vector<8x8xf32> -> vector<8x8xf32>
    %cst_31 = arith.constant dense<0xFF800000> : vector<8xf32>
    %25 = vector.multi_reduction <maximumf>, %24, %cst_31 [1] : vector<8x8xf32> to vector<8xf32>
    %26 = vector.shape_cast %25 : vector<8xf32> to vector<8x1xf32>
    %27 = vector.broadcast %26 : vector<8x1xf32> to vector<8x8xf32>
    %28 = arith.subf %24, %27 : vector<8x8xf32>
    %29 = math.exp %28 : vector<8x8xf32>
    %cst_32 = arith.constant dense<0.000000e+00> : vector<8xf32>
    %30 = vector.multi_reduction <add>, %29, %cst_32 [1] : vector<8x8xf32> to vector<8xf32>
    %31 = vector.shape_cast %30 : vector<8xf32> to vector<8x1xf32>
    %32 = vector.broadcast %31 : vector<8x1xf32> to vector<8x8xf32>
    %33 = arith.divf %29, %32 : vector<8x8xf32>
    %cst_33 = arith.constant dense<0.000000e+00> : vector<8x128xf32>
    %34 = tpu.matmul %33, %10, %cst_33 {dimension_numbers = #tpu.dot_dimension_numbers<[1], [0], [0], [1], [0, 0, 1, 1], [], []>} : vector<8x8xf32>, vector<8x128xf32>, vector<8x128xf32> -> vector<8x128xf32>
    %35 = arith.mulf %34, %14 : vector<8x128xf32>
    %cst_34 = arith.constant dense<0.000000e+00> : vector<8x16xf32>
    %36 = tpu.matmul %35, %11, %cst_34 {dimension_numbers = #tpu.dot_dimension_numbers<[1], [0], [0], [1], [0, 0, 1, 1], [], []>} : vector<8x128xf32>, vector<128x16xf32>, vector<8x16xf32> -> vector<8x16xf32>
    %cst_35 = arith.constant dense<0.000000e+00> : vector<8x16xf32>
    %37 = tpu.matmul %36, %3, %cst_35 {dimension_numbers = #tpu.dot_dimension_numbers<[1], [0], [0], [1], [0, 0, 1, 1], [], []>} : vector<8x16xf32>, vector<16x16xf32>, vector<8x16xf32> -> vector<8x16xf32>
    %cst_36 = arith.constant dense<0.000000e+00> : vector<8x16xf32>
    %38 = tpu.matmul %22, %4, %cst_36 {dimension_numbers = #tpu.dot_dimension_numbers<[1], [0], [0], [1], [0, 0, 1, 1], [], []>} : vector<8x8xf32>, vector<8x16xf32>, vector<8x16xf32> -> vector<8x16xf32>
    %39 = arith.addf %37, %38 : vector<8x16xf32>
    %40 = vector.broadcast %5 : vector<1x16xf32> to vector<8x16xf32>
    %41 = arith.addf %39, %40 : vector<8x16xf32>
    %42 = math.tanh %41 : vector<8x16xf32>
    %43 = vector.broadcast %6 : vector<1x16xf32> to vector<8x16xf32>
    %44 = arith.mulf %42, %43 : vector<8x16xf32>
    %cst_37 = arith.constant dense<0.000000e+00> : vector<8xf32>
    %45 = vector.multi_reduction <add>, %44, %cst_37 [1] : vector<8x16xf32> to vector<8xf32>
    %46 = vector.shape_cast %45 : vector<8xf32> to vector<8x1xf32>
    %47 = vector.broadcast %7 : vector<1x1xf32> to vector<8x1xf32>
    %48 = arith.addf %46, %47 : vector<8x1xf32>
    %49 = arith.negf %48 : vector<8x1xf32>
    %50 = math.exp %49 : vector<8x1xf32>
    %cst_38 = arith.constant 1.000000e+00 : f32
    %51 = vector.broadcast %cst_38 : f32 to vector<8x1xf32>
    %52 = arith.addf %51, %50 : vector<8x1xf32>
    %53 = arith.divf %51, %52 : vector<8x1xf32>
    %54 = vector.broadcast %c0_i32 : i32 to vector<8x128xi32>
    %55 = arith.cmpi eq, %13, %54 : vector<8x128xi32>
    %56 = vector.shape_cast %53 : vector<8x1xf32> to vector<8x1xf32>
    %57 = vector.broadcast %56 : vector<8x1xf32> to vector<8x128xf32>
    %58 = arith.select %55, %57, %15 : vector<8x128xi1>, vector<8x128xf32>
    %cst_39 = arith.constant dense<0.000000e+00> : vector<8x32xf32>
    %59 = tpu.matmul %23, %8, %cst_39 {dimension_numbers = #tpu.dot_dimension_numbers<[1], [0], [0], [1], [0, 0, 1, 1], [], []>} : vector<8x16xf32>, vector<16x32xf32>, vector<8x32xf32> -> vector<8x32xf32>
    %60 = vector.broadcast %9 : vector<1x32xf32> to vector<8x32xf32>
    %61 = arith.addf %59, %60 : vector<8x32xf32>
    %62 = vector.extract_strided_slice %61 {offsets = [0, 0], sizes = [8, 16], strides = [1, 1]} : vector<8x32xf32> to vector<8x16xf32>
    %63 = arith.negf %62 : vector<8x16xf32>
    %64 = math.exp %63 : vector<8x16xf32>
    %cst_40 = arith.constant 1.000000e+00 : f32
    %65 = vector.broadcast %cst_40 : f32 to vector<8x16xf32>
    %66 = arith.addf %65, %64 : vector<8x16xf32>
    %67 = arith.divf %65, %66 : vector<8x16xf32>
    %68 = vector.extract_strided_slice %61 {offsets = [0, 16], sizes = [8, 16], strides = [1, 1]} : vector<8x32xf32> to vector<8x16xf32>
    %69 = math.tanh %68 : vector<8x16xf32>
    %cst_41 = arith.constant dense<0.000000e+00> : vector<8x128xf32>
    %70 = tpu.matmul %67, %12, %cst_41 {dimension_numbers = #tpu.dot_dimension_numbers<[1], [0], [0], [1], [0, 0, 1, 1], [], []>} : vector<8x16xf32>, vector<16x128xf32>, vector<8x128xf32> -> vector<8x128xf32>
    %cst_42 = arith.constant dense<0.000000e+00> : vector<8x128xf32>
    %71 = tpu.matmul %69, %12, %cst_42 {dimension_numbers = #tpu.dot_dimension_numbers<[1], [0], [0], [1], [0, 0, 1, 1], [], []>} : vector<8x16xf32>, vector<16x128xf32>, vector<8x128xf32> -> vector<8x128xf32>
    %72 = arith.mulf %34, %70 : vector<8x128xf32>
    %cst_43 = arith.constant 1.000000e+00 : f32
    %73 = vector.broadcast %cst_43 : f32 to vector<8x128xf32>
    %74 = arith.subf %73, %72 : vector<8x128xf32>
    %75 = arith.mulf %14, %74 : vector<8x128xf32>
    %76 = arith.mulf %34, %71 : vector<8x128xf32>
    %77 = arith.addf %75, %76 : vector<8x128xf32>
    %c1_i32 = arith.constant 1 : i32
    %78 = arith.index_cast %c1_i32 : i32 to index
    %c0_44 = arith.constant 0 : index
    %c0_45 = arith.constant 0 : index
    %79 = vector.load %arg1[%78, %c0_44, %c0_45] : memref<16x8x32xf32, #tpu.memory_space<vmem>>, vector<1x8x32xf32>
    %80 = vector.shape_cast %79 : vector<1x8x32xf32> to vector<8x32xf32>
    %cst_46 = arith.constant dense<0.000000e+00> : vector<8x24xf32>
    %81 = tpu.matmul %80, %0, %cst_46 {dimension_numbers = #tpu.dot_dimension_numbers<[1], [0], [0], [1], [0, 0, 1, 1], [], []>} : vector<8x32xf32>, vector<32x24xf32>, vector<8x24xf32> -> vector<8x24xf32>
    %82 = vector.broadcast %1 : vector<1x24xf32> to vector<8x24xf32>
    %83 = arith.addf %81, %82 : vector<8x24xf32>
    %84 = vector.extract_strided_slice %83 {offsets = [0, 0], sizes = [8, 8], strides = [1, 1]} : vector<8x24xf32> to vector<8x8xf32>
    %85 = vector.extract_strided_slice %83 {offsets = [0, 8], sizes = [8, 16], strides = [1, 1]} : vector<8x24xf32> to vector<8x16xf32>
    %cst_47 = arith.constant dense<0.000000e+00> : vector<8x8xf32>
    %86 = tpu.matmul %84, %2, %cst_47 {dimension_numbers = #tpu.dot_dimension_numbers<[1], [0], [0], [1], [0, 0, 1, 1], [], []>} : vector<8x8xf32>, vector<8x8xf32>, vector<8x8xf32> -> vector<8x8xf32>
    %cst_48 = arith.constant dense<0xFF800000> : vector<8xf32>
    %87 = vector.multi_reduction <maximumf>, %86, %cst_48 [1] : vector<8x8xf32> to vector<8xf32>
    %88 = vector.shape_cast %87 : vector<8xf32> to vector<8x1xf32>
    %89 = vector.broadcast %88 : vector<8x1xf32> to vector<8x8xf32>
    %90 = arith.subf %86, %89 : vector<8x8xf32>
    %91 = math.exp %90 : vector<8x8xf32>
    %cst_49 = arith.constant dense<0.000000e+00> : vector<8xf32>
    %92 = vector.multi_reduction <add>, %91, %cst_49 [1] : vector<8x8xf32> to vector<8xf32>
    %93 = vector.shape_cast %92 : vector<8xf32> to vector<8x1xf32>
    %94 = vector.broadcast %93 : vector<8x1xf32> to vector<8x8xf32>
    %95 = arith.divf %91, %94 : vector<8x8xf32>
    %cst_50 = arith.constant dense<0.000000e+00> : vector<8x128xf32>
    %96 = tpu.matmul %95, %10, %cst_50 {dimension_numbers = #tpu.dot_dimension_numbers<[1], [0], [0], [1], [0, 0, 1, 1], [], []>} : vector<8x8xf32>, vector<8x128xf32>, vector<8x128xf32> -> vector<8x128xf32>
    %97 = arith.mulf %96, %77 : vector<8x128xf32>
    %cst_51 = arith.constant dense<0.000000e+00> : vector<8x16xf32>
    %98 = tpu.matmul %97, %11, %cst_51 {dimension_numbers = #tpu.dot_dimension_numbers<[1], [0], [0], [1], [0, 0, 1, 1], [], []>} : vector<8x128xf32>, vector<128x16xf32>, vector<8x16xf32> -> vector<8x16xf32>
    %cst_52 = arith.constant dense<0.000000e+00> : vector<8x16xf32>
    %99 = tpu.matmul %98, %3, %cst_52 {dimension_numbers = #tpu.dot_dimension_numbers<[1], [0], [0], [1], [0, 0, 1, 1], [], []>} : vector<8x16xf32>, vector<16x16xf32>, vector<8x16xf32> -> vector<8x16xf32>
    %cst_53 = arith.constant dense<0.000000e+00> : vector<8x16xf32>
    %100 = tpu.matmul %84, %4, %cst_53 {dimension_numbers = #tpu.dot_dimension_numbers<[1], [0], [0], [1], [0, 0, 1, 1], [], []>} : vector<8x8xf32>, vector<8x16xf32>, vector<8x16xf32> -> vector<8x16xf32>
    %101 = arith.addf %99, %100 : vector<8x16xf32>
    %102 = vector.broadcast %5 : vector<1x16xf32> to vector<8x16xf32>
    %103 = arith.addf %101, %102 : vector<8x16xf32>
    %104 = math.tanh %103 : vector<8x16xf32>
    %105 = vector.broadcast %6 : vector<1x16xf32> to vector<8x16xf32>
    %106 = arith.mulf %104, %105 : vector<8x16xf32>
    %cst_54 = arith.constant dense<0.000000e+00> : vector<8xf32>
    %107 = vector.multi_reduction <add>, %106, %cst_54 [1] : vector<8x16xf32> to vector<8xf32>
    %108 = vector.shape_cast %107 : vector<8xf32> to vector<8x1xf32>
    %109 = vector.broadcast %7 : vector<1x1xf32> to vector<8x1xf32>
    %110 = arith.addf %108, %109 : vector<8x1xf32>
    %111 = arith.negf %110 : vector<8x1xf32>
    %112 = math.exp %111 : vector<8x1xf32>
    %cst_55 = arith.constant 1.000000e+00 : f32
    %113 = vector.broadcast %cst_55 : f32 to vector<8x1xf32>
    %114 = arith.addf %113, %112 : vector<8x1xf32>
    %115 = arith.divf %113, %114 : vector<8x1xf32>
    %116 = vector.broadcast %c1_i32 : i32 to vector<8x128xi32>
    %117 = arith.cmpi eq, %13, %116 : vector<8x128xi32>
    %118 = vector.shape_cast %115 : vector<8x1xf32> to vector<8x1xf32>
    %119 = vector.broadcast %118 : vector<8x1xf32> to vector<8x128xf32>
    %120 = arith.select %117, %119, %58 : vector<8x128xi1>, vector<8x128xf32>
    %cst_56 = arith.constant dense<0.000000e+00> : vector<8x32xf32>
    %121 = tpu.matmul %85, %8, %cst_56 {dimension_numbers = #tpu.dot_dimension_numbers<[1], [0], [0], [1], [0, 0, 1, 1], [], []>} : vector<8x16xf32>, vector<16x32xf32>, vector<8x32xf32> -> vector<8x32xf32>
    %122 = vector.broadcast %9 : vector<1x32xf32> to vector<8x32xf32>
    %123 = arith.addf %121, %122 : vector<8x32xf32>
    %124 = vector.extract_strided_slice %123 {offsets = [0, 0], sizes = [8, 16], strides = [1, 1]} : vector<8x32xf32> to vector<8x16xf32>
    %125 = arith.negf %124 : vector<8x16xf32>
    %126 = math.exp %125 : vector<8x16xf32>
    %cst_57 = arith.constant 1.000000e+00 : f32
    %127 = vector.broadcast %cst_57 : f32 to vector<8x16xf32>
    %128 = arith.addf %127, %126 : vector<8x16xf32>
    %129 = arith.divf %127, %128 : vector<8x16xf32>
    %130 = vector.extract_strided_slice %123 {offsets = [0, 16], sizes = [8, 16], strides = [1, 1]} : vector<8x32xf32> to vector<8x16xf32>
    %131 = math.tanh %130 : vector<8x16xf32>
    %cst_58 = arith.constant dense<0.000000e+00> : vector<8x128xf32>
    %132 = tpu.matmul %129, %12, %cst_58 {dimension_numbers = #tpu.dot_dimension_numbers<[1], [0], [0], [1], [0, 0, 1, 1], [], []>} : vector<8x16xf32>, vector<16x128xf32>, vector<8x128xf32> -> vector<8x128xf32>
    %cst_59 = arith.constant dense<0.000000e+00> : vector<8x128xf32>
    %133 = tpu.matmul %131, %12, %cst_59 {dimension_numbers = #tpu.dot_dimension_numbers<[1], [0], [0], [1], [0, 0, 1, 1], [], []>} : vector<8x16xf32>, vector<16x128xf32>, vector<8x128xf32> -> vector<8x128xf32>
    %134 = arith.mulf %96, %132 : vector<8x128xf32>
    %cst_60 = arith.constant 1.000000e+00 : f32
    %135 = vector.broadcast %cst_60 : f32 to vector<8x128xf32>
    %136 = arith.subf %135, %134 : vector<8x128xf32>
    %137 = arith.mulf %77, %136 : vector<8x128xf32>
    %138 = arith.mulf %96, %133 : vector<8x128xf32>
    %139 = arith.addf %137, %138 : vector<8x128xf32>
    %c2_i32 = arith.constant 2 : i32
    %140 = arith.index_cast %c2_i32 : i32 to index
    %c0_61 = arith.constant 0 : index
    %c0_62 = arith.constant 0 : index
    %141 = vector.load %arg1[%140, %c0_61, %c0_62] : memref<16x8x32xf32, #tpu.memory_space<vmem>>, vector<1x8x32xf32>
    %142 = vector.shape_cast %141 : vector<1x8x32xf32> to vector<8x32xf32>
    %cst_63 = arith.constant dense<0.000000e+00> : vector<8x24xf32>
    %143 = tpu.matmul %142, %0, %cst_63 {dimension_numbers = #tpu.dot_dimension_numbers<[1], [0], [0], [1], [0, 0, 1, 1], [], []>} : vector<8x32xf32>, vector<32x24xf32>, vector<8x24xf32> -> vector<8x24xf32>
    %144 = vector.broadcast %1 : vector<1x24xf32> to vector<8x24xf32>
    %145 = arith.addf %143, %144 : vector<8x24xf32>
    %146 = vector.extract_strided_slice %145 {offsets = [0, 0], sizes = [8, 8], strides = [1, 1]} : vector<8x24xf32> to vector<8x8xf32>
    %147 = vector.extract_strided_slice %145 {offsets = [0, 8], sizes = [8, 16], strides = [1, 1]} : vector<8x24xf32> to vector<8x16xf32>
    %cst_64 = arith.constant dense<0.000000e+00> : vector<8x8xf32>
    %148 = tpu.matmul %146, %2, %cst_64 {dimension_numbers = #tpu.dot_dimension_numbers<[1], [0], [0], [1], [0, 0, 1, 1], [], []>} : vector<8x8xf32>, vector<8x8xf32>, vector<8x8xf32> -> vector<8x8xf32>
    %cst_65 = arith.constant dense<0xFF800000> : vector<8xf32>
    %149 = vector.multi_reduction <maximumf>, %148, %cst_65 [1] : vector<8x8xf32> to vector<8xf32>
    %150 = vector.shape_cast %149 : vector<8xf32> to vector<8x1xf32>
    %151 = vector.broadcast %150 : vector<8x1xf32> to vector<8x8xf32>
    %152 = arith.subf %148, %151 : vector<8x8xf32>
    %153 = math.exp %152 : vector<8x8xf32>
    %cst_66 = arith.constant dense<0.000000e+00> : vector<8xf32>
    %154 = vector.multi_reduction <add>, %153, %cst_66 [1] : vector<8x8xf32> to vector<8xf32>
    %155 = vector.shape_cast %154 : vector<8xf32> to vector<8x1xf32>
    %156 = vector.broadcast %155 : vector<8x1xf32> to vector<8x8xf32>
    %157 = arith.divf %153, %156 : vector<8x8xf32>
    %cst_67 = arith.constant dense<0.000000e+00> : vector<8x128xf32>
    %158 = tpu.matmul %157, %10, %cst_67 {dimension_numbers = #tpu.dot_dimension_numbers<[1], [0], [0], [1], [0, 0, 1, 1], [], []>} : vector<8x8xf32>, vector<8x128xf32>, vector<8x128xf32> -> vector<8x128xf32>
    %159 = arith.mulf %158, %139 : vector<8x128xf32>
    %cst_68 = arith.constant dense<0.000000e+00> : vector<8x16xf32>
    %160 = tpu.matmul %159, %11, %cst_68 {dimension_numbers = #tpu.dot_dimension_numbers<[1], [0], [0], [1], [0, 0, 1, 1], [], []>} : vector<8x128xf32>, vector<128x16xf32>, vector<8x16xf32> -> vector<8x16xf32>
    %cst_69 = arith.constant dense<0.000000e+00> : vector<8x16xf32>
    %161 = tpu.matmul %160, %3, %cst_69 {dimension_numbers = #tpu.dot_dimension_numbers<[1], [0], [0], [1], [0, 0, 1, 1], [], []>} : vector<8x16xf32>, vector<16x16xf32>, vector<8x16xf32> -> vector<8x16xf32>
    %cst_70 = arith.constant dense<0.000000e+00> : vector<8x16xf32>
    %162 = tpu.matmul %146, %4, %cst_70 {dimension_numbers = #tpu.dot_dimension_numbers<[1], [0], [0], [1], [0, 0, 1, 1], [], []>} : vector<8x8xf32>, vector<8x16xf32>, vector<8x16xf32> -> vector<8x16xf32>
    %163 = arith.addf %161, %162 : vector<8x16xf32>
    %164 = vector.broadcast %5 : vector<1x16xf32> to vector<8x16xf32>
    %165 = arith.addf %163, %164 : vector<8x16xf32>
    %166 = math.tanh %165 : vector<8x16xf32>
    %167 = vector.broadcast %6 : vector<1x16xf32> to vector<8x16xf32>
    %168 = arith.mulf %166, %167 : vector<8x16xf32>
    %cst_71 = arith.constant dense<0.000000e+00> : vector<8xf32>
    %169 = vector.multi_reduction <add>, %168, %cst_71 [1] : vector<8x16xf32> to vector<8xf32>
    %170 = vector.shape_cast %169 : vector<8xf32> to vector<8x1xf32>
    %171 = vector.broadcast %7 : vector<1x1xf32> to vector<8x1xf32>
    %172 = arith.addf %170, %171 : vector<8x1xf32>
    %173 = arith.negf %172 : vector<8x1xf32>
    %174 = math.exp %173 : vector<8x1xf32>
    %cst_72 = arith.constant 1.000000e+00 : f32
    %175 = vector.broadcast %cst_72 : f32 to vector<8x1xf32>
    %176 = arith.addf %175, %174 : vector<8x1xf32>
    %177 = arith.divf %175, %176 : vector<8x1xf32>
    %178 = vector.broadcast %c2_i32 : i32 to vector<8x128xi32>
    %179 = arith.cmpi eq, %13, %178 : vector<8x128xi32>
    %180 = vector.shape_cast %177 : vector<8x1xf32> to vector<8x1xf32>
    %181 = vector.broadcast %180 : vector<8x1xf32> to vector<8x128xf32>
    %182 = arith.select %179, %181, %120 : vector<8x128xi1>, vector<8x128xf32>
    %cst_73 = arith.constant dense<0.000000e+00> : vector<8x32xf32>
    %183 = tpu.matmul %147, %8, %cst_73 {dimension_numbers = #tpu.dot_dimension_numbers<[1], [0], [0], [1], [0, 0, 1, 1], [], []>} : vector<8x16xf32>, vector<16x32xf32>, vector<8x32xf32> -> vector<8x32xf32>
    %184 = vector.broadcast %9 : vector<1x32xf32> to vector<8x32xf32>
    %185 = arith.addf %183, %184 : vector<8x32xf32>
    %186 = vector.extract_strided_slice %185 {offsets = [0, 0], sizes = [8, 16], strides = [1, 1]} : vector<8x32xf32> to vector<8x16xf32>
    %187 = arith.negf %186 : vector<8x16xf32>
    %188 = math.exp %187 : vector<8x16xf32>
    %cst_74 = arith.constant 1.000000e+00 : f32
    %189 = vector.broadcast %cst_74 : f32 to vector<8x16xf32>
    %190 = arith.addf %189, %188 : vector<8x16xf32>
    %191 = arith.divf %189, %190 : vector<8x16xf32>
    %192 = vector.extract_strided_slice %185 {offsets = [0, 16], sizes = [8, 16], strides = [1, 1]} : vector<8x32xf32> to vector<8x16xf32>
    %193 = math.tanh %192 : vector<8x16xf32>
    %cst_75 = arith.constant dense<0.000000e+00> : vector<8x128xf32>
    %194 = tpu.matmul %191, %12, %cst_75 {dimension_numbers = #tpu.dot_dimension_numbers<[1], [0], [0], [1], [0, 0, 1, 1], [], []>} : vector<8x16xf32>, vector<16x128xf32>, vector<8x128xf32> -> vector<8x128xf32>
    %cst_76 = arith.constant dense<0.000000e+00> : vector<8x128xf32>
    %195 = tpu.matmul %193, %12, %cst_76 {dimension_numbers = #tpu.dot_dimension_numbers<[1], [0], [0], [1], [0, 0, 1, 1], [], []>} : vector<8x16xf32>, vector<16x128xf32>, vector<8x128xf32> -> vector<8x128xf32>
    %196 = arith.mulf %158, %194 : vector<8x128xf32>
    %cst_77 = arith.constant 1.000000e+00 : f32
    %197 = vector.broadcast %cst_77 : f32 to vector<8x128xf32>
    %198 = arith.subf %197, %196 : vector<8x128xf32>
    %199 = arith.mulf %139, %198 : vector<8x128xf32>
    %200 = arith.mulf %158, %195 : vector<8x128xf32>
    %201 = arith.addf %199, %200 : vector<8x128xf32>
    %c3_i32 = arith.constant 3 : i32
    %202 = arith.index_cast %c3_i32 : i32 to index
    %c0_78 = arith.constant 0 : index
    %c0_79 = arith.constant 0 : index
    %203 = vector.load %arg1[%202, %c0_78, %c0_79] : memref<16x8x32xf32, #tpu.memory_space<vmem>>, vector<1x8x32xf32>
    %204 = vector.shape_cast %203 : vector<1x8x32xf32> to vector<8x32xf32>
    %cst_80 = arith.constant dense<0.000000e+00> : vector<8x24xf32>
    %205 = tpu.matmul %204, %0, %cst_80 {dimension_numbers = #tpu.dot_dimension_numbers<[1], [0], [0], [1], [0, 0, 1, 1], [], []>} : vector<8x32xf32>, vector<32x24xf32>, vector<8x24xf32> -> vector<8x24xf32>
    %206 = vector.broadcast %1 : vector<1x24xf32> to vector<8x24xf32>
    %207 = arith.addf %205, %206 : vector<8x24xf32>
    %208 = vector.extract_strided_slice %207 {offsets = [0, 0], sizes = [8, 8], strides = [1, 1]} : vector<8x24xf32> to vector<8x8xf32>
    %209 = vector.extract_strided_slice %207 {offsets = [0, 8], sizes = [8, 16], strides = [1, 1]} : vector<8x24xf32> to vector<8x16xf32>
    %cst_81 = arith.constant dense<0.000000e+00> : vector<8x8xf32>
    %210 = tpu.matmul %208, %2, %cst_81 {dimension_numbers = #tpu.dot_dimension_numbers<[1], [0], [0], [1], [0, 0, 1, 1], [], []>} : vector<8x8xf32>, vector<8x8xf32>, vector<8x8xf32> -> vector<8x8xf32>
    %cst_82 = arith.constant dense<0xFF800000> : vector<8xf32>
    %211 = vector.multi_reduction <maximumf>, %210, %cst_82 [1] : vector<8x8xf32> to vector<8xf32>
    %212 = vector.shape_cast %211 : vector<8xf32> to vector<8x1xf32>
    %213 = vector.broadcast %212 : vector<8x1xf32> to vector<8x8xf32>
    %214 = arith.subf %210, %213 : vector<8x8xf32>
    %215 = math.exp %214 : vector<8x8xf32>
    %cst_83 = arith.constant dense<0.000000e+00> : vector<8xf32>
    %216 = vector.multi_reduction <add>, %215, %cst_83 [1] : vector<8x8xf32> to vector<8xf32>
    %217 = vector.shape_cast %216 : vector<8xf32> to vector<8x1xf32>
    %218 = vector.broadcast %217 : vector<8x1xf32> to vector<8x8xf32>
    %219 = arith.divf %215, %218 : vector<8x8xf32>
    %cst_84 = arith.constant dense<0.000000e+00> : vector<8x128xf32>
    %220 = tpu.matmul %219, %10, %cst_84 {dimension_numbers = #tpu.dot_dimension_numbers<[1], [0], [0], [1], [0, 0, 1, 1], [], []>} : vector<8x8xf32>, vector<8x128xf32>, vector<8x128xf32> -> vector<8x128xf32>
    %221 = arith.mulf %220, %201 : vector<8x128xf32>
    %cst_85 = arith.constant dense<0.000000e+00> : vector<8x16xf32>
    %222 = tpu.matmul %221, %11, %cst_85 {dimension_numbers = #tpu.dot_dimension_numbers<[1], [0], [0], [1], [0, 0, 1, 1], [], []>} : vector<8x128xf32>, vector<128x16xf32>, vector<8x16xf32> -> vector<8x16xf32>
    %cst_86 = arith.constant dense<0.000000e+00> : vector<8x16xf32>
    %223 = tpu.matmul %222, %3, %cst_86 {dimension_numbers = #tpu.dot_dimension_numbers<[1], [0], [0], [1], [0, 0, 1, 1], [], []>} : vector<8x16xf32>, vector<16x16xf32>, vector<8x16xf32> -> vector<8x16xf32>
    %cst_87 = arith.constant dense<0.000000e+00> : vector<8x16xf32>
    %224 = tpu.matmul %208, %4, %cst_87 {dimension_numbers = #tpu.dot_dimension_numbers<[1], [0], [0], [1], [0, 0, 1, 1], [], []>} : vector<8x8xf32>, vector<8x16xf32>, vector<8x16xf32> -> vector<8x16xf32>
    %225 = arith.addf %223, %224 : vector<8x16xf32>
    %226 = vector.broadcast %5 : vector<1x16xf32> to vector<8x16xf32>
    %227 = arith.addf %225, %226 : vector<8x16xf32>
    %228 = math.tanh %227 : vector<8x16xf32>
    %229 = vector.broadcast %6 : vector<1x16xf32> to vector<8x16xf32>
    %230 = arith.mulf %228, %229 : vector<8x16xf32>
    %cst_88 = arith.constant dense<0.000000e+00> : vector<8xf32>
    %231 = vector.multi_reduction <add>, %230, %cst_88 [1] : vector<8x16xf32> to vector<8xf32>
    %232 = vector.shape_cast %231 : vector<8xf32> to vector<8x1xf32>
    %233 = vector.broadcast %7 : vector<1x1xf32> to vector<8x1xf32>
    %234 = arith.addf %232, %233 : vector<8x1xf32>
    %235 = arith.negf %234 : vector<8x1xf32>
    %236 = math.exp %235 : vector<8x1xf32>
    %cst_89 = arith.constant 1.000000e+00 : f32
    %237 = vector.broadcast %cst_89 : f32 to vector<8x1xf32>
    %238 = arith.addf %237, %236 : vector<8x1xf32>
    %239 = arith.divf %237, %238 : vector<8x1xf32>
    %240 = vector.broadcast %c3_i32 : i32 to vector<8x128xi32>
    %241 = arith.cmpi eq, %13, %240 : vector<8x128xi32>
    %242 = vector.shape_cast %239 : vector<8x1xf32> to vector<8x1xf32>
    %243 = vector.broadcast %242 : vector<8x1xf32> to vector<8x128xf32>
    %244 = arith.select %241, %243, %182 : vector<8x128xi1>, vector<8x128xf32>
    %cst_90 = arith.constant dense<0.000000e+00> : vector<8x32xf32>
    %245 = tpu.matmul %209, %8, %cst_90 {dimension_numbers = #tpu.dot_dimension_numbers<[1], [0], [0], [1], [0, 0, 1, 1], [], []>} : vector<8x16xf32>, vector<16x32xf32>, vector<8x32xf32> -> vector<8x32xf32>
    %246 = vector.broadcast %9 : vector<1x32xf32> to vector<8x32xf32>
    %247 = arith.addf %245, %246 : vector<8x32xf32>
    %248 = vector.extract_strided_slice %247 {offsets = [0, 0], sizes = [8, 16], strides = [1, 1]} : vector<8x32xf32> to vector<8x16xf32>
    %249 = arith.negf %248 : vector<8x16xf32>
    %250 = math.exp %249 : vector<8x16xf32>
    %cst_91 = arith.constant 1.000000e+00 : f32
    %251 = vector.broadcast %cst_91 : f32 to vector<8x16xf32>
    %252 = arith.addf %251, %250 : vector<8x16xf32>
    %253 = arith.divf %251, %252 : vector<8x16xf32>
    %254 = vector.extract_strided_slice %247 {offsets = [0, 16], sizes = [8, 16], strides = [1, 1]} : vector<8x32xf32> to vector<8x16xf32>
    %255 = math.tanh %254 : vector<8x16xf32>
    %cst_92 = arith.constant dense<0.000000e+00> : vector<8x128xf32>
    %256 = tpu.matmul %253, %12, %cst_92 {dimension_numbers = #tpu.dot_dimension_numbers<[1], [0], [0], [1], [0, 0, 1, 1], [], []>} : vector<8x16xf32>, vector<16x128xf32>, vector<8x128xf32> -> vector<8x128xf32>
    %cst_93 = arith.constant dense<0.000000e+00> : vector<8x128xf32>
    %257 = tpu.matmul %255, %12, %cst_93 {dimension_numbers = #tpu.dot_dimension_numbers<[1], [0], [0], [1], [0, 0, 1, 1], [], []>} : vector<8x16xf32>, vector<16x128xf32>, vector<8x128xf32> -> vector<8x128xf32>
    %258 = arith.mulf %220, %256 : vector<8x128xf32>
    %cst_94 = arith.constant 1.000000e+00 : f32
    %259 = vector.broadcast %cst_94 : f32 to vector<8x128xf32>
    %260 = arith.subf %259, %258 : vector<8x128xf32>
    %261 = arith.mulf %201, %260 : vector<8x128xf32>
    %262 = arith.mulf %220, %257 : vector<8x128xf32>
    %263 = arith.addf %261, %262 : vector<8x128xf32>
    %c4_i32 = arith.constant 4 : i32
    %264 = arith.index_cast %c4_i32 : i32 to index
    %c0_95 = arith.constant 0 : index
    %c0_96 = arith.constant 0 : index
    %265 = vector.load %arg1[%264, %c0_95, %c0_96] : memref<16x8x32xf32, #tpu.memory_space<vmem>>, vector<1x8x32xf32>
    %266 = vector.shape_cast %265 : vector<1x8x32xf32> to vector<8x32xf32>
    %cst_97 = arith.constant dense<0.000000e+00> : vector<8x24xf32>
    %267 = tpu.matmul %266, %0, %cst_97 {dimension_numbers = #tpu.dot_dimension_numbers<[1], [0], [0], [1], [0, 0, 1, 1], [], []>} : vector<8x32xf32>, vector<32x24xf32>, vector<8x24xf32> -> vector<8x24xf32>
    %268 = vector.broadcast %1 : vector<1x24xf32> to vector<8x24xf32>
    %269 = arith.addf %267, %268 : vector<8x24xf32>
    %270 = vector.extract_strided_slice %269 {offsets = [0, 0], sizes = [8, 8], strides = [1, 1]} : vector<8x24xf32> to vector<8x8xf32>
    %271 = vector.extract_strided_slice %269 {offsets = [0, 8], sizes = [8, 16], strides = [1, 1]} : vector<8x24xf32> to vector<8x16xf32>
    %cst_98 = arith.constant dense<0.000000e+00> : vector<8x8xf32>
    %272 = tpu.matmul %270, %2, %cst_98 {dimension_numbers = #tpu.dot_dimension_numbers<[1], [0], [0], [1], [0, 0, 1, 1], [], []>} : vector<8x8xf32>, vector<8x8xf32>, vector<8x8xf32> -> vector<8x8xf32>
    %cst_99 = arith.constant dense<0xFF800000> : vector<8xf32>
    %273 = vector.multi_reduction <maximumf>, %272, %cst_99 [1] : vector<8x8xf32> to vector<8xf32>
    %274 = vector.shape_cast %273 : vector<8xf32> to vector<8x1xf32>
    %275 = vector.broadcast %274 : vector<8x1xf32> to vector<8x8xf32>
    %276 = arith.subf %272, %275 : vector<8x8xf32>
    %277 = math.exp %276 : vector<8x8xf32>
    %cst_100 = arith.constant dense<0.000000e+00> : vector<8xf32>
    %278 = vector.multi_reduction <add>, %277, %cst_100 [1] : vector<8x8xf32> to vector<8xf32>
    %279 = vector.shape_cast %278 : vector<8xf32> to vector<8x1xf32>
    %280 = vector.broadcast %279 : vector<8x1xf32> to vector<8x8xf32>
    %281 = arith.divf %277, %280 : vector<8x8xf32>
    %cst_101 = arith.constant dense<0.000000e+00> : vector<8x128xf32>
    %282 = tpu.matmul %281, %10, %cst_101 {dimension_numbers = #tpu.dot_dimension_numbers<[1], [0], [0], [1], [0, 0, 1, 1], [], []>} : vector<8x8xf32>, vector<8x128xf32>, vector<8x128xf32> -> vector<8x128xf32>
    %283 = arith.mulf %282, %263 : vector<8x128xf32>
    %cst_102 = arith.constant dense<0.000000e+00> : vector<8x16xf32>
    %284 = tpu.matmul %283, %11, %cst_102 {dimension_numbers = #tpu.dot_dimension_numbers<[1], [0], [0], [1], [0, 0, 1, 1], [], []>} : vector<8x128xf32>, vector<128x16xf32>, vector<8x16xf32> -> vector<8x16xf32>
    %cst_103 = arith.constant dense<0.000000e+00> : vector<8x16xf32>
    %285 = tpu.matmul %284, %3, %cst_103 {dimension_numbers = #tpu.dot_dimension_numbers<[1], [0], [0], [1], [0, 0, 1, 1], [], []>} : vector<8x16xf32>, vector<16x16xf32>, vector<8x16xf32> -> vector<8x16xf32>
    %cst_104 = arith.constant dense<0.000000e+00> : vector<8x16xf32>
    %286 = tpu.matmul %270, %4, %cst_104 {dimension_numbers = #tpu.dot_dimension_numbers<[1], [0], [0], [1], [0, 0, 1, 1], [], []>} : vector<8x8xf32>, vector<8x16xf32>, vector<8x16xf32> -> vector<8x16xf32>
    %287 = arith.addf %285, %286 : vector<8x16xf32>
    %288 = vector.broadcast %5 : vector<1x16xf32> to vector<8x16xf32>
    %289 = arith.addf %287, %288 : vector<8x16xf32>
    %290 = math.tanh %289 : vector<8x16xf32>
    %291 = vector.broadcast %6 : vector<1x16xf32> to vector<8x16xf32>
    %292 = arith.mulf %290, %291 : vector<8x16xf32>
    %cst_105 = arith.constant dense<0.000000e+00> : vector<8xf32>
    %293 = vector.multi_reduction <add>, %292, %cst_105 [1] : vector<8x16xf32> to vector<8xf32>
    %294 = vector.shape_cast %293 : vector<8xf32> to vector<8x1xf32>
    %295 = vector.broadcast %7 : vector<1x1xf32> to vector<8x1xf32>
    %296 = arith.addf %294, %295 : vector<8x1xf32>
    %297 = arith.negf %296 : vector<8x1xf32>
    %298 = math.exp %297 : vector<8x1xf32>
    %cst_106 = arith.constant 1.000000e+00 : f32
    %299 = vector.broadcast %cst_106 : f32 to vector<8x1xf32>
    %300 = arith.addf %299, %298 : vector<8x1xf32>
    %301 = arith.divf %299, %300 : vector<8x1xf32>
    %302 = vector.broadcast %c4_i32 : i32 to vector<8x128xi32>
    %303 = arith.cmpi eq, %13, %302 : vector<8x128xi32>
    %304 = vector.shape_cast %301 : vector<8x1xf32> to vector<8x1xf32>
    %305 = vector.broadcast %304 : vector<8x1xf32> to vector<8x128xf32>
    %306 = arith.select %303, %305, %244 : vector<8x128xi1>, vector<8x128xf32>
    %cst_107 = arith.constant dense<0.000000e+00> : vector<8x32xf32>
    %307 = tpu.matmul %271, %8, %cst_107 {dimension_numbers = #tpu.dot_dimension_numbers<[1], [0], [0], [1], [0, 0, 1, 1], [], []>} : vector<8x16xf32>, vector<16x32xf32>, vector<8x32xf32> -> vector<8x32xf32>
    %308 = vector.broadcast %9 : vector<1x32xf32> to vector<8x32xf32>
    %309 = arith.addf %307, %308 : vector<8x32xf32>
    %310 = vector.extract_strided_slice %309 {offsets = [0, 0], sizes = [8, 16], strides = [1, 1]} : vector<8x32xf32> to vector<8x16xf32>
    %311 = arith.negf %310 : vector<8x16xf32>
    %312 = math.exp %311 : vector<8x16xf32>
    %cst_108 = arith.constant 1.000000e+00 : f32
    %313 = vector.broadcast %cst_108 : f32 to vector<8x16xf32>
    %314 = arith.addf %313, %312 : vector<8x16xf32>
    %315 = arith.divf %313, %314 : vector<8x16xf32>
    %316 = vector.extract_strided_slice %309 {offsets = [0, 16], sizes = [8, 16], strides = [1, 1]} : vector<8x32xf32> to vector<8x16xf32>
    %317 = math.tanh %316 : vector<8x16xf32>
    %cst_109 = arith.constant dense<0.000000e+00> : vector<8x128xf32>
    %318 = tpu.matmul %315, %12, %cst_109 {dimension_numbers = #tpu.dot_dimension_numbers<[1], [0], [0], [1], [0, 0, 1, 1], [], []>} : vector<8x16xf32>, vector<16x128xf32>, vector<8x128xf32> -> vector<8x128xf32>
    %cst_110 = arith.constant dense<0.000000e+00> : vector<8x128xf32>
    %319 = tpu.matmul %317, %12, %cst_110 {dimension_numbers = #tpu.dot_dimension_numbers<[1], [0], [0], [1], [0, 0, 1, 1], [], []>} : vector<8x16xf32>, vector<16x128xf32>, vector<8x128xf32> -> vector<8x128xf32>
    %320 = arith.mulf %282, %318 : vector<8x128xf32>
    %cst_111 = arith.constant 1.000000e+00 : f32
    %321 = vector.broadcast %cst_111 : f32 to vector<8x128xf32>
    %322 = arith.subf %321, %320 : vector<8x128xf32>
    %323 = arith.mulf %263, %322 : vector<8x128xf32>
    %324 = arith.mulf %282, %319 : vector<8x128xf32>
    %325 = arith.addf %323, %324 : vector<8x128xf32>
    %c5_i32 = arith.constant 5 : i32
    %326 = arith.index_cast %c5_i32 : i32 to index
    %c0_112 = arith.constant 0 : index
    %c0_113 = arith.constant 0 : index
    %327 = vector.load %arg1[%326, %c0_112, %c0_113] : memref<16x8x32xf32, #tpu.memory_space<vmem>>, vector<1x8x32xf32>
    %328 = vector.shape_cast %327 : vector<1x8x32xf32> to vector<8x32xf32>
    %cst_114 = arith.constant dense<0.000000e+00> : vector<8x24xf32>
    %329 = tpu.matmul %328, %0, %cst_114 {dimension_numbers = #tpu.dot_dimension_numbers<[1], [0], [0], [1], [0, 0, 1, 1], [], []>} : vector<8x32xf32>, vector<32x24xf32>, vector<8x24xf32> -> vector<8x24xf32>
    %330 = vector.broadcast %1 : vector<1x24xf32> to vector<8x24xf32>
    %331 = arith.addf %329, %330 : vector<8x24xf32>
    %332 = vector.extract_strided_slice %331 {offsets = [0, 0], sizes = [8, 8], strides = [1, 1]} : vector<8x24xf32> to vector<8x8xf32>
    %333 = vector.extract_strided_slice %331 {offsets = [0, 8], sizes = [8, 16], strides = [1, 1]} : vector<8x24xf32> to vector<8x16xf32>
    %cst_115 = arith.constant dense<0.000000e+00> : vector<8x8xf32>
    %334 = tpu.matmul %332, %2, %cst_115 {dimension_numbers = #tpu.dot_dimension_numbers<[1], [0], [0], [1], [0, 0, 1, 1], [], []>} : vector<8x8xf32>, vector<8x8xf32>, vector<8x8xf32> -> vector<8x8xf32>
    %cst_116 = arith.constant dense<0xFF800000> : vector<8xf32>
    %335 = vector.multi_reduction <maximumf>, %334, %cst_116 [1] : vector<8x8xf32> to vector<8xf32>
    %336 = vector.shape_cast %335 : vector<8xf32> to vector<8x1xf32>
    %337 = vector.broadcast %336 : vector<8x1xf32> to vector<8x8xf32>
    %338 = arith.subf %334, %337 : vector<8x8xf32>
    %339 = math.exp %338 : vector<8x8xf32>
    %cst_117 = arith.constant dense<0.000000e+00> : vector<8xf32>
    %340 = vector.multi_reduction <add>, %339, %cst_117 [1] : vector<8x8xf32> to vector<8xf32>
    %341 = vector.shape_cast %340 : vector<8xf32> to vector<8x1xf32>
    %342 = vector.broadcast %341 : vector<8x1xf32> to vector<8x8xf32>
    %343 = arith.divf %339, %342 : vector<8x8xf32>
    %cst_118 = arith.constant dense<0.000000e+00> : vector<8x128xf32>
    %344 = tpu.matmul %343, %10, %cst_118 {dimension_numbers = #tpu.dot_dimension_numbers<[1], [0], [0], [1], [0, 0, 1, 1], [], []>} : vector<8x8xf32>, vector<8x128xf32>, vector<8x128xf32> -> vector<8x128xf32>
    %345 = arith.mulf %344, %325 : vector<8x128xf32>
    %cst_119 = arith.constant dense<0.000000e+00> : vector<8x16xf32>
    %346 = tpu.matmul %345, %11, %cst_119 {dimension_numbers = #tpu.dot_dimension_numbers<[1], [0], [0], [1], [0, 0, 1, 1], [], []>} : vector<8x128xf32>, vector<128x16xf32>, vector<8x16xf32> -> vector<8x16xf32>
    %cst_120 = arith.constant dense<0.000000e+00> : vector<8x16xf32>
    %347 = tpu.matmul %346, %3, %cst_120 {dimension_numbers = #tpu.dot_dimension_numbers<[1], [0], [0], [1], [0, 0, 1, 1], [], []>} : vector<8x16xf32>, vector<16x16xf32>, vector<8x16xf32> -> vector<8x16xf32>
    %cst_121 = arith.constant dense<0.000000e+00> : vector<8x16xf32>
    %348 = tpu.matmul %332, %4, %cst_121 {dimension_numbers = #tpu.dot_dimension_numbers<[1], [0], [0], [1], [0, 0, 1, 1], [], []>} : vector<8x8xf32>, vector<8x16xf32>, vector<8x16xf32> -> vector<8x16xf32>
    %349 = arith.addf %347, %348 : vector<8x16xf32>
    %350 = vector.broadcast %5 : vector<1x16xf32> to vector<8x16xf32>
    %351 = arith.addf %349, %350 : vector<8x16xf32>
    %352 = math.tanh %351 : vector<8x16xf32>
    %353 = vector.broadcast %6 : vector<1x16xf32> to vector<8x16xf32>
    %354 = arith.mulf %352, %353 : vector<8x16xf32>
    %cst_122 = arith.constant dense<0.000000e+00> : vector<8xf32>
    %355 = vector.multi_reduction <add>, %354, %cst_122 [1] : vector<8x16xf32> to vector<8xf32>
    %356 = vector.shape_cast %355 : vector<8xf32> to vector<8x1xf32>
    %357 = vector.broadcast %7 : vector<1x1xf32> to vector<8x1xf32>
    %358 = arith.addf %356, %357 : vector<8x1xf32>
    %359 = arith.negf %358 : vector<8x1xf32>
    %360 = math.exp %359 : vector<8x1xf32>
    %cst_123 = arith.constant 1.000000e+00 : f32
    %361 = vector.broadcast %cst_123 : f32 to vector<8x1xf32>
    %362 = arith.addf %361, %360 : vector<8x1xf32>
    %363 = arith.divf %361, %362 : vector<8x1xf32>
    %364 = vector.broadcast %c5_i32 : i32 to vector<8x128xi32>
    %365 = arith.cmpi eq, %13, %364 : vector<8x128xi32>
    %366 = vector.shape_cast %363 : vector<8x1xf32> to vector<8x1xf32>
    %367 = vector.broadcast %366 : vector<8x1xf32> to vector<8x128xf32>
    %368 = arith.select %365, %367, %306 : vector<8x128xi1>, vector<8x128xf32>
    %cst_124 = arith.constant dense<0.000000e+00> : vector<8x32xf32>
    %369 = tpu.matmul %333, %8, %cst_124 {dimension_numbers = #tpu.dot_dimension_numbers<[1], [0], [0], [1], [0, 0, 1, 1], [], []>} : vector<8x16xf32>, vector<16x32xf32>, vector<8x32xf32> -> vector<8x32xf32>
    %370 = vector.broadcast %9 : vector<1x32xf32> to vector<8x32xf32>
    %371 = arith.addf %369, %370 : vector<8x32xf32>
    %372 = vector.extract_strided_slice %371 {offsets = [0, 0], sizes = [8, 16], strides = [1, 1]} : vector<8x32xf32> to vector<8x16xf32>
    %373 = arith.negf %372 : vector<8x16xf32>
    %374 = math.exp %373 : vector<8x16xf32>
    %cst_125 = arith.constant 1.000000e+00 : f32
    %375 = vector.broadcast %cst_125 : f32 to vector<8x16xf32>
    %376 = arith.addf %375, %374 : vector<8x16xf32>
    %377 = arith.divf %375, %376 : vector<8x16xf32>
    %378 = vector.extract_strided_slice %371 {offsets = [0, 16], sizes = [8, 16], strides = [1, 1]} : vector<8x32xf32> to vector<8x16xf32>
    %379 = math.tanh %378 : vector<8x16xf32>
    %cst_126 = arith.constant dense<0.000000e+00> : vector<8x128xf32>
    %380 = tpu.matmul %377, %12, %cst_126 {dimension_numbers = #tpu.dot_dimension_numbers<[1], [0], [0], [1], [0, 0, 1, 1], [], []>} : vector<8x16xf32>, vector<16x128xf32>, vector<8x128xf32> -> vector<8x128xf32>
    %cst_127 = arith.constant dense<0.000000e+00> : vector<8x128xf32>
    %381 = tpu.matmul %379, %12, %cst_127 {dimension_numbers = #tpu.dot_dimension_numbers<[1], [0], [0], [1], [0, 0, 1, 1], [], []>} : vector<8x16xf32>, vector<16x128xf32>, vector<8x128xf32> -> vector<8x128xf32>
    %382 = arith.mulf %344, %380 : vector<8x128xf32>
    %cst_128 = arith.constant 1.000000e+00 : f32
    %383 = vector.broadcast %cst_128 : f32 to vector<8x128xf32>
    %384 = arith.subf %383, %382 : vector<8x128xf32>
    %385 = arith.mulf %325, %384 : vector<8x128xf32>
    %386 = arith.mulf %344, %381 : vector<8x128xf32>
    %387 = arith.addf %385, %386 : vector<8x128xf32>
    %c6_i32 = arith.constant 6 : i32
    %388 = arith.index_cast %c6_i32 : i32 to index
    %c0_129 = arith.constant 0 : index
    %c0_130 = arith.constant 0 : index
    %389 = vector.load %arg1[%388, %c0_129, %c0_130] : memref<16x8x32xf32, #tpu.memory_space<vmem>>, vector<1x8x32xf32>
    %390 = vector.shape_cast %389 : vector<1x8x32xf32> to vector<8x32xf32>
    %cst_131 = arith.constant dense<0.000000e+00> : vector<8x24xf32>
    %391 = tpu.matmul %390, %0, %cst_131 {dimension_numbers = #tpu.dot_dimension_numbers<[1], [0], [0], [1], [0, 0, 1, 1], [], []>} : vector<8x32xf32>, vector<32x24xf32>, vector<8x24xf32> -> vector<8x24xf32>
    %392 = vector.broadcast %1 : vector<1x24xf32> to vector<8x24xf32>
    %393 = arith.addf %391, %392 : vector<8x24xf32>
    %394 = vector.extract_strided_slice %393 {offsets = [0, 0], sizes = [8, 8], strides = [1, 1]} : vector<8x24xf32> to vector<8x8xf32>
    %395 = vector.extract_strided_slice %393 {offsets = [0, 8], sizes = [8, 16], strides = [1, 1]} : vector<8x24xf32> to vector<8x16xf32>
    %cst_132 = arith.constant dense<0.000000e+00> : vector<8x8xf32>
    %396 = tpu.matmul %394, %2, %cst_132 {dimension_numbers = #tpu.dot_dimension_numbers<[1], [0], [0], [1], [0, 0, 1, 1], [], []>} : vector<8x8xf32>, vector<8x8xf32>, vector<8x8xf32> -> vector<8x8xf32>
    %cst_133 = arith.constant dense<0xFF800000> : vector<8xf32>
    %397 = vector.multi_reduction <maximumf>, %396, %cst_133 [1] : vector<8x8xf32> to vector<8xf32>
    %398 = vector.shape_cast %397 : vector<8xf32> to vector<8x1xf32>
    %399 = vector.broadcast %398 : vector<8x1xf32> to vector<8x8xf32>
    %400 = arith.subf %396, %399 : vector<8x8xf32>
    %401 = math.exp %400 : vector<8x8xf32>
    %cst_134 = arith.constant dense<0.000000e+00> : vector<8xf32>
    %402 = vector.multi_reduction <add>, %401, %cst_134 [1] : vector<8x8xf32> to vector<8xf32>
    %403 = vector.shape_cast %402 : vector<8xf32> to vector<8x1xf32>
    %404 = vector.broadcast %403 : vector<8x1xf32> to vector<8x8xf32>
    %405 = arith.divf %401, %404 : vector<8x8xf32>
    %cst_135 = arith.constant dense<0.000000e+00> : vector<8x128xf32>
    %406 = tpu.matmul %405, %10, %cst_135 {dimension_numbers = #tpu.dot_dimension_numbers<[1], [0], [0], [1], [0, 0, 1, 1], [], []>} : vector<8x8xf32>, vector<8x128xf32>, vector<8x128xf32> -> vector<8x128xf32>
    %407 = arith.mulf %406, %387 : vector<8x128xf32>
    %cst_136 = arith.constant dense<0.000000e+00> : vector<8x16xf32>
    %408 = tpu.matmul %407, %11, %cst_136 {dimension_numbers = #tpu.dot_dimension_numbers<[1], [0], [0], [1], [0, 0, 1, 1], [], []>} : vector<8x128xf32>, vector<128x16xf32>, vector<8x16xf32> -> vector<8x16xf32>
    %cst_137 = arith.constant dense<0.000000e+00> : vector<8x16xf32>
    %409 = tpu.matmul %408, %3, %cst_137 {dimension_numbers = #tpu.dot_dimension_numbers<[1], [0], [0], [1], [0, 0, 1, 1], [], []>} : vector<8x16xf32>, vector<16x16xf32>, vector<8x16xf32> -> vector<8x16xf32>
    %cst_138 = arith.constant dense<0.000000e+00> : vector<8x16xf32>
    %410 = tpu.matmul %394, %4, %cst_138 {dimension_numbers = #tpu.dot_dimension_numbers<[1], [0], [0], [1], [0, 0, 1, 1], [], []>} : vector<8x8xf32>, vector<8x16xf32>, vector<8x16xf32> -> vector<8x16xf32>
    %411 = arith.addf %409, %410 : vector<8x16xf32>
    %412 = vector.broadcast %5 : vector<1x16xf32> to vector<8x16xf32>
    %413 = arith.addf %411, %412 : vector<8x16xf32>
    %414 = math.tanh %413 : vector<8x16xf32>
    %415 = vector.broadcast %6 : vector<1x16xf32> to vector<8x16xf32>
    %416 = arith.mulf %414, %415 : vector<8x16xf32>
    %cst_139 = arith.constant dense<0.000000e+00> : vector<8xf32>
    %417 = vector.multi_reduction <add>, %416, %cst_139 [1] : vector<8x16xf32> to vector<8xf32>
    %418 = vector.shape_cast %417 : vector<8xf32> to vector<8x1xf32>
    %419 = vector.broadcast %7 : vector<1x1xf32> to vector<8x1xf32>
    %420 = arith.addf %418, %419 : vector<8x1xf32>
    %421 = arith.negf %420 : vector<8x1xf32>
    %422 = math.exp %421 : vector<8x1xf32>
    %cst_140 = arith.constant 1.000000e+00 : f32
    %423 = vector.broadcast %cst_140 : f32 to vector<8x1xf32>
    %424 = arith.addf %423, %422 : vector<8x1xf32>
    %425 = arith.divf %423, %424 : vector<8x1xf32>
    %426 = vector.broadcast %c6_i32 : i32 to vector<8x128xi32>
    %427 = arith.cmpi eq, %13, %426 : vector<8x128xi32>
    %428 = vector.shape_cast %425 : vector<8x1xf32> to vector<8x1xf32>
    %429 = vector.broadcast %428 : vector<8x1xf32> to vector<8x128xf32>
    %430 = arith.select %427, %429, %368 : vector<8x128xi1>, vector<8x128xf32>
    %cst_141 = arith.constant dense<0.000000e+00> : vector<8x32xf32>
    %431 = tpu.matmul %395, %8, %cst_141 {dimension_numbers = #tpu.dot_dimension_numbers<[1], [0], [0], [1], [0, 0, 1, 1], [], []>} : vector<8x16xf32>, vector<16x32xf32>, vector<8x32xf32> -> vector<8x32xf32>
    %432 = vector.broadcast %9 : vector<1x32xf32> to vector<8x32xf32>
    %433 = arith.addf %431, %432 : vector<8x32xf32>
    %434 = vector.extract_strided_slice %433 {offsets = [0, 0], sizes = [8, 16], strides = [1, 1]} : vector<8x32xf32> to vector<8x16xf32>
    %435 = arith.negf %434 : vector<8x16xf32>
    %436 = math.exp %435 : vector<8x16xf32>
    %cst_142 = arith.constant 1.000000e+00 : f32
    %437 = vector.broadcast %cst_142 : f32 to vector<8x16xf32>
    %438 = arith.addf %437, %436 : vector<8x16xf32>
    %439 = arith.divf %437, %438 : vector<8x16xf32>
    %440 = vector.extract_strided_slice %433 {offsets = [0, 16], sizes = [8, 16], strides = [1, 1]} : vector<8x32xf32> to vector<8x16xf32>
    %441 = math.tanh %440 : vector<8x16xf32>
    %cst_143 = arith.constant dense<0.000000e+00> : vector<8x128xf32>
    %442 = tpu.matmul %439, %12, %cst_143 {dimension_numbers = #tpu.dot_dimension_numbers<[1], [0], [0], [1], [0, 0, 1, 1], [], []>} : vector<8x16xf32>, vector<16x128xf32>, vector<8x128xf32> -> vector<8x128xf32>
    %cst_144 = arith.constant dense<0.000000e+00> : vector<8x128xf32>
    %443 = tpu.matmul %441, %12, %cst_144 {dimension_numbers = #tpu.dot_dimension_numbers<[1], [0], [0], [1], [0, 0, 1, 1], [], []>} : vector<8x16xf32>, vector<16x128xf32>, vector<8x128xf32> -> vector<8x128xf32>
    %444 = arith.mulf %406, %442 : vector<8x128xf32>
    %cst_145 = arith.constant 1.000000e+00 : f32
    %445 = vector.broadcast %cst_145 : f32 to vector<8x128xf32>
    %446 = arith.subf %445, %444 : vector<8x128xf32>
    %447 = arith.mulf %387, %446 : vector<8x128xf32>
    %448 = arith.mulf %406, %443 : vector<8x128xf32>
    %449 = arith.addf %447, %448 : vector<8x128xf32>
    %c7_i32 = arith.constant 7 : i32
    %450 = arith.index_cast %c7_i32 : i32 to index
    %c0_146 = arith.constant 0 : index
    %c0_147 = arith.constant 0 : index
    %451 = vector.load %arg1[%450, %c0_146, %c0_147] : memref<16x8x32xf32, #tpu.memory_space<vmem>>, vector<1x8x32xf32>
    %452 = vector.shape_cast %451 : vector<1x8x32xf32> to vector<8x32xf32>
    %cst_148 = arith.constant dense<0.000000e+00> : vector<8x24xf32>
    %453 = tpu.matmul %452, %0, %cst_148 {dimension_numbers = #tpu.dot_dimension_numbers<[1], [0], [0], [1], [0, 0, 1, 1], [], []>} : vector<8x32xf32>, vector<32x24xf32>, vector<8x24xf32> -> vector<8x24xf32>
    %454 = vector.broadcast %1 : vector<1x24xf32> to vector<8x24xf32>
    %455 = arith.addf %453, %454 : vector<8x24xf32>
    %456 = vector.extract_strided_slice %455 {offsets = [0, 0], sizes = [8, 8], strides = [1, 1]} : vector<8x24xf32> to vector<8x8xf32>
    %457 = vector.extract_strided_slice %455 {offsets = [0, 8], sizes = [8, 16], strides = [1, 1]} : vector<8x24xf32> to vector<8x16xf32>
    %cst_149 = arith.constant dense<0.000000e+00> : vector<8x8xf32>
    %458 = tpu.matmul %456, %2, %cst_149 {dimension_numbers = #tpu.dot_dimension_numbers<[1], [0], [0], [1], [0, 0, 1, 1], [], []>} : vector<8x8xf32>, vector<8x8xf32>, vector<8x8xf32> -> vector<8x8xf32>
    %cst_150 = arith.constant dense<0xFF800000> : vector<8xf32>
    %459 = vector.multi_reduction <maximumf>, %458, %cst_150 [1] : vector<8x8xf32> to vector<8xf32>
    %460 = vector.shape_cast %459 : vector<8xf32> to vector<8x1xf32>
    %461 = vector.broadcast %460 : vector<8x1xf32> to vector<8x8xf32>
    %462 = arith.subf %458, %461 : vector<8x8xf32>
    %463 = math.exp %462 : vector<8x8xf32>
    %cst_151 = arith.constant dense<0.000000e+00> : vector<8xf32>
    %464 = vector.multi_reduction <add>, %463, %cst_151 [1] : vector<8x8xf32> to vector<8xf32>
    %465 = vector.shape_cast %464 : vector<8xf32> to vector<8x1xf32>
    %466 = vector.broadcast %465 : vector<8x1xf32> to vector<8x8xf32>
    %467 = arith.divf %463, %466 : vector<8x8xf32>
    %cst_152 = arith.constant dense<0.000000e+00> : vector<8x128xf32>
    %468 = tpu.matmul %467, %10, %cst_152 {dimension_numbers = #tpu.dot_dimension_numbers<[1], [0], [0], [1], [0, 0, 1, 1], [], []>} : vector<8x8xf32>, vector<8x128xf32>, vector<8x128xf32> -> vector<8x128xf32>
    %469 = arith.mulf %468, %449 : vector<8x128xf32>
    %cst_153 = arith.constant dense<0.000000e+00> : vector<8x16xf32>
    %470 = tpu.matmul %469, %11, %cst_153 {dimension_numbers = #tpu.dot_dimension_numbers<[1], [0], [0], [1], [0, 0, 1, 1], [], []>} : vector<8x128xf32>, vector<128x16xf32>, vector<8x16xf32> -> vector<8x16xf32>
    %cst_154 = arith.constant dense<0.000000e+00> : vector<8x16xf32>
    %471 = tpu.matmul %470, %3, %cst_154 {dimension_numbers = #tpu.dot_dimension_numbers<[1], [0], [0], [1], [0, 0, 1, 1], [], []>} : vector<8x16xf32>, vector<16x16xf32>, vector<8x16xf32> -> vector<8x16xf32>
    %cst_155 = arith.constant dense<0.000000e+00> : vector<8x16xf32>
    %472 = tpu.matmul %456, %4, %cst_155 {dimension_numbers = #tpu.dot_dimension_numbers<[1], [0], [0], [1], [0, 0, 1, 1], [], []>} : vector<8x8xf32>, vector<8x16xf32>, vector<8x16xf32> -> vector<8x16xf32>
    %473 = arith.addf %471, %472 : vector<8x16xf32>
    %474 = vector.broadcast %5 : vector<1x16xf32> to vector<8x16xf32>
    %475 = arith.addf %473, %474 : vector<8x16xf32>
    %476 = math.tanh %475 : vector<8x16xf32>
    %477 = vector.broadcast %6 : vector<1x16xf32> to vector<8x16xf32>
    %478 = arith.mulf %476, %477 : vector<8x16xf32>
    %cst_156 = arith.constant dense<0.000000e+00> : vector<8xf32>
    %479 = vector.multi_reduction <add>, %478, %cst_156 [1] : vector<8x16xf32> to vector<8xf32>
    %480 = vector.shape_cast %479 : vector<8xf32> to vector<8x1xf32>
    %481 = vector.broadcast %7 : vector<1x1xf32> to vector<8x1xf32>
    %482 = arith.addf %480, %481 : vector<8x1xf32>
    %483 = arith.negf %482 : vector<8x1xf32>
    %484 = math.exp %483 : vector<8x1xf32>
    %cst_157 = arith.constant 1.000000e+00 : f32
    %485 = vector.broadcast %cst_157 : f32 to vector<8x1xf32>
    %486 = arith.addf %485, %484 : vector<8x1xf32>
    %487 = arith.divf %485, %486 : vector<8x1xf32>
    %488 = vector.broadcast %c7_i32 : i32 to vector<8x128xi32>
    %489 = arith.cmpi eq, %13, %488 : vector<8x128xi32>
    %490 = vector.shape_cast %487 : vector<8x1xf32> to vector<8x1xf32>
    %491 = vector.broadcast %490 : vector<8x1xf32> to vector<8x128xf32>
    %492 = arith.select %489, %491, %430 : vector<8x128xi1>, vector<8x128xf32>
    %cst_158 = arith.constant dense<0.000000e+00> : vector<8x32xf32>
    %493 = tpu.matmul %457, %8, %cst_158 {dimension_numbers = #tpu.dot_dimension_numbers<[1], [0], [0], [1], [0, 0, 1, 1], [], []>} : vector<8x16xf32>, vector<16x32xf32>, vector<8x32xf32> -> vector<8x32xf32>
    %494 = vector.broadcast %9 : vector<1x32xf32> to vector<8x32xf32>
    %495 = arith.addf %493, %494 : vector<8x32xf32>
    %496 = vector.extract_strided_slice %495 {offsets = [0, 0], sizes = [8, 16], strides = [1, 1]} : vector<8x32xf32> to vector<8x16xf32>
    %497 = arith.negf %496 : vector<8x16xf32>
    %498 = math.exp %497 : vector<8x16xf32>
    %cst_159 = arith.constant 1.000000e+00 : f32
    %499 = vector.broadcast %cst_159 : f32 to vector<8x16xf32>
    %500 = arith.addf %499, %498 : vector<8x16xf32>
    %501 = arith.divf %499, %500 : vector<8x16xf32>
    %502 = vector.extract_strided_slice %495 {offsets = [0, 16], sizes = [8, 16], strides = [1, 1]} : vector<8x32xf32> to vector<8x16xf32>
    %503 = math.tanh %502 : vector<8x16xf32>
    %cst_160 = arith.constant dense<0.000000e+00> : vector<8x128xf32>
    %504 = tpu.matmul %501, %12, %cst_160 {dimension_numbers = #tpu.dot_dimension_numbers<[1], [0], [0], [1], [0, 0, 1, 1], [], []>} : vector<8x16xf32>, vector<16x128xf32>, vector<8x128xf32> -> vector<8x128xf32>
    %cst_161 = arith.constant dense<0.000000e+00> : vector<8x128xf32>
    %505 = tpu.matmul %503, %12, %cst_161 {dimension_numbers = #tpu.dot_dimension_numbers<[1], [0], [0], [1], [0, 0, 1, 1], [], []>} : vector<8x16xf32>, vector<16x128xf32>, vector<8x128xf32> -> vector<8x128xf32>
    %506 = arith.mulf %468, %504 : vector<8x128xf32>
    %cst_162 = arith.constant 1.000000e+00 : f32
    %507 = vector.broadcast %cst_162 : f32 to vector<8x128xf32>
    %508 = arith.subf %507, %506 : vector<8x128xf32>
    %509 = arith.mulf %449, %508 : vector<8x128xf32>
    %510 = arith.mulf %468, %505 : vector<8x128xf32>
    %511 = arith.addf %509, %510 : vector<8x128xf32>
    %c8_i32 = arith.constant 8 : i32
    %512 = arith.index_cast %c8_i32 : i32 to index
    %c0_163 = arith.constant 0 : index
    %c0_164 = arith.constant 0 : index
    %513 = vector.load %arg1[%512, %c0_163, %c0_164] : memref<16x8x32xf32, #tpu.memory_space<vmem>>, vector<1x8x32xf32>
    %514 = vector.shape_cast %513 : vector<1x8x32xf32> to vector<8x32xf32>
    %cst_165 = arith.constant dense<0.000000e+00> : vector<8x24xf32>
    %515 = tpu.matmul %514, %0, %cst_165 {dimension_numbers = #tpu.dot_dimension_numbers<[1], [0], [0], [1], [0, 0, 1, 1], [], []>} : vector<8x32xf32>, vector<32x24xf32>, vector<8x24xf32> -> vector<8x24xf32>
    %516 = vector.broadcast %1 : vector<1x24xf32> to vector<8x24xf32>
    %517 = arith.addf %515, %516 : vector<8x24xf32>
    %518 = vector.extract_strided_slice %517 {offsets = [0, 0], sizes = [8, 8], strides = [1, 1]} : vector<8x24xf32> to vector<8x8xf32>
    %519 = vector.extract_strided_slice %517 {offsets = [0, 8], sizes = [8, 16], strides = [1, 1]} : vector<8x24xf32> to vector<8x16xf32>
    %cst_166 = arith.constant dense<0.000000e+00> : vector<8x8xf32>
    %520 = tpu.matmul %518, %2, %cst_166 {dimension_numbers = #tpu.dot_dimension_numbers<[1], [0], [0], [1], [0, 0, 1, 1], [], []>} : vector<8x8xf32>, vector<8x8xf32>, vector<8x8xf32> -> vector<8x8xf32>
    %cst_167 = arith.constant dense<0xFF800000> : vector<8xf32>
    %521 = vector.multi_reduction <maximumf>, %520, %cst_167 [1] : vector<8x8xf32> to vector<8xf32>
    %522 = vector.shape_cast %521 : vector<8xf32> to vector<8x1xf32>
    %523 = vector.broadcast %522 : vector<8x1xf32> to vector<8x8xf32>
    %524 = arith.subf %520, %523 : vector<8x8xf32>
    %525 = math.exp %524 : vector<8x8xf32>
    %cst_168 = arith.constant dense<0.000000e+00> : vector<8xf32>
    %526 = vector.multi_reduction <add>, %525, %cst_168 [1] : vector<8x8xf32> to vector<8xf32>
    %527 = vector.shape_cast %526 : vector<8xf32> to vector<8x1xf32>
    %528 = vector.broadcast %527 : vector<8x1xf32> to vector<8x8xf32>
    %529 = arith.divf %525, %528 : vector<8x8xf32>
    %cst_169 = arith.constant dense<0.000000e+00> : vector<8x128xf32>
    %530 = tpu.matmul %529, %10, %cst_169 {dimension_numbers = #tpu.dot_dimension_numbers<[1], [0], [0], [1], [0, 0, 1, 1], [], []>} : vector<8x8xf32>, vector<8x128xf32>, vector<8x128xf32> -> vector<8x128xf32>
    %531 = arith.mulf %530, %511 : vector<8x128xf32>
    %cst_170 = arith.constant dense<0.000000e+00> : vector<8x16xf32>
    %532 = tpu.matmul %531, %11, %cst_170 {dimension_numbers = #tpu.dot_dimension_numbers<[1], [0], [0], [1], [0, 0, 1, 1], [], []>} : vector<8x128xf32>, vector<128x16xf32>, vector<8x16xf32> -> vector<8x16xf32>
    %cst_171 = arith.constant dense<0.000000e+00> : vector<8x16xf32>
    %533 = tpu.matmul %532, %3, %cst_171 {dimension_numbers = #tpu.dot_dimension_numbers<[1], [0], [0], [1], [0, 0, 1, 1], [], []>} : vector<8x16xf32>, vector<16x16xf32>, vector<8x16xf32> -> vector<8x16xf32>
    %cst_172 = arith.constant dense<0.000000e+00> : vector<8x16xf32>
    %534 = tpu.matmul %518, %4, %cst_172 {dimension_numbers = #tpu.dot_dimension_numbers<[1], [0], [0], [1], [0, 0, 1, 1], [], []>} : vector<8x8xf32>, vector<8x16xf32>, vector<8x16xf32> -> vector<8x16xf32>
    %535 = arith.addf %533, %534 : vector<8x16xf32>
    %536 = vector.broadcast %5 : vector<1x16xf32> to vector<8x16xf32>
    %537 = arith.addf %535, %536 : vector<8x16xf32>
    %538 = math.tanh %537 : vector<8x16xf32>
    %539 = vector.broadcast %6 : vector<1x16xf32> to vector<8x16xf32>
    %540 = arith.mulf %538, %539 : vector<8x16xf32>
    %cst_173 = arith.constant dense<0.000000e+00> : vector<8xf32>
    %541 = vector.multi_reduction <add>, %540, %cst_173 [1] : vector<8x16xf32> to vector<8xf32>
    %542 = vector.shape_cast %541 : vector<8xf32> to vector<8x1xf32>
    %543 = vector.broadcast %7 : vector<1x1xf32> to vector<8x1xf32>
    %544 = arith.addf %542, %543 : vector<8x1xf32>
    %545 = arith.negf %544 : vector<8x1xf32>
    %546 = math.exp %545 : vector<8x1xf32>
    %cst_174 = arith.constant 1.000000e+00 : f32
    %547 = vector.broadcast %cst_174 : f32 to vector<8x1xf32>
    %548 = arith.addf %547, %546 : vector<8x1xf32>
    %549 = arith.divf %547, %548 : vector<8x1xf32>
    %550 = vector.broadcast %c8_i32 : i32 to vector<8x128xi32>
    %551 = arith.cmpi eq, %13, %550 : vector<8x128xi32>
    %552 = vector.shape_cast %549 : vector<8x1xf32> to vector<8x1xf32>
    %553 = vector.broadcast %552 : vector<8x1xf32> to vector<8x128xf32>
    %554 = arith.select %551, %553, %492 : vector<8x128xi1>, vector<8x128xf32>
    %cst_175 = arith.constant dense<0.000000e+00> : vector<8x32xf32>
    %555 = tpu.matmul %519, %8, %cst_175 {dimension_numbers = #tpu.dot_dimension_numbers<[1], [0], [0], [1], [0, 0, 1, 1], [], []>} : vector<8x16xf32>, vector<16x32xf32>, vector<8x32xf32> -> vector<8x32xf32>
    %556 = vector.broadcast %9 : vector<1x32xf32> to vector<8x32xf32>
    %557 = arith.addf %555, %556 : vector<8x32xf32>
    %558 = vector.extract_strided_slice %557 {offsets = [0, 0], sizes = [8, 16], strides = [1, 1]} : vector<8x32xf32> to vector<8x16xf32>
    %559 = arith.negf %558 : vector<8x16xf32>
    %560 = math.exp %559 : vector<8x16xf32>
    %cst_176 = arith.constant 1.000000e+00 : f32
    %561 = vector.broadcast %cst_176 : f32 to vector<8x16xf32>
    %562 = arith.addf %561, %560 : vector<8x16xf32>
    %563 = arith.divf %561, %562 : vector<8x16xf32>
    %564 = vector.extract_strided_slice %557 {offsets = [0, 16], sizes = [8, 16], strides = [1, 1]} : vector<8x32xf32> to vector<8x16xf32>
    %565 = math.tanh %564 : vector<8x16xf32>
    %cst_177 = arith.constant dense<0.000000e+00> : vector<8x128xf32>
    %566 = tpu.matmul %563, %12, %cst_177 {dimension_numbers = #tpu.dot_dimension_numbers<[1], [0], [0], [1], [0, 0, 1, 1], [], []>} : vector<8x16xf32>, vector<16x128xf32>, vector<8x128xf32> -> vector<8x128xf32>
    %cst_178 = arith.constant dense<0.000000e+00> : vector<8x128xf32>
    %567 = tpu.matmul %565, %12, %cst_178 {dimension_numbers = #tpu.dot_dimension_numbers<[1], [0], [0], [1], [0, 0, 1, 1], [], []>} : vector<8x16xf32>, vector<16x128xf32>, vector<8x128xf32> -> vector<8x128xf32>
    %568 = arith.mulf %530, %566 : vector<8x128xf32>
    %cst_179 = arith.constant 1.000000e+00 : f32
    %569 = vector.broadcast %cst_179 : f32 to vector<8x128xf32>
    %570 = arith.subf %569, %568 : vector<8x128xf32>
    %571 = arith.mulf %511, %570 : vector<8x128xf32>
    %572 = arith.mulf %530, %567 : vector<8x128xf32>
    %573 = arith.addf %571, %572 : vector<8x128xf32>
    %c9_i32 = arith.constant 9 : i32
    %574 = arith.index_cast %c9_i32 : i32 to index
    %c0_180 = arith.constant 0 : index
    %c0_181 = arith.constant 0 : index
    %575 = vector.load %arg1[%574, %c0_180, %c0_181] : memref<16x8x32xf32, #tpu.memory_space<vmem>>, vector<1x8x32xf32>
    %576 = vector.shape_cast %575 : vector<1x8x32xf32> to vector<8x32xf32>
    %cst_182 = arith.constant dense<0.000000e+00> : vector<8x24xf32>
    %577 = tpu.matmul %576, %0, %cst_182 {dimension_numbers = #tpu.dot_dimension_numbers<[1], [0], [0], [1], [0, 0, 1, 1], [], []>} : vector<8x32xf32>, vector<32x24xf32>, vector<8x24xf32> -> vector<8x24xf32>
    %578 = vector.broadcast %1 : vector<1x24xf32> to vector<8x24xf32>
    %579 = arith.addf %577, %578 : vector<8x24xf32>
    %580 = vector.extract_strided_slice %579 {offsets = [0, 0], sizes = [8, 8], strides = [1, 1]} : vector<8x24xf32> to vector<8x8xf32>
    %581 = vector.extract_strided_slice %579 {offsets = [0, 8], sizes = [8, 16], strides = [1, 1]} : vector<8x24xf32> to vector<8x16xf32>
    %cst_183 = arith.constant dense<0.000000e+00> : vector<8x8xf32>
    %582 = tpu.matmul %580, %2, %cst_183 {dimension_numbers = #tpu.dot_dimension_numbers<[1], [0], [0], [1], [0, 0, 1, 1], [], []>} : vector<8x8xf32>, vector<8x8xf32>, vector<8x8xf32> -> vector<8x8xf32>
    %cst_184 = arith.constant dense<0xFF800000> : vector<8xf32>
    %583 = vector.multi_reduction <maximumf>, %582, %cst_184 [1] : vector<8x8xf32> to vector<8xf32>
    %584 = vector.shape_cast %583 : vector<8xf32> to vector<8x1xf32>
    %585 = vector.broadcast %584 : vector<8x1xf32> to vector<8x8xf32>
    %586 = arith.subf %582, %585 : vector<8x8xf32>
    %587 = math.exp %586 : vector<8x8xf32>
    %cst_185 = arith.constant dense<0.000000e+00> : vector<8xf32>
    %588 = vector.multi_reduction <add>, %587, %cst_185 [1] : vector<8x8xf32> to vector<8xf32>
    %589 = vector.shape_cast %588 : vector<8xf32> to vector<8x1xf32>
    %590 = vector.broadcast %589 : vector<8x1xf32> to vector<8x8xf32>
    %591 = arith.divf %587, %590 : vector<8x8xf32>
    %cst_186 = arith.constant dense<0.000000e+00> : vector<8x128xf32>
    %592 = tpu.matmul %591, %10, %cst_186 {dimension_numbers = #tpu.dot_dimension_numbers<[1], [0], [0], [1], [0, 0, 1, 1], [], []>} : vector<8x8xf32>, vector<8x128xf32>, vector<8x128xf32> -> vector<8x128xf32>
    %593 = arith.mulf %592, %573 : vector<8x128xf32>
    %cst_187 = arith.constant dense<0.000000e+00> : vector<8x16xf32>
    %594 = tpu.matmul %593, %11, %cst_187 {dimension_numbers = #tpu.dot_dimension_numbers<[1], [0], [0], [1], [0, 0, 1, 1], [], []>} : vector<8x128xf32>, vector<128x16xf32>, vector<8x16xf32> -> vector<8x16xf32>
    %cst_188 = arith.constant dense<0.000000e+00> : vector<8x16xf32>
    %595 = tpu.matmul %594, %3, %cst_188 {dimension_numbers = #tpu.dot_dimension_numbers<[1], [0], [0], [1], [0, 0, 1, 1], [], []>} : vector<8x16xf32>, vector<16x16xf32>, vector<8x16xf32> -> vector<8x16xf32>
    %cst_189 = arith.constant dense<0.000000e+00> : vector<8x16xf32>
    %596 = tpu.matmul %580, %4, %cst_189 {dimension_numbers = #tpu.dot_dimension_numbers<[1], [0], [0], [1], [0, 0, 1, 1], [], []>} : vector<8x8xf32>, vector<8x16xf32>, vector<8x16xf32> -> vector<8x16xf32>
    %597 = arith.addf %595, %596 : vector<8x16xf32>
    %598 = vector.broadcast %5 : vector<1x16xf32> to vector<8x16xf32>
    %599 = arith.addf %597, %598 : vector<8x16xf32>
    %600 = math.tanh %599 : vector<8x16xf32>
    %601 = vector.broadcast %6 : vector<1x16xf32> to vector<8x16xf32>
    %602 = arith.mulf %600, %601 : vector<8x16xf32>
    %cst_190 = arith.constant dense<0.000000e+00> : vector<8xf32>
    %603 = vector.multi_reduction <add>, %602, %cst_190 [1] : vector<8x16xf32> to vector<8xf32>
    %604 = vector.shape_cast %603 : vector<8xf32> to vector<8x1xf32>
    %605 = vector.broadcast %7 : vector<1x1xf32> to vector<8x1xf32>
    %606 = arith.addf %604, %605 : vector<8x1xf32>
    %607 = arith.negf %606 : vector<8x1xf32>
    %608 = math.exp %607 : vector<8x1xf32>
    %cst_191 = arith.constant 1.000000e+00 : f32
    %609 = vector.broadcast %cst_191 : f32 to vector<8x1xf32>
    %610 = arith.addf %609, %608 : vector<8x1xf32>
    %611 = arith.divf %609, %610 : vector<8x1xf32>
    %612 = vector.broadcast %c9_i32 : i32 to vector<8x128xi32>
    %613 = arith.cmpi eq, %13, %612 : vector<8x128xi32>
    %614 = vector.shape_cast %611 : vector<8x1xf32> to vector<8x1xf32>
    %615 = vector.broadcast %614 : vector<8x1xf32> to vector<8x128xf32>
    %616 = arith.select %613, %615, %554 : vector<8x128xi1>, vector<8x128xf32>
    %cst_192 = arith.constant dense<0.000000e+00> : vector<8x32xf32>
    %617 = tpu.matmul %581, %8, %cst_192 {dimension_numbers = #tpu.dot_dimension_numbers<[1], [0], [0], [1], [0, 0, 1, 1], [], []>} : vector<8x16xf32>, vector<16x32xf32>, vector<8x32xf32> -> vector<8x32xf32>
    %618 = vector.broadcast %9 : vector<1x32xf32> to vector<8x32xf32>
    %619 = arith.addf %617, %618 : vector<8x32xf32>
    %620 = vector.extract_strided_slice %619 {offsets = [0, 0], sizes = [8, 16], strides = [1, 1]} : vector<8x32xf32> to vector<8x16xf32>
    %621 = arith.negf %620 : vector<8x16xf32>
    %622 = math.exp %621 : vector<8x16xf32>
    %cst_193 = arith.constant 1.000000e+00 : f32
    %623 = vector.broadcast %cst_193 : f32 to vector<8x16xf32>
    %624 = arith.addf %623, %622 : vector<8x16xf32>
    %625 = arith.divf %623, %624 : vector<8x16xf32>
    %626 = vector.extract_strided_slice %619 {offsets = [0, 16], sizes = [8, 16], strides = [1, 1]} : vector<8x32xf32> to vector<8x16xf32>
    %627 = math.tanh %626 : vector<8x16xf32>
    %cst_194 = arith.constant dense<0.000000e+00> : vector<8x128xf32>
    %628 = tpu.matmul %625, %12, %cst_194 {dimension_numbers = #tpu.dot_dimension_numbers<[1], [0], [0], [1], [0, 0, 1, 1], [], []>} : vector<8x16xf32>, vector<16x128xf32>, vector<8x128xf32> -> vector<8x128xf32>
    %cst_195 = arith.constant dense<0.000000e+00> : vector<8x128xf32>
    %629 = tpu.matmul %627, %12, %cst_195 {dimension_numbers = #tpu.dot_dimension_numbers<[1], [0], [0], [1], [0, 0, 1, 1], [], []>} : vector<8x16xf32>, vector<16x128xf32>, vector<8x128xf32> -> vector<8x128xf32>
    %630 = arith.mulf %592, %628 : vector<8x128xf32>
    %cst_196 = arith.constant 1.000000e+00 : f32
    %631 = vector.broadcast %cst_196 : f32 to vector<8x128xf32>
    %632 = arith.subf %631, %630 : vector<8x128xf32>
    %633 = arith.mulf %573, %632 : vector<8x128xf32>
    %634 = arith.mulf %592, %629 : vector<8x128xf32>
    %635 = arith.addf %633, %634 : vector<8x128xf32>
    %c10_i32 = arith.constant 10 : i32
    %636 = arith.index_cast %c10_i32 : i32 to index
    %c0_197 = arith.constant 0 : index
    %c0_198 = arith.constant 0 : index
    %637 = vector.load %arg1[%636, %c0_197, %c0_198] : memref<16x8x32xf32, #tpu.memory_space<vmem>>, vector<1x8x32xf32>
    %638 = vector.shape_cast %637 : vector<1x8x32xf32> to vector<8x32xf32>
    %cst_199 = arith.constant dense<0.000000e+00> : vector<8x24xf32>
    %639 = tpu.matmul %638, %0, %cst_199 {dimension_numbers = #tpu.dot_dimension_numbers<[1], [0], [0], [1], [0, 0, 1, 1], [], []>} : vector<8x32xf32>, vector<32x24xf32>, vector<8x24xf32> -> vector<8x24xf32>
    %640 = vector.broadcast %1 : vector<1x24xf32> to vector<8x24xf32>
    %641 = arith.addf %639, %640 : vector<8x24xf32>
    %642 = vector.extract_strided_slice %641 {offsets = [0, 0], sizes = [8, 8], strides = [1, 1]} : vector<8x24xf32> to vector<8x8xf32>
    %643 = vector.extract_strided_slice %641 {offsets = [0, 8], sizes = [8, 16], strides = [1, 1]} : vector<8x24xf32> to vector<8x16xf32>
    %cst_200 = arith.constant dense<0.000000e+00> : vector<8x8xf32>
    %644 = tpu.matmul %642, %2, %cst_200 {dimension_numbers = #tpu.dot_dimension_numbers<[1], [0], [0], [1], [0, 0, 1, 1], [], []>} : vector<8x8xf32>, vector<8x8xf32>, vector<8x8xf32> -> vector<8x8xf32>
    %cst_201 = arith.constant dense<0xFF800000> : vector<8xf32>
    %645 = vector.multi_reduction <maximumf>, %644, %cst_201 [1] : vector<8x8xf32> to vector<8xf32>
    %646 = vector.shape_cast %645 : vector<8xf32> to vector<8x1xf32>
    %647 = vector.broadcast %646 : vector<8x1xf32> to vector<8x8xf32>
    %648 = arith.subf %644, %647 : vector<8x8xf32>
    %649 = math.exp %648 : vector<8x8xf32>
    %cst_202 = arith.constant dense<0.000000e+00> : vector<8xf32>
    %650 = vector.multi_reduction <add>, %649, %cst_202 [1] : vector<8x8xf32> to vector<8xf32>
    %651 = vector.shape_cast %650 : vector<8xf32> to vector<8x1xf32>
    %652 = vector.broadcast %651 : vector<8x1xf32> to vector<8x8xf32>
    %653 = arith.divf %649, %652 : vector<8x8xf32>
    %cst_203 = arith.constant dense<0.000000e+00> : vector<8x128xf32>
    %654 = tpu.matmul %653, %10, %cst_203 {dimension_numbers = #tpu.dot_dimension_numbers<[1], [0], [0], [1], [0, 0, 1, 1], [], []>} : vector<8x8xf32>, vector<8x128xf32>, vector<8x128xf32> -> vector<8x128xf32>
    %655 = arith.mulf %654, %635 : vector<8x128xf32>
    %cst_204 = arith.constant dense<0.000000e+00> : vector<8x16xf32>
    %656 = tpu.matmul %655, %11, %cst_204 {dimension_numbers = #tpu.dot_dimension_numbers<[1], [0], [0], [1], [0, 0, 1, 1], [], []>} : vector<8x128xf32>, vector<128x16xf32>, vector<8x16xf32> -> vector<8x16xf32>
    %cst_205 = arith.constant dense<0.000000e+00> : vector<8x16xf32>
    %657 = tpu.matmul %656, %3, %cst_205 {dimension_numbers = #tpu.dot_dimension_numbers<[1], [0], [0], [1], [0, 0, 1, 1], [], []>} : vector<8x16xf32>, vector<16x16xf32>, vector<8x16xf32> -> vector<8x16xf32>
    %cst_206 = arith.constant dense<0.000000e+00> : vector<8x16xf32>
    %658 = tpu.matmul %642, %4, %cst_206 {dimension_numbers = #tpu.dot_dimension_numbers<[1], [0], [0], [1], [0, 0, 1, 1], [], []>} : vector<8x8xf32>, vector<8x16xf32>, vector<8x16xf32> -> vector<8x16xf32>
    %659 = arith.addf %657, %658 : vector<8x16xf32>
    %660 = vector.broadcast %5 : vector<1x16xf32> to vector<8x16xf32>
    %661 = arith.addf %659, %660 : vector<8x16xf32>
    %662 = math.tanh %661 : vector<8x16xf32>
    %663 = vector.broadcast %6 : vector<1x16xf32> to vector<8x16xf32>
    %664 = arith.mulf %662, %663 : vector<8x16xf32>
    %cst_207 = arith.constant dense<0.000000e+00> : vector<8xf32>
    %665 = vector.multi_reduction <add>, %664, %cst_207 [1] : vector<8x16xf32> to vector<8xf32>
    %666 = vector.shape_cast %665 : vector<8xf32> to vector<8x1xf32>
    %667 = vector.broadcast %7 : vector<1x1xf32> to vector<8x1xf32>
    %668 = arith.addf %666, %667 : vector<8x1xf32>
    %669 = arith.negf %668 : vector<8x1xf32>
    %670 = math.exp %669 : vector<8x1xf32>
    %cst_208 = arith.constant 1.000000e+00 : f32
    %671 = vector.broadcast %cst_208 : f32 to vector<8x1xf32>
    %672 = arith.addf %671, %670 : vector<8x1xf32>
    %673 = arith.divf %671, %672 : vector<8x1xf32>
    %674 = vector.broadcast %c10_i32 : i32 to vector<8x128xi32>
    %675 = arith.cmpi eq, %13, %674 : vector<8x128xi32>
    %676 = vector.shape_cast %673 : vector<8x1xf32> to vector<8x1xf32>
    %677 = vector.broadcast %676 : vector<8x1xf32> to vector<8x128xf32>
    %678 = arith.select %675, %677, %616 : vector<8x128xi1>, vector<8x128xf32>
    %cst_209 = arith.constant dense<0.000000e+00> : vector<8x32xf32>
    %679 = tpu.matmul %643, %8, %cst_209 {dimension_numbers = #tpu.dot_dimension_numbers<[1], [0], [0], [1], [0, 0, 1, 1], [], []>} : vector<8x16xf32>, vector<16x32xf32>, vector<8x32xf32> -> vector<8x32xf32>
    %680 = vector.broadcast %9 : vector<1x32xf32> to vector<8x32xf32>
    %681 = arith.addf %679, %680 : vector<8x32xf32>
    %682 = vector.extract_strided_slice %681 {offsets = [0, 0], sizes = [8, 16], strides = [1, 1]} : vector<8x32xf32> to vector<8x16xf32>
    %683 = arith.negf %682 : vector<8x16xf32>
    %684 = math.exp %683 : vector<8x16xf32>
    %cst_210 = arith.constant 1.000000e+00 : f32
    %685 = vector.broadcast %cst_210 : f32 to vector<8x16xf32>
    %686 = arith.addf %685, %684 : vector<8x16xf32>
    %687 = arith.divf %685, %686 : vector<8x16xf32>
    %688 = vector.extract_strided_slice %681 {offsets = [0, 16], sizes = [8, 16], strides = [1, 1]} : vector<8x32xf32> to vector<8x16xf32>
    %689 = math.tanh %688 : vector<8x16xf32>
    %cst_211 = arith.constant dense<0.000000e+00> : vector<8x128xf32>
    %690 = tpu.matmul %687, %12, %cst_211 {dimension_numbers = #tpu.dot_dimension_numbers<[1], [0], [0], [1], [0, 0, 1, 1], [], []>} : vector<8x16xf32>, vector<16x128xf32>, vector<8x128xf32> -> vector<8x128xf32>
    %cst_212 = arith.constant dense<0.000000e+00> : vector<8x128xf32>
    %691 = tpu.matmul %689, %12, %cst_212 {dimension_numbers = #tpu.dot_dimension_numbers<[1], [0], [0], [1], [0, 0, 1, 1], [], []>} : vector<8x16xf32>, vector<16x128xf32>, vector<8x128xf32> -> vector<8x128xf32>
    %692 = arith.mulf %654, %690 : vector<8x128xf32>
    %cst_213 = arith.constant 1.000000e+00 : f32
    %693 = vector.broadcast %cst_213 : f32 to vector<8x128xf32>
    %694 = arith.subf %693, %692 : vector<8x128xf32>
    %695 = arith.mulf %635, %694 : vector<8x128xf32>
    %696 = arith.mulf %654, %691 : vector<8x128xf32>
    %697 = arith.addf %695, %696 : vector<8x128xf32>
    %c11_i32 = arith.constant 11 : i32
    %698 = arith.index_cast %c11_i32 : i32 to index
    %c0_214 = arith.constant 0 : index
    %c0_215 = arith.constant 0 : index
    %699 = vector.load %arg1[%698, %c0_214, %c0_215] : memref<16x8x32xf32, #tpu.memory_space<vmem>>, vector<1x8x32xf32>
    %700 = vector.shape_cast %699 : vector<1x8x32xf32> to vector<8x32xf32>
    %cst_216 = arith.constant dense<0.000000e+00> : vector<8x24xf32>
    %701 = tpu.matmul %700, %0, %cst_216 {dimension_numbers = #tpu.dot_dimension_numbers<[1], [0], [0], [1], [0, 0, 1, 1], [], []>} : vector<8x32xf32>, vector<32x24xf32>, vector<8x24xf32> -> vector<8x24xf32>
    %702 = vector.broadcast %1 : vector<1x24xf32> to vector<8x24xf32>
    %703 = arith.addf %701, %702 : vector<8x24xf32>
    %704 = vector.extract_strided_slice %703 {offsets = [0, 0], sizes = [8, 8], strides = [1, 1]} : vector<8x24xf32> to vector<8x8xf32>
    %705 = vector.extract_strided_slice %703 {offsets = [0, 8], sizes = [8, 16], strides = [1, 1]} : vector<8x24xf32> to vector<8x16xf32>
    %cst_217 = arith.constant dense<0.000000e+00> : vector<8x8xf32>
    %706 = tpu.matmul %704, %2, %cst_217 {dimension_numbers = #tpu.dot_dimension_numbers<[1], [0], [0], [1], [0, 0, 1, 1], [], []>} : vector<8x8xf32>, vector<8x8xf32>, vector<8x8xf32> -> vector<8x8xf32>
    %cst_218 = arith.constant dense<0xFF800000> : vector<8xf32>
    %707 = vector.multi_reduction <maximumf>, %706, %cst_218 [1] : vector<8x8xf32> to vector<8xf32>
    %708 = vector.shape_cast %707 : vector<8xf32> to vector<8x1xf32>
    %709 = vector.broadcast %708 : vector<8x1xf32> to vector<8x8xf32>
    %710 = arith.subf %706, %709 : vector<8x8xf32>
    %711 = math.exp %710 : vector<8x8xf32>
    %cst_219 = arith.constant dense<0.000000e+00> : vector<8xf32>
    %712 = vector.multi_reduction <add>, %711, %cst_219 [1] : vector<8x8xf32> to vector<8xf32>
    %713 = vector.shape_cast %712 : vector<8xf32> to vector<8x1xf32>
    %714 = vector.broadcast %713 : vector<8x1xf32> to vector<8x8xf32>
    %715 = arith.divf %711, %714 : vector<8x8xf32>
    %cst_220 = arith.constant dense<0.000000e+00> : vector<8x128xf32>
    %716 = tpu.matmul %715, %10, %cst_220 {dimension_numbers = #tpu.dot_dimension_numbers<[1], [0], [0], [1], [0, 0, 1, 1], [], []>} : vector<8x8xf32>, vector<8x128xf32>, vector<8x128xf32> -> vector<8x128xf32>
    %717 = arith.mulf %716, %697 : vector<8x128xf32>
    %cst_221 = arith.constant dense<0.000000e+00> : vector<8x16xf32>
    %718 = tpu.matmul %717, %11, %cst_221 {dimension_numbers = #tpu.dot_dimension_numbers<[1], [0], [0], [1], [0, 0, 1, 1], [], []>} : vector<8x128xf32>, vector<128x16xf32>, vector<8x16xf32> -> vector<8x16xf32>
    %cst_222 = arith.constant dense<0.000000e+00> : vector<8x16xf32>
    %719 = tpu.matmul %718, %3, %cst_222 {dimension_numbers = #tpu.dot_dimension_numbers<[1], [0], [0], [1], [0, 0, 1, 1], [], []>} : vector<8x16xf32>, vector<16x16xf32>, vector<8x16xf32> -> vector<8x16xf32>
    %cst_223 = arith.constant dense<0.000000e+00> : vector<8x16xf32>
    %720 = tpu.matmul %704, %4, %cst_223 {dimension_numbers = #tpu.dot_dimension_numbers<[1], [0], [0], [1], [0, 0, 1, 1], [], []>} : vector<8x8xf32>, vector<8x16xf32>, vector<8x16xf32> -> vector<8x16xf32>
    %721 = arith.addf %719, %720 : vector<8x16xf32>
    %722 = vector.broadcast %5 : vector<1x16xf32> to vector<8x16xf32>
    %723 = arith.addf %721, %722 : vector<8x16xf32>
    %724 = math.tanh %723 : vector<8x16xf32>
    %725 = vector.broadcast %6 : vector<1x16xf32> to vector<8x16xf32>
    %726 = arith.mulf %724, %725 : vector<8x16xf32>
    %cst_224 = arith.constant dense<0.000000e+00> : vector<8xf32>
    %727 = vector.multi_reduction <add>, %726, %cst_224 [1] : vector<8x16xf32> to vector<8xf32>
    %728 = vector.shape_cast %727 : vector<8xf32> to vector<8x1xf32>
    %729 = vector.broadcast %7 : vector<1x1xf32> to vector<8x1xf32>
    %730 = arith.addf %728, %729 : vector<8x1xf32>
    %731 = arith.negf %730 : vector<8x1xf32>
    %732 = math.exp %731 : vector<8x1xf32>
    %cst_225 = arith.constant 1.000000e+00 : f32
    %733 = vector.broadcast %cst_225 : f32 to vector<8x1xf32>
    %734 = arith.addf %733, %732 : vector<8x1xf32>
    %735 = arith.divf %733, %734 : vector<8x1xf32>
    %736 = vector.broadcast %c11_i32 : i32 to vector<8x128xi32>
    %737 = arith.cmpi eq, %13, %736 : vector<8x128xi32>
    %738 = vector.shape_cast %735 : vector<8x1xf32> to vector<8x1xf32>
    %739 = vector.broadcast %738 : vector<8x1xf32> to vector<8x128xf32>
    %740 = arith.select %737, %739, %678 : vector<8x128xi1>, vector<8x128xf32>
    %cst_226 = arith.constant dense<0.000000e+00> : vector<8x32xf32>
    %741 = tpu.matmul %705, %8, %cst_226 {dimension_numbers = #tpu.dot_dimension_numbers<[1], [0], [0], [1], [0, 0, 1, 1], [], []>} : vector<8x16xf32>, vector<16x32xf32>, vector<8x32xf32> -> vector<8x32xf32>
    %742 = vector.broadcast %9 : vector<1x32xf32> to vector<8x32xf32>
    %743 = arith.addf %741, %742 : vector<8x32xf32>
    %744 = vector.extract_strided_slice %743 {offsets = [0, 0], sizes = [8, 16], strides = [1, 1]} : vector<8x32xf32> to vector<8x16xf32>
    %745 = arith.negf %744 : vector<8x16xf32>
    %746 = math.exp %745 : vector<8x16xf32>
    %cst_227 = arith.constant 1.000000e+00 : f32
    %747 = vector.broadcast %cst_227 : f32 to vector<8x16xf32>
    %748 = arith.addf %747, %746 : vector<8x16xf32>
    %749 = arith.divf %747, %748 : vector<8x16xf32>
    %750 = vector.extract_strided_slice %743 {offsets = [0, 16], sizes = [8, 16], strides = [1, 1]} : vector<8x32xf32> to vector<8x16xf32>
    %751 = math.tanh %750 : vector<8x16xf32>
    %cst_228 = arith.constant dense<0.000000e+00> : vector<8x128xf32>
    %752 = tpu.matmul %749, %12, %cst_228 {dimension_numbers = #tpu.dot_dimension_numbers<[1], [0], [0], [1], [0, 0, 1, 1], [], []>} : vector<8x16xf32>, vector<16x128xf32>, vector<8x128xf32> -> vector<8x128xf32>
    %cst_229 = arith.constant dense<0.000000e+00> : vector<8x128xf32>
    %753 = tpu.matmul %751, %12, %cst_229 {dimension_numbers = #tpu.dot_dimension_numbers<[1], [0], [0], [1], [0, 0, 1, 1], [], []>} : vector<8x16xf32>, vector<16x128xf32>, vector<8x128xf32> -> vector<8x128xf32>
    %754 = arith.mulf %716, %752 : vector<8x128xf32>
    %cst_230 = arith.constant 1.000000e+00 : f32
    %755 = vector.broadcast %cst_230 : f32 to vector<8x128xf32>
    %756 = arith.subf %755, %754 : vector<8x128xf32>
    %757 = arith.mulf %697, %756 : vector<8x128xf32>
    %758 = arith.mulf %716, %753 : vector<8x128xf32>
    %759 = arith.addf %757, %758 : vector<8x128xf32>
    %c12_i32 = arith.constant 12 : i32
    %760 = arith.index_cast %c12_i32 : i32 to index
    %c0_231 = arith.constant 0 : index
    %c0_232 = arith.constant 0 : index
    %761 = vector.load %arg1[%760, %c0_231, %c0_232] : memref<16x8x32xf32, #tpu.memory_space<vmem>>, vector<1x8x32xf32>
    %762 = vector.shape_cast %761 : vector<1x8x32xf32> to vector<8x32xf32>
    %cst_233 = arith.constant dense<0.000000e+00> : vector<8x24xf32>
    %763 = tpu.matmul %762, %0, %cst_233 {dimension_numbers = #tpu.dot_dimension_numbers<[1], [0], [0], [1], [0, 0, 1, 1], [], []>} : vector<8x32xf32>, vector<32x24xf32>, vector<8x24xf32> -> vector<8x24xf32>
    %764 = vector.broadcast %1 : vector<1x24xf32> to vector<8x24xf32>
    %765 = arith.addf %763, %764 : vector<8x24xf32>
    %766 = vector.extract_strided_slice %765 {offsets = [0, 0], sizes = [8, 8], strides = [1, 1]} : vector<8x24xf32> to vector<8x8xf32>
    %767 = vector.extract_strided_slice %765 {offsets = [0, 8], sizes = [8, 16], strides = [1, 1]} : vector<8x24xf32> to vector<8x16xf32>
    %cst_234 = arith.constant dense<0.000000e+00> : vector<8x8xf32>
    %768 = tpu.matmul %766, %2, %cst_234 {dimension_numbers = #tpu.dot_dimension_numbers<[1], [0], [0], [1], [0, 0, 1, 1], [], []>} : vector<8x8xf32>, vector<8x8xf32>, vector<8x8xf32> -> vector<8x8xf32>
    %cst_235 = arith.constant dense<0xFF800000> : vector<8xf32>
    %769 = vector.multi_reduction <maximumf>, %768, %cst_235 [1] : vector<8x8xf32> to vector<8xf32>
    %770 = vector.shape_cast %769 : vector<8xf32> to vector<8x1xf32>
    %771 = vector.broadcast %770 : vector<8x1xf32> to vector<8x8xf32>
    %772 = arith.subf %768, %771 : vector<8x8xf32>
    %773 = math.exp %772 : vector<8x8xf32>
    %cst_236 = arith.constant dense<0.000000e+00> : vector<8xf32>
    %774 = vector.multi_reduction <add>, %773, %cst_236 [1] : vector<8x8xf32> to vector<8xf32>
    %775 = vector.shape_cast %774 : vector<8xf32> to vector<8x1xf32>
    %776 = vector.broadcast %775 : vector<8x1xf32> to vector<8x8xf32>
    %777 = arith.divf %773, %776 : vector<8x8xf32>
    %cst_237 = arith.constant dense<0.000000e+00> : vector<8x128xf32>
    %778 = tpu.matmul %777, %10, %cst_237 {dimension_numbers = #tpu.dot_dimension_numbers<[1], [0], [0], [1], [0, 0, 1, 1], [], []>} : vector<8x8xf32>, vector<8x128xf32>, vector<8x128xf32> -> vector<8x128xf32>
    %779 = arith.mulf %778, %759 : vector<8x128xf32>
    %cst_238 = arith.constant dense<0.000000e+00> : vector<8x16xf32>
    %780 = tpu.matmul %779, %11, %cst_238 {dimension_numbers = #tpu.dot_dimension_numbers<[1], [0], [0], [1], [0, 0, 1, 1], [], []>} : vector<8x128xf32>, vector<128x16xf32>, vector<8x16xf32> -> vector<8x16xf32>
    %cst_239 = arith.constant dense<0.000000e+00> : vector<8x16xf32>
    %781 = tpu.matmul %780, %3, %cst_239 {dimension_numbers = #tpu.dot_dimension_numbers<[1], [0], [0], [1], [0, 0, 1, 1], [], []>} : vector<8x16xf32>, vector<16x16xf32>, vector<8x16xf32> -> vector<8x16xf32>
    %cst_240 = arith.constant dense<0.000000e+00> : vector<8x16xf32>
    %782 = tpu.matmul %766, %4, %cst_240 {dimension_numbers = #tpu.dot_dimension_numbers<[1], [0], [0], [1], [0, 0, 1, 1], [], []>} : vector<8x8xf32>, vector<8x16xf32>, vector<8x16xf32> -> vector<8x16xf32>
    %783 = arith.addf %781, %782 : vector<8x16xf32>
    %784 = vector.broadcast %5 : vector<1x16xf32> to vector<8x16xf32>
    %785 = arith.addf %783, %784 : vector<8x16xf32>
    %786 = math.tanh %785 : vector<8x16xf32>
    %787 = vector.broadcast %6 : vector<1x16xf32> to vector<8x16xf32>
    %788 = arith.mulf %786, %787 : vector<8x16xf32>
    %cst_241 = arith.constant dense<0.000000e+00> : vector<8xf32>
    %789 = vector.multi_reduction <add>, %788, %cst_241 [1] : vector<8x16xf32> to vector<8xf32>
    %790 = vector.shape_cast %789 : vector<8xf32> to vector<8x1xf32>
    %791 = vector.broadcast %7 : vector<1x1xf32> to vector<8x1xf32>
    %792 = arith.addf %790, %791 : vector<8x1xf32>
    %793 = arith.negf %792 : vector<8x1xf32>
    %794 = math.exp %793 : vector<8x1xf32>
    %cst_242 = arith.constant 1.000000e+00 : f32
    %795 = vector.broadcast %cst_242 : f32 to vector<8x1xf32>
    %796 = arith.addf %795, %794 : vector<8x1xf32>
    %797 = arith.divf %795, %796 : vector<8x1xf32>
    %798 = vector.broadcast %c12_i32 : i32 to vector<8x128xi32>
    %799 = arith.cmpi eq, %13, %798 : vector<8x128xi32>
    %800 = vector.shape_cast %797 : vector<8x1xf32> to vector<8x1xf32>
    %801 = vector.broadcast %800 : vector<8x1xf32> to vector<8x128xf32>
    %802 = arith.select %799, %801, %740 : vector<8x128xi1>, vector<8x128xf32>
    %cst_243 = arith.constant dense<0.000000e+00> : vector<8x32xf32>
    %803 = tpu.matmul %767, %8, %cst_243 {dimension_numbers = #tpu.dot_dimension_numbers<[1], [0], [0], [1], [0, 0, 1, 1], [], []>} : vector<8x16xf32>, vector<16x32xf32>, vector<8x32xf32> -> vector<8x32xf32>
    %804 = vector.broadcast %9 : vector<1x32xf32> to vector<8x32xf32>
    %805 = arith.addf %803, %804 : vector<8x32xf32>
    %806 = vector.extract_strided_slice %805 {offsets = [0, 0], sizes = [8, 16], strides = [1, 1]} : vector<8x32xf32> to vector<8x16xf32>
    %807 = arith.negf %806 : vector<8x16xf32>
    %808 = math.exp %807 : vector<8x16xf32>
    %cst_244 = arith.constant 1.000000e+00 : f32
    %809 = vector.broadcast %cst_244 : f32 to vector<8x16xf32>
    %810 = arith.addf %809, %808 : vector<8x16xf32>
    %811 = arith.divf %809, %810 : vector<8x16xf32>
    %812 = vector.extract_strided_slice %805 {offsets = [0, 16], sizes = [8, 16], strides = [1, 1]} : vector<8x32xf32> to vector<8x16xf32>
    %813 = math.tanh %812 : vector<8x16xf32>
    %cst_245 = arith.constant dense<0.000000e+00> : vector<8x128xf32>
    %814 = tpu.matmul %811, %12, %cst_245 {dimension_numbers = #tpu.dot_dimension_numbers<[1], [0], [0], [1], [0, 0, 1, 1], [], []>} : vector<8x16xf32>, vector<16x128xf32>, vector<8x128xf32> -> vector<8x128xf32>
    %cst_246 = arith.constant dense<0.000000e+00> : vector<8x128xf32>
    %815 = tpu.matmul %813, %12, %cst_246 {dimension_numbers = #tpu.dot_dimension_numbers<[1], [0], [0], [1], [0, 0, 1, 1], [], []>} : vector<8x16xf32>, vector<16x128xf32>, vector<8x128xf32> -> vector<8x128xf32>
    %816 = arith.mulf %778, %814 : vector<8x128xf32>
    %cst_247 = arith.constant 1.000000e+00 : f32
    %817 = vector.broadcast %cst_247 : f32 to vector<8x128xf32>
    %818 = arith.subf %817, %816 : vector<8x128xf32>
    %819 = arith.mulf %759, %818 : vector<8x128xf32>
    %820 = arith.mulf %778, %815 : vector<8x128xf32>
    %821 = arith.addf %819, %820 : vector<8x128xf32>
    %c13_i32 = arith.constant 13 : i32
    %822 = arith.index_cast %c13_i32 : i32 to index
    %c0_248 = arith.constant 0 : index
    %c0_249 = arith.constant 0 : index
    %823 = vector.load %arg1[%822, %c0_248, %c0_249] : memref<16x8x32xf32, #tpu.memory_space<vmem>>, vector<1x8x32xf32>
    %824 = vector.shape_cast %823 : vector<1x8x32xf32> to vector<8x32xf32>
    %cst_250 = arith.constant dense<0.000000e+00> : vector<8x24xf32>
    %825 = tpu.matmul %824, %0, %cst_250 {dimension_numbers = #tpu.dot_dimension_numbers<[1], [0], [0], [1], [0, 0, 1, 1], [], []>} : vector<8x32xf32>, vector<32x24xf32>, vector<8x24xf32> -> vector<8x24xf32>
    %826 = vector.broadcast %1 : vector<1x24xf32> to vector<8x24xf32>
    %827 = arith.addf %825, %826 : vector<8x24xf32>
    %828 = vector.extract_strided_slice %827 {offsets = [0, 0], sizes = [8, 8], strides = [1, 1]} : vector<8x24xf32> to vector<8x8xf32>
    %829 = vector.extract_strided_slice %827 {offsets = [0, 8], sizes = [8, 16], strides = [1, 1]} : vector<8x24xf32> to vector<8x16xf32>
    %cst_251 = arith.constant dense<0.000000e+00> : vector<8x8xf32>
    %830 = tpu.matmul %828, %2, %cst_251 {dimension_numbers = #tpu.dot_dimension_numbers<[1], [0], [0], [1], [0, 0, 1, 1], [], []>} : vector<8x8xf32>, vector<8x8xf32>, vector<8x8xf32> -> vector<8x8xf32>
    %cst_252 = arith.constant dense<0xFF800000> : vector<8xf32>
    %831 = vector.multi_reduction <maximumf>, %830, %cst_252 [1] : vector<8x8xf32> to vector<8xf32>
    %832 = vector.shape_cast %831 : vector<8xf32> to vector<8x1xf32>
    %833 = vector.broadcast %832 : vector<8x1xf32> to vector<8x8xf32>
    %834 = arith.subf %830, %833 : vector<8x8xf32>
    %835 = math.exp %834 : vector<8x8xf32>
    %cst_253 = arith.constant dense<0.000000e+00> : vector<8xf32>
    %836 = vector.multi_reduction <add>, %835, %cst_253 [1] : vector<8x8xf32> to vector<8xf32>
    %837 = vector.shape_cast %836 : vector<8xf32> to vector<8x1xf32>
    %838 = vector.broadcast %837 : vector<8x1xf32> to vector<8x8xf32>
    %839 = arith.divf %835, %838 : vector<8x8xf32>
    %cst_254 = arith.constant dense<0.000000e+00> : vector<8x128xf32>
    %840 = tpu.matmul %839, %10, %cst_254 {dimension_numbers = #tpu.dot_dimension_numbers<[1], [0], [0], [1], [0, 0, 1, 1], [], []>} : vector<8x8xf32>, vector<8x128xf32>, vector<8x128xf32> -> vector<8x128xf32>
    %841 = arith.mulf %840, %821 : vector<8x128xf32>
    %cst_255 = arith.constant dense<0.000000e+00> : vector<8x16xf32>
    %842 = tpu.matmul %841, %11, %cst_255 {dimension_numbers = #tpu.dot_dimension_numbers<[1], [0], [0], [1], [0, 0, 1, 1], [], []>} : vector<8x128xf32>, vector<128x16xf32>, vector<8x16xf32> -> vector<8x16xf32>
    %cst_256 = arith.constant dense<0.000000e+00> : vector<8x16xf32>
    %843 = tpu.matmul %842, %3, %cst_256 {dimension_numbers = #tpu.dot_dimension_numbers<[1], [0], [0], [1], [0, 0, 1, 1], [], []>} : vector<8x16xf32>, vector<16x16xf32>, vector<8x16xf32> -> vector<8x16xf32>
    %cst_257 = arith.constant dense<0.000000e+00> : vector<8x16xf32>
    %844 = tpu.matmul %828, %4, %cst_257 {dimension_numbers = #tpu.dot_dimension_numbers<[1], [0], [0], [1], [0, 0, 1, 1], [], []>} : vector<8x8xf32>, vector<8x16xf32>, vector<8x16xf32> -> vector<8x16xf32>
    %845 = arith.addf %843, %844 : vector<8x16xf32>
    %846 = vector.broadcast %5 : vector<1x16xf32> to vector<8x16xf32>
    %847 = arith.addf %845, %846 : vector<8x16xf32>
    %848 = math.tanh %847 : vector<8x16xf32>
    %849 = vector.broadcast %6 : vector<1x16xf32> to vector<8x16xf32>
    %850 = arith.mulf %848, %849 : vector<8x16xf32>
    %cst_258 = arith.constant dense<0.000000e+00> : vector<8xf32>
    %851 = vector.multi_reduction <add>, %850, %cst_258 [1] : vector<8x16xf32> to vector<8xf32>
    %852 = vector.shape_cast %851 : vector<8xf32> to vector<8x1xf32>
    %853 = vector.broadcast %7 : vector<1x1xf32> to vector<8x1xf32>
    %854 = arith.addf %852, %853 : vector<8x1xf32>
    %855 = arith.negf %854 : vector<8x1xf32>
    %856 = math.exp %855 : vector<8x1xf32>
    %cst_259 = arith.constant 1.000000e+00 : f32
    %857 = vector.broadcast %cst_259 : f32 to vector<8x1xf32>
    %858 = arith.addf %857, %856 : vector<8x1xf32>
    %859 = arith.divf %857, %858 : vector<8x1xf32>
    %860 = vector.broadcast %c13_i32 : i32 to vector<8x128xi32>
    %861 = arith.cmpi eq, %13, %860 : vector<8x128xi32>
    %862 = vector.shape_cast %859 : vector<8x1xf32> to vector<8x1xf32>
    %863 = vector.broadcast %862 : vector<8x1xf32> to vector<8x128xf32>
    %864 = arith.select %861, %863, %802 : vector<8x128xi1>, vector<8x128xf32>
    %cst_260 = arith.constant dense<0.000000e+00> : vector<8x32xf32>
    %865 = tpu.matmul %829, %8, %cst_260 {dimension_numbers = #tpu.dot_dimension_numbers<[1], [0], [0], [1], [0, 0, 1, 1], [], []>} : vector<8x16xf32>, vector<16x32xf32>, vector<8x32xf32> -> vector<8x32xf32>
    %866 = vector.broadcast %9 : vector<1x32xf32> to vector<8x32xf32>
    %867 = arith.addf %865, %866 : vector<8x32xf32>
    %868 = vector.extract_strided_slice %867 {offsets = [0, 0], sizes = [8, 16], strides = [1, 1]} : vector<8x32xf32> to vector<8x16xf32>
    %869 = arith.negf %868 : vector<8x16xf32>
    %870 = math.exp %869 : vector<8x16xf32>
    %cst_261 = arith.constant 1.000000e+00 : f32
    %871 = vector.broadcast %cst_261 : f32 to vector<8x16xf32>
    %872 = arith.addf %871, %870 : vector<8x16xf32>
    %873 = arith.divf %871, %872 : vector<8x16xf32>
    %874 = vector.extract_strided_slice %867 {offsets = [0, 16], sizes = [8, 16], strides = [1, 1]} : vector<8x32xf32> to vector<8x16xf32>
    %875 = math.tanh %874 : vector<8x16xf32>
    %cst_262 = arith.constant dense<0.000000e+00> : vector<8x128xf32>
    %876 = tpu.matmul %873, %12, %cst_262 {dimension_numbers = #tpu.dot_dimension_numbers<[1], [0], [0], [1], [0, 0, 1, 1], [], []>} : vector<8x16xf32>, vector<16x128xf32>, vector<8x128xf32> -> vector<8x128xf32>
    %cst_263 = arith.constant dense<0.000000e+00> : vector<8x128xf32>
    %877 = tpu.matmul %875, %12, %cst_263 {dimension_numbers = #tpu.dot_dimension_numbers<[1], [0], [0], [1], [0, 0, 1, 1], [], []>} : vector<8x16xf32>, vector<16x128xf32>, vector<8x128xf32> -> vector<8x128xf32>
    %878 = arith.mulf %840, %876 : vector<8x128xf32>
    %cst_264 = arith.constant 1.000000e+00 : f32
    %879 = vector.broadcast %cst_264 : f32 to vector<8x128xf32>
    %880 = arith.subf %879, %878 : vector<8x128xf32>
    %881 = arith.mulf %821, %880 : vector<8x128xf32>
    %882 = arith.mulf %840, %877 : vector<8x128xf32>
    %883 = arith.addf %881, %882 : vector<8x128xf32>
    %c14_i32 = arith.constant 14 : i32
    %884 = arith.index_cast %c14_i32 : i32 to index
    %c0_265 = arith.constant 0 : index
    %c0_266 = arith.constant 0 : index
    %885 = vector.load %arg1[%884, %c0_265, %c0_266] : memref<16x8x32xf32, #tpu.memory_space<vmem>>, vector<1x8x32xf32>
    %886 = vector.shape_cast %885 : vector<1x8x32xf32> to vector<8x32xf32>
    %cst_267 = arith.constant dense<0.000000e+00> : vector<8x24xf32>
    %887 = tpu.matmul %886, %0, %cst_267 {dimension_numbers = #tpu.dot_dimension_numbers<[1], [0], [0], [1], [0, 0, 1, 1], [], []>} : vector<8x32xf32>, vector<32x24xf32>, vector<8x24xf32> -> vector<8x24xf32>
    %888 = vector.broadcast %1 : vector<1x24xf32> to vector<8x24xf32>
    %889 = arith.addf %887, %888 : vector<8x24xf32>
    %890 = vector.extract_strided_slice %889 {offsets = [0, 0], sizes = [8, 8], strides = [1, 1]} : vector<8x24xf32> to vector<8x8xf32>
    %891 = vector.extract_strided_slice %889 {offsets = [0, 8], sizes = [8, 16], strides = [1, 1]} : vector<8x24xf32> to vector<8x16xf32>
    %cst_268 = arith.constant dense<0.000000e+00> : vector<8x8xf32>
    %892 = tpu.matmul %890, %2, %cst_268 {dimension_numbers = #tpu.dot_dimension_numbers<[1], [0], [0], [1], [0, 0, 1, 1], [], []>} : vector<8x8xf32>, vector<8x8xf32>, vector<8x8xf32> -> vector<8x8xf32>
    %cst_269 = arith.constant dense<0xFF800000> : vector<8xf32>
    %893 = vector.multi_reduction <maximumf>, %892, %cst_269 [1] : vector<8x8xf32> to vector<8xf32>
    %894 = vector.shape_cast %893 : vector<8xf32> to vector<8x1xf32>
    %895 = vector.broadcast %894 : vector<8x1xf32> to vector<8x8xf32>
    %896 = arith.subf %892, %895 : vector<8x8xf32>
    %897 = math.exp %896 : vector<8x8xf32>
    %cst_270 = arith.constant dense<0.000000e+00> : vector<8xf32>
    %898 = vector.multi_reduction <add>, %897, %cst_270 [1] : vector<8x8xf32> to vector<8xf32>
    %899 = vector.shape_cast %898 : vector<8xf32> to vector<8x1xf32>
    %900 = vector.broadcast %899 : vector<8x1xf32> to vector<8x8xf32>
    %901 = arith.divf %897, %900 : vector<8x8xf32>
    %cst_271 = arith.constant dense<0.000000e+00> : vector<8x128xf32>
    %902 = tpu.matmul %901, %10, %cst_271 {dimension_numbers = #tpu.dot_dimension_numbers<[1], [0], [0], [1], [0, 0, 1, 1], [], []>} : vector<8x8xf32>, vector<8x128xf32>, vector<8x128xf32> -> vector<8x128xf32>
    %903 = arith.mulf %902, %883 : vector<8x128xf32>
    %cst_272 = arith.constant dense<0.000000e+00> : vector<8x16xf32>
    %904 = tpu.matmul %903, %11, %cst_272 {dimension_numbers = #tpu.dot_dimension_numbers<[1], [0], [0], [1], [0, 0, 1, 1], [], []>} : vector<8x128xf32>, vector<128x16xf32>, vector<8x16xf32> -> vector<8x16xf32>
    %cst_273 = arith.constant dense<0.000000e+00> : vector<8x16xf32>
    %905 = tpu.matmul %904, %3, %cst_273 {dimension_numbers = #tpu.dot_dimension_numbers<[1], [0], [0], [1], [0, 0, 1, 1], [], []>} : vector<8x16xf32>, vector<16x16xf32>, vector<8x16xf32> -> vector<8x16xf32>
    %cst_274 = arith.constant dense<0.000000e+00> : vector<8x16xf32>
    %906 = tpu.matmul %890, %4, %cst_274 {dimension_numbers = #tpu.dot_dimension_numbers<[1], [0], [0], [1], [0, 0, 1, 1], [], []>} : vector<8x8xf32>, vector<8x16xf32>, vector<8x16xf32> -> vector<8x16xf32>
    %907 = arith.addf %905, %906 : vector<8x16xf32>
    %908 = vector.broadcast %5 : vector<1x16xf32> to vector<8x16xf32>
    %909 = arith.addf %907, %908 : vector<8x16xf32>
    %910 = math.tanh %909 : vector<8x16xf32>
    %911 = vector.broadcast %6 : vector<1x16xf32> to vector<8x16xf32>
    %912 = arith.mulf %910, %911 : vector<8x16xf32>
    %cst_275 = arith.constant dense<0.000000e+00> : vector<8xf32>
    %913 = vector.multi_reduction <add>, %912, %cst_275 [1] : vector<8x16xf32> to vector<8xf32>
    %914 = vector.shape_cast %913 : vector<8xf32> to vector<8x1xf32>
    %915 = vector.broadcast %7 : vector<1x1xf32> to vector<8x1xf32>
    %916 = arith.addf %914, %915 : vector<8x1xf32>
    %917 = arith.negf %916 : vector<8x1xf32>
    %918 = math.exp %917 : vector<8x1xf32>
    %cst_276 = arith.constant 1.000000e+00 : f32
    %919 = vector.broadcast %cst_276 : f32 to vector<8x1xf32>
    %920 = arith.addf %919, %918 : vector<8x1xf32>
    %921 = arith.divf %919, %920 : vector<8x1xf32>
    %922 = vector.broadcast %c14_i32 : i32 to vector<8x128xi32>
    %923 = arith.cmpi eq, %13, %922 : vector<8x128xi32>
    %924 = vector.shape_cast %921 : vector<8x1xf32> to vector<8x1xf32>
    %925 = vector.broadcast %924 : vector<8x1xf32> to vector<8x128xf32>
    %926 = arith.select %923, %925, %864 : vector<8x128xi1>, vector<8x128xf32>
    %cst_277 = arith.constant dense<0.000000e+00> : vector<8x32xf32>
    %927 = tpu.matmul %891, %8, %cst_277 {dimension_numbers = #tpu.dot_dimension_numbers<[1], [0], [0], [1], [0, 0, 1, 1], [], []>} : vector<8x16xf32>, vector<16x32xf32>, vector<8x32xf32> -> vector<8x32xf32>
    %928 = vector.broadcast %9 : vector<1x32xf32> to vector<8x32xf32>
    %929 = arith.addf %927, %928 : vector<8x32xf32>
    %930 = vector.extract_strided_slice %929 {offsets = [0, 0], sizes = [8, 16], strides = [1, 1]} : vector<8x32xf32> to vector<8x16xf32>
    %931 = arith.negf %930 : vector<8x16xf32>
    %932 = math.exp %931 : vector<8x16xf32>
    %cst_278 = arith.constant 1.000000e+00 : f32
    %933 = vector.broadcast %cst_278 : f32 to vector<8x16xf32>
    %934 = arith.addf %933, %932 : vector<8x16xf32>
    %935 = arith.divf %933, %934 : vector<8x16xf32>
    %936 = vector.extract_strided_slice %929 {offsets = [0, 16], sizes = [8, 16], strides = [1, 1]} : vector<8x32xf32> to vector<8x16xf32>
    %937 = math.tanh %936 : vector<8x16xf32>
    %cst_279 = arith.constant dense<0.000000e+00> : vector<8x128xf32>
    %938 = tpu.matmul %935, %12, %cst_279 {dimension_numbers = #tpu.dot_dimension_numbers<[1], [0], [0], [1], [0, 0, 1, 1], [], []>} : vector<8x16xf32>, vector<16x128xf32>, vector<8x128xf32> -> vector<8x128xf32>
    %cst_280 = arith.constant dense<0.000000e+00> : vector<8x128xf32>
    %939 = tpu.matmul %937, %12, %cst_280 {dimension_numbers = #tpu.dot_dimension_numbers<[1], [0], [0], [1], [0, 0, 1, 1], [], []>} : vector<8x16xf32>, vector<16x128xf32>, vector<8x128xf32> -> vector<8x128xf32>
    %940 = arith.mulf %902, %938 : vector<8x128xf32>
    %cst_281 = arith.constant 1.000000e+00 : f32
    %941 = vector.broadcast %cst_281 : f32 to vector<8x128xf32>
    %942 = arith.subf %941, %940 : vector<8x128xf32>
    %943 = arith.mulf %883, %942 : vector<8x128xf32>
    %944 = arith.mulf %902, %939 : vector<8x128xf32>
    %945 = arith.addf %943, %944 : vector<8x128xf32>
    %c15_i32 = arith.constant 15 : i32
    %946 = arith.index_cast %c15_i32 : i32 to index
    %c0_282 = arith.constant 0 : index
    %c0_283 = arith.constant 0 : index
    %947 = vector.load %arg1[%946, %c0_282, %c0_283] : memref<16x8x32xf32, #tpu.memory_space<vmem>>, vector<1x8x32xf32>
    %948 = vector.shape_cast %947 : vector<1x8x32xf32> to vector<8x32xf32>
    %cst_284 = arith.constant dense<0.000000e+00> : vector<8x24xf32>
    %949 = tpu.matmul %948, %0, %cst_284 {dimension_numbers = #tpu.dot_dimension_numbers<[1], [0], [0], [1], [0, 0, 1, 1], [], []>} : vector<8x32xf32>, vector<32x24xf32>, vector<8x24xf32> -> vector<8x24xf32>
    %950 = vector.broadcast %1 : vector<1x24xf32> to vector<8x24xf32>
    %951 = arith.addf %949, %950 : vector<8x24xf32>
    %952 = vector.extract_strided_slice %951 {offsets = [0, 0], sizes = [8, 8], strides = [1, 1]} : vector<8x24xf32> to vector<8x8xf32>
    %953 = vector.extract_strided_slice %951 {offsets = [0, 8], sizes = [8, 16], strides = [1, 1]} : vector<8x24xf32> to vector<8x16xf32>
    %cst_285 = arith.constant dense<0.000000e+00> : vector<8x8xf32>
    %954 = tpu.matmul %952, %2, %cst_285 {dimension_numbers = #tpu.dot_dimension_numbers<[1], [0], [0], [1], [0, 0, 1, 1], [], []>} : vector<8x8xf32>, vector<8x8xf32>, vector<8x8xf32> -> vector<8x8xf32>
    %cst_286 = arith.constant dense<0xFF800000> : vector<8xf32>
    %955 = vector.multi_reduction <maximumf>, %954, %cst_286 [1] : vector<8x8xf32> to vector<8xf32>
    %956 = vector.shape_cast %955 : vector<8xf32> to vector<8x1xf32>
    %957 = vector.broadcast %956 : vector<8x1xf32> to vector<8x8xf32>
    %958 = arith.subf %954, %957 : vector<8x8xf32>
    %959 = math.exp %958 : vector<8x8xf32>
    %cst_287 = arith.constant dense<0.000000e+00> : vector<8xf32>
    %960 = vector.multi_reduction <add>, %959, %cst_287 [1] : vector<8x8xf32> to vector<8xf32>
    %961 = vector.shape_cast %960 : vector<8xf32> to vector<8x1xf32>
    %962 = vector.broadcast %961 : vector<8x1xf32> to vector<8x8xf32>
    %963 = arith.divf %959, %962 : vector<8x8xf32>
    %cst_288 = arith.constant dense<0.000000e+00> : vector<8x128xf32>
    %964 = tpu.matmul %963, %10, %cst_288 {dimension_numbers = #tpu.dot_dimension_numbers<[1], [0], [0], [1], [0, 0, 1, 1], [], []>} : vector<8x8xf32>, vector<8x128xf32>, vector<8x128xf32> -> vector<8x128xf32>
    %965 = arith.mulf %964, %945 : vector<8x128xf32>
    %cst_289 = arith.constant dense<0.000000e+00> : vector<8x16xf32>
    %966 = tpu.matmul %965, %11, %cst_289 {dimension_numbers = #tpu.dot_dimension_numbers<[1], [0], [0], [1], [0, 0, 1, 1], [], []>} : vector<8x128xf32>, vector<128x16xf32>, vector<8x16xf32> -> vector<8x16xf32>
    %cst_290 = arith.constant dense<0.000000e+00> : vector<8x16xf32>
    %967 = tpu.matmul %966, %3, %cst_290 {dimension_numbers = #tpu.dot_dimension_numbers<[1], [0], [0], [1], [0, 0, 1, 1], [], []>} : vector<8x16xf32>, vector<16x16xf32>, vector<8x16xf32> -> vector<8x16xf32>
    %cst_291 = arith.constant dense<0.000000e+00> : vector<8x16xf32>
    %968 = tpu.matmul %952, %4, %cst_291 {dimension_numbers = #tpu.dot_dimension_numbers<[1], [0], [0], [1], [0, 0, 1, 1], [], []>} : vector<8x8xf32>, vector<8x16xf32>, vector<8x16xf32> -> vector<8x16xf32>
    %969 = arith.addf %967, %968 : vector<8x16xf32>
    %970 = vector.broadcast %5 : vector<1x16xf32> to vector<8x16xf32>
    %971 = arith.addf %969, %970 : vector<8x16xf32>
    %972 = math.tanh %971 : vector<8x16xf32>
    %973 = vector.broadcast %6 : vector<1x16xf32> to vector<8x16xf32>
    %974 = arith.mulf %972, %973 : vector<8x16xf32>
    %cst_292 = arith.constant dense<0.000000e+00> : vector<8xf32>
    %975 = vector.multi_reduction <add>, %974, %cst_292 [1] : vector<8x16xf32> to vector<8xf32>
    %976 = vector.shape_cast %975 : vector<8xf32> to vector<8x1xf32>
    %977 = vector.broadcast %7 : vector<1x1xf32> to vector<8x1xf32>
    %978 = arith.addf %976, %977 : vector<8x1xf32>
    %979 = arith.negf %978 : vector<8x1xf32>
    %980 = math.exp %979 : vector<8x1xf32>
    %cst_293 = arith.constant 1.000000e+00 : f32
    %981 = vector.broadcast %cst_293 : f32 to vector<8x1xf32>
    %982 = arith.addf %981, %980 : vector<8x1xf32>
    %983 = arith.divf %981, %982 : vector<8x1xf32>
    %984 = vector.broadcast %c15_i32 : i32 to vector<8x128xi32>
    %985 = arith.cmpi eq, %13, %984 : vector<8x128xi32>
    %986 = vector.shape_cast %983 : vector<8x1xf32> to vector<8x1xf32>
    %987 = vector.broadcast %986 : vector<8x1xf32> to vector<8x128xf32>
    %988 = arith.select %985, %987, %926 : vector<8x128xi1>, vector<8x128xf32>
    %cst_294 = arith.constant dense<0.000000e+00> : vector<8x32xf32>
    %989 = tpu.matmul %953, %8, %cst_294 {dimension_numbers = #tpu.dot_dimension_numbers<[1], [0], [0], [1], [0, 0, 1, 1], [], []>} : vector<8x16xf32>, vector<16x32xf32>, vector<8x32xf32> -> vector<8x32xf32>
    %990 = vector.broadcast %9 : vector<1x32xf32> to vector<8x32xf32>
    %991 = arith.addf %989, %990 : vector<8x32xf32>
    %992 = vector.extract_strided_slice %991 {offsets = [0, 0], sizes = [8, 16], strides = [1, 1]} : vector<8x32xf32> to vector<8x16xf32>
    %993 = arith.negf %992 : vector<8x16xf32>
    %994 = math.exp %993 : vector<8x16xf32>
    %cst_295 = arith.constant 1.000000e+00 : f32
    %995 = vector.broadcast %cst_295 : f32 to vector<8x16xf32>
    %996 = arith.addf %995, %994 : vector<8x16xf32>
    %997 = arith.divf %995, %996 : vector<8x16xf32>
    %998 = vector.extract_strided_slice %991 {offsets = [0, 16], sizes = [8, 16], strides = [1, 1]} : vector<8x32xf32> to vector<8x16xf32>
    %999 = math.tanh %998 : vector<8x16xf32>
    %cst_296 = arith.constant dense<0.000000e+00> : vector<8x128xf32>
    %1000 = tpu.matmul %997, %12, %cst_296 {dimension_numbers = #tpu.dot_dimension_numbers<[1], [0], [0], [1], [0, 0, 1, 1], [], []>} : vector<8x16xf32>, vector<16x128xf32>, vector<8x128xf32> -> vector<8x128xf32>
    %cst_297 = arith.constant dense<0.000000e+00> : vector<8x128xf32>
    %1001 = tpu.matmul %999, %12, %cst_297 {dimension_numbers = #tpu.dot_dimension_numbers<[1], [0], [0], [1], [0, 0, 1, 1], [], []>} : vector<8x16xf32>, vector<16x128xf32>, vector<8x128xf32> -> vector<8x128xf32>
    %1002 = arith.mulf %964, %1000 : vector<8x128xf32>
    %cst_298 = arith.constant 1.000000e+00 : f32
    %1003 = vector.broadcast %cst_298 : f32 to vector<8x128xf32>
    %1004 = arith.subf %1003, %1002 : vector<8x128xf32>
    %1005 = arith.mulf %945, %1004 : vector<8x128xf32>
    %1006 = arith.mulf %964, %1001 : vector<8x128xf32>
    %1007 = arith.addf %1005, %1006 : vector<8x128xf32>
    %c16_i32 = arith.constant 16 : i32
    %c0_299 = arith.constant 0 : index
    %c0_300 = arith.constant 0 : index
    %1008 = vector.load %arg16[%c0_299, %c0_300] : memref<8x128xf32, #tpu.memory_space<vmem>>, vector<8x128xf32>
    tpu.vector_store %arg16[%c0_299, %c0_300], %988 {strides = array<i32>} : memref<8x128xf32, #tpu.memory_space<vmem>>, vector<8x128xf32>,
    %c0_301 = arith.constant 0 : index
    %c0_302 = arith.constant 0 : index
    %1009 = vector.load %arg17[%c0_301, %c0_302] : memref<8x128xf32, #tpu.memory_space<vmem>>, vector<8x128xf32>
    tpu.vector_store %arg17[%c0_301, %c0_302], %1007 {strides = array<i32>} : memref<8x128xf32, #tpu.memory_space<vmem>>, vector<8x128xf32>,
    return
  }
  func.func @transform_0(%arg0: i32) -> (i32, i32, i32) {
    %c0_i32 = arith.constant 0 : i32
    %c0_i32_0 = arith.constant 0 : i32
    %c0_i32_1 = arith.constant 0 : i32
    return %c0_i32, %arg0, %c0_i32_0 : i32, i32, i32
  }
  func.func @transform_1(%arg0: i32) -> (i32, i32) {
    %c0_i32 = arith.constant 0 : i32
    %c0_i32_0 = arith.constant 0 : i32
    return %arg0, %c0_i32 : i32, i32
  }
  func.func @transform_2(%arg0: i32) -> (i32, i32) {
    %c0_i32 = arith.constant 0 : i32
    %c0_i32_0 = arith.constant 0 : i32
    %c0_i32_1 = arith.constant 0 : i32
    return %c0_i32, %c0_i32_0 : i32, i32
  }
  func.func @transform_3(%arg0: i32) -> (i32, i32) {
    %c0_i32 = arith.constant 0 : i32
    %c0_i32_0 = arith.constant 0 : i32
    %c0_i32_1 = arith.constant 0 : i32
    return %c0_i32, %c0_i32_0 : i32, i32
  }
  func.func @transform_4(%arg0: i32) -> (i32, i32) {
    %c0_i32 = arith.constant 0 : i32
    %c0_i32_0 = arith.constant 0 : i32
    %c0_i32_1 = arith.constant 0 : i32
    return %c0_i32, %c0_i32_0 : i32, i32
  }
  func.func @transform_5(%arg0: i32) -> (i32, i32) {
    %c0_i32 = arith.constant 0 : i32
    %c0_i32_0 = arith.constant 0 : i32
    %c0_i32_1 = arith.constant 0 : i32
    return %c0_i32, %c0_i32_0 : i32, i32
  }
  func.func @transform_6(%arg0: i32) -> (i32, i32) {
    %c0_i32 = arith.constant 0 : i32
    %c0_i32_0 = arith.constant 0 : i32
    %c0_i32_1 = arith.constant 0 : i32
    return %c0_i32, %c0_i32_0 : i32, i32
  }
  func.func @transform_7(%arg0: i32) -> (i32, i32) {
    %c0_i32 = arith.constant 0 : i32
    %c0_i32_0 = arith.constant 0 : i32
    %c0_i32_1 = arith.constant 0 : i32
    return %c0_i32, %c0_i32_0 : i32, i32
  }
  func.func @transform_8(%arg0: i32) -> (i32, i32) {
    %c0_i32 = arith.constant 0 : i32
    %c0_i32_0 = arith.constant 0 : i32
    %c0_i32_1 = arith.constant 0 : i32
    return %c0_i32, %c0_i32_0 : i32, i32
  }
  func.func @transform_9(%arg0: i32) -> (i32, i32) {
    %c0_i32 = arith.constant 0 : i32
    %c0_i32_0 = arith.constant 0 : i32
    %c0_i32_1 = arith.constant 0 : i32
    return %c0_i32, %c0_i32_0 : i32, i32
  }
  func.func @transform_10(%arg0: i32) -> (i32, i32) {
    %c0_i32 = arith.constant 0 : i32
    %c0_i32_0 = arith.constant 0 : i32
    %c0_i32_1 = arith.constant 0 : i32
    return %c0_i32, %c0_i32_0 : i32, i32
  }
  func.func @transform_11(%arg0: i32) -> (i32, i32) {
    %c0_i32 = arith.constant 0 : i32
    %c0_i32_0 = arith.constant 0 : i32
    %c0_i32_1 = arith.constant 0 : i32
    return %c0_i32, %c0_i32_0 : i32, i32
  }
  func.func @transform_12(%arg0: i32) -> (i32, i32) {
    %c0_i32 = arith.constant 0 : i32
    %c0_i32_0 = arith.constant 0 : i32
    %c0_i32_1 = arith.constant 0 : i32
    return %c0_i32, %c0_i32_0 : i32, i32
  }
  func.func @transform_13(%arg0: i32) -> (i32, i32) {
    %c0_i32 = arith.constant 0 : i32
    %c0_i32_0 = arith.constant 0 : i32
    %c0_i32_1 = arith.constant 0 : i32
    return %c0_i32, %c0_i32_0 : i32, i32
  }
  func.func @transform_14(%arg0: i32) -> (i32, i32) {
    %c0_i32 = arith.constant 0 : i32
    %c0_i32_0 = arith.constant 0 : i32
    %c0_i32_1 = arith.constant 0 : i32
    return %c0_i32, %c0_i32_0 : i32, i32
  }
  func.func @transform_15(%arg0: i32) -> (i32, i32) {
    %c0_i32 = arith.constant 0 : i32
    %c0_i32_0 = arith.constant 0 : i32
    return %arg0, %c0_i32 : i32, i32
  }
  func.func @transform_16(%arg0: i32) -> (i32, i32) {
    %c0_i32 = arith.constant 0 : i32
    %c0_i32_0 = arith.constant 0 : i32
    return %arg0, %c0_i32 : i32, i32
  }
}

</mosaic_0001>

<bundles_post_ra>
// kernel: tile.19
= control target key start
LH: loop header
LB: loop body
LE: loop exit
PB: predicated region body
PF: predicated region fallthrough
CT: control target
= control target key end

     0   :  { %vm4_vm0 = vcmask 1047556   ;;  %s209_s14 = smov 96   ;;  %s210_s19 = smov 112   ;;  %vm6_vm1 = vcmask 130048   ;;  %vm25_vm2 = vcmask 1048448   ;;  %vm46_vm3 = vcmask 917248   ;;  %s388_s0 = inlined_call_operand.vmem [shape: f32[16,8,16], index: 0, kind: input, shape index: {}]   ;;  %s389_s1 = inlined_call_operand.vmem [shape: f32[16,128], index: 1, kind: output, shape index: {}]  }
   0x1   :  { %v172_v0 = vld [vmem:[%s388_s0 + $0x6] ss:$8 sm:$0xf]   ;;  %v167_v3 = vld [vmem:[%s388_s0 + $0x7] ss:$8 sm:$0xf]  }
   0x2   :  { %v173_v1 = vld [vmem:[%s388_s0 + $0x6] ss:$8 sm:$0xf0]   ;;  %v168_v4 = vld [vmem:[%s388_s0 + $0x7] ss:$8 sm:$0xf0]  }
   0x3   :  { %v43_v2 = vsel %vm4_vm0, %v173_v1, %v172_v0  ;;  %v22_v5 = vsel %vm4_vm0, %v168_v4, %v167_v3  ;;  %v174_v6 = vld [vmem:[%s388_s0 + $0x46] ss:$8 sm:$0xf]   ;;  %v169_v9 = vld [vmem:[%s388_s0 + $0x47] ss:$8 sm:$0xf]  }
   0x4   :  { %44 = vrot.lane.b32.xlu1 %v43_v2, %s209_s14  ;;  %v175_v7 = vld [vmem:[%s388_s0 + $0x46] ss:$8 sm:$0xf0]   ;;  %23 = vrot.lane.b32.xlu0 %v22_v5, %s210_s19  ;;  %v170_v10 = vld [vmem:[%s388_s0 + $0x47] ss:$8 sm:$0xf0]  }
   0x5   :  { %v53_v8 = vsel %vm4_vm0, %v175_v7, %v174_v6  ;;  %v32_v11 = vsel %vm4_vm0, %v170_v10, %v169_v9  ;;  %v179_v12 = vld [vmem:[%s388_s0 + $0x45] ss:$8 sm:$0xf]   ;;  %v184_v18 = vld [vmem:[%s388_s0 + $0x44] ss:$8 sm:$0xf]  }
   0x6   :  { %v180_v13 = vld [vmem:[%s388_s0 + $0x45] ss:$8 sm:$0xf0]   ;;  %v185_v19 = vld [vmem:[%s388_s0 + $0x44] ss:$8 sm:$0xf0]  }
   0x7   :  { %v177_v14 = vld [vmem:[%s388_s0 + $0x5] ss:$8 sm:$0xf]   ;;  %v74_v16 = vsel %vm4_vm0, %v180_v13, %v179_v12  ;;  %v182_v20 = vld [vmem:[%s388_s0 + $0x4] ss:$8 sm:$0xf]   ;;  %v95_v22 = vsel %vm4_vm0, %v185_v19, %v184_v18 }
   0x8   :  { %54 = vrot.lane.b32.xlu1 %v53_v8, %s209_s14  ;;  %v178_v15 = vld [vmem:[%s388_s0 + $0x5] ss:$8 sm:$0xf0]   ;;  %33 = vrot.lane.b32.xlu0 %v32_v11, %s210_s19  ;;  %v183_v21 = vld [vmem:[%s388_s0 + $0x4] ss:$8 sm:$0xf0]  }
   0x9   :  { %v64_v17 = vsel %vm4_vm0, %v178_v15, %v177_v14  ;;  %s211_s11 = smov 80   ;;  %v85_v23 = vsel %vm4_vm0, %v183_v21, %v182_v20  ;;  %v189_v24 = vld [vmem:[%s388_s0 + $0x43] ss:$8 sm:$0xf]   ;;  %s212_s20 = smov 64   ;;  %vm67_vm4 = vcmask 786048  }
   0xa   :  { %v190_v25 = vld [vmem:[%s388_s0 + $0x43] ss:$8 sm:$0xf0]   ;;  %v194_v28 = vld [vmem:[%s388_s0 + $0x42] ss:$8 sm:$0xf]  }
   0xb   :  { %v187_v26 = vld [vmem:[%s388_s0 + $0x3] ss:$8 sm:$0xf]   ;;  %v195_v29 = vld [vmem:[%s388_s0 + $0x42] ss:$8 sm:$0xf0]   ;;  %v116_v30 = vsel %vm4_vm0, %v190_v25, %v189_v24 }
   0xc   :  { %75 = vrot.lane.b32.xlu1 %v74_v16, %s211_s11  ;;  %65 = vrot.lane.b32.xlu0 %v64_v17, %s211_s11  ;;  %v188_v27 = vld [vmem:[%s388_s0 + $0x3] ss:$8 sm:$0xf0]   ;;  %v192_v31 = vld [vmem:[%s388_s0 + $0x2] ss:$8 sm:$0xf]   ;;  %v137_v40 = vsel %vm4_vm0, %v195_v29, %v194_v28 }
   0xd   :  { %v2_v32 = vld [vmem:[%s388_s0] ss:$8 sm:$0xf]   ;;  %v106_v33 = vsel %vm4_vm0, %v188_v27, %v187_v26  ;;  %v193_v36 = vld [vmem:[%s388_s0 + $0x2] ss:$8 sm:$0xf0]  }
   0xe   :  { %v3_v34 = vld [vmem:[%s388_s0] ss:$8 sm:$0xf0]   ;;  %s213_s8 = smov 48   ;;  %v127_v41 = vsel %vm4_vm0, %v193_v36, %v192_v31  ;;  %s215_s21 = smov 16   ;;  %vm88_vm5 = vcmask 654848  }
   0xf   :  { %v164_v35 = vld [vmem:[%s388_s0 + $0x40] ss:$8 sm:$0xf]   ;;  %v5_v37 = vsel %vm4_vm0, %v3_v34, %v2_v32  ;;  %v199_v42 = vld [vmem:[%s388_s0 + $0x41] ss:$8 sm:$0xf]  }
  0x10   :  { %96 = vrot.lane.b32.xlu1 %v95_v22, %s212_s20  ;;  %86 = vrot.lane.b32.xlu0 %v85_v23, %s212_s20  ;;  %v165_v38 = vld [vmem:[%s388_s0 + $0x40] ss:$8 sm:$0xf0]   ;;  %7 = vst.msk [vmem:[%s389_s1] sm:$0xff] %vm6_vm1, %v5_v37   ;;  %vm109_vm6 = vcmask 523648   ;;  %vm130_vm7 = vcmask 392448  }
  0x11   :  { %v13_v39 = vsel %vm4_vm0, %v165_v38, %v164_v35  ;;  %v200_v43 = vld [vmem:[%s388_s0 + $0x41] ss:$8 sm:$0xf0]   ;;  %vm151_vm8 = vcmask 261248  }
  0x12   :  { %166 = vst.msk [vmem:[%s389_s1 + $0x8] sm:$0xff] %vm6_vm1, %v13_v39   ;;  %v197_v44 = vld [vmem:[%s388_s0 + $0x1] ss:$8 sm:$0xf]   ;;  %v158_v46 = vsel %vm4_vm0, %v200_v43, %v199_v42 }
  0x13   :  { %v198_v45 = vld [vmem:[%s388_s0 + $0x1] ss:$8 sm:$0xf0]   ;;  %s214_s0 = smov 32  }
  0x14   :  { %117 = vrot.lane.b32.xlu1 %v116_v30, %s213_s8  ;;  %107 = vrot.lane.b32.xlu0 %v106_v33, %s213_s8  ;;  %v148_v47 = vsel %vm4_vm0, %v198_v45, %v197_v44 }
  0x18   :  { %138 = vrot.lane.b32.xlu1 %v137_v40, %s214_s0  ;;  %128 = vrot.lane.b32.xlu0 %v127_v41, %s214_s0 }
  0x1c   :  { %159 = vrot.lane.b32.xlu1 %v158_v46, %s215_s21  ;;  %149 = vrot.lane.b32.xlu0 %v148_v47, %s215_s21 }
  0x76   :  { %v45_v48 = vpop.permute.xlu1 %44   ;;  %v24_v49 = vpop.permute.xlu0 %23  }
  0x77   :  { %26 = vst.msk [vmem:[%s389_s1] sm:$0xff] %vm25_vm2, %v24_v49  }
  0x78   :  { %47 = vst.msk [vmem:[%s389_s1] sm:$0xff] %vm46_vm3, %v45_v48  }
  0x7a   :  { %v55_v50 = vpop.permute.xlu1 %54   ;;  %v34_v51 = vpop.permute.xlu0 %33  }
  0x7b   :  { %171 = vst.msk [vmem:[%s389_s1 + $0x8] sm:$0xff] %vm25_vm2, %v34_v51  }
  0x7c   :  { %176 = vst.msk [vmem:[%s389_s1 + $0x8] sm:$0xff] %vm46_vm3, %v55_v50  }
  0x7e   :  { %v76_v52 = vpop.permute.xlu1 %75   ;;  %v66_v53 = vpop.permute.xlu0 %65  }
  0x7f   :  { %181 = vst.msk [vmem:[%s389_s1 + $0x8] sm:$0xff] %vm67_vm4, %v76_v52   ;;  %68 = vst.msk [vmem:[%s389_s1] sm:$0xff] %vm67_vm4, %v66_v53  }
  0x82   :  { %v97_v54 = vpop.permute.xlu1 %96   ;;  %v87_v55 = vpop.permute.xlu0 %86  }
  0x83   :  { %186 = vst.msk [vmem:[%s389_s1 + $0x8] sm:$0xff] %vm88_vm5, %v97_v54   ;;  %89 = vst.msk [vmem:[%s389_s1] sm:$0xff] %vm88_vm5, %v87_v55  }
  0x86   :  { %v118_v56 = vpop.permute.xlu1 %117   ;;  %v108_v57 = vpop.permute.xlu0 %107  }
  0x87   :  { %191 = vst.msk [vmem:[%s389_s1 + $0x8] sm:$0xff] %vm109_vm6, %v118_v56   ;;  %110 = vst.msk [vmem:[%s389_s1] sm:$0xff] %vm109_vm6, %v108_v57  }
  0x8a   :  { %v139_v58 = vpop.permute.xlu1 %138   ;;  %v129_v59 = vpop.permute.xlu0 %128  }
  0x8b   :  { %196 = vst.msk [vmem:[%s389_s1 + $0x8] sm:$0xff] %vm130_vm7, %v139_v58   ;;  %131 = vst.msk [vmem:[%s389_s1] sm:$0xff] %vm130_vm7, %v129_v59  }
  0x8e   :  { %v160_v60 = vpop.permute.xlu1 %159   ;;  %v150_v61 = vpop.permute.xlu0 %149  }
  0x8f   :  { %201 = vst.msk [vmem:[%s389_s1 + $0x8] sm:$0xff] %vm151_vm8, %v160_v60   ;;  %152 = vst.msk [vmem:[%s389_s1] sm:$0xff] %vm151_vm8, %v150_v61  }

// kernel: _dkvmn_seq_call.1
= control target key start
LH: loop header
LB: loop body
LE: loop exit
PB: predicated region body
PF: predicated region fallthrough
CT: control target
= control target key end

     0   :  { %s17162_s0 = inlined_call_operand.vmem [shape: f32[16,16,32], index: 0, kind: input, shape index: {}]   ;;  %s17163_s1 = inlined_call_operand.vmem [shape: f32[16,128], index: 1, kind: input, shape index: {}]   ;;  %s17164_s2 = inlined_call_operand.vmem [shape: f32[32,24], index: 2, kind: input, shape index: {}]   ;;  %s17165_s3 = inlined_call_operand.vmem [shape: f32[1,24], index: 3, kind: input, shape index: {}]   ;;  %s17166_s4 = inlined_call_operand.vmem [shape: f32[8,8], index: 4, kind: input, shape index: {}]   ;;  %s17167_s5 = inlined_call_operand.vmem [shape: f32[16,16], index: 5, kind: input, shape index: {}]   ;;  %s17168_s6 = inlined_call_operand.vmem [shape: f32[8,16], index: 6, kind: input, shape index: {}]   ;;  %s17169_s7 = inlined_call_operand.vmem [shape: f32[1,16], index: 7, kind: input, shape index: {}]   ;;  %s17170_s8 = inlined_call_operand.vmem [shape: f32[1,16], index: 8, kind: input, shape index: {}]   ;;  %s17171_s9 = inlined_call_operand.<no memory space> [shape: f32[1,1], index: 9, kind: input, shape index: {}]   ;;  %s17172_s10 = inlined_call_operand.vmem [shape: f32[16,32], index: 10, kind: input, shape index: {}]   ;;  %s17173_s11 = inlined_call_operand.vmem [shape: f32[1,32], index: 11, kind: input, shape index: {}]   ;;  %s17174_s12 = inlined_call_operand.vmem [shape: f32[8,128], index: 12, kind: input, shape index: {}]   ;;  %s17175_s13 = inlined_call_operand.vmem [shape: f32[128,16], index: 13, kind: input, shape index: {}]   ;;  %s17176_s14 = inlined_call_operand.vmem [shape: f32[16,128], index: 14, kind: input, shape index: {}]   ;;  %s17177_s15 = inlined_call_operand.hbm [shape: f32[16,128], index: 15, kind: output, shape index: {0}]   ;;  %s17178_s16 = inlined_call_operand.hbm [shape: f32[16,128], index: 16, kind: output, shape index: {1}]  }
   0x1   :  { %17184 = sst [smem:[#allocation12_spill]] %s17162_s0  ;;  %v22_v0 = vstv %s17171_s9 }
   0x2   :  { %17185 = sst [smem:[#allocation13_spill]] %s17163_s1  ;;  %23 = vst [vmem:[#allocation2] sm:$0x1] %v22_v0 }
   0x3   :  { %17186 = sst [smem:[#allocation14_spill]] %s17164_s2 }
   0x4   :  { %17187 = sst [smem:[#allocation15_spill]] %s17175_s13 }
   0x5   :  { %24 = vsyncpa [#allocation5], 0 }
   0x6   :  { %26 = vsyncpa [#allocation5 + $0x1], 0 }
   0x7   :  { %27 = vsyncpa [#allocation7], 0 }
   0x8   :  { %29 = vsyncpa [#allocation7 + $0x1], 0  ;;  %s15502_s23 = smov 0   ;;  %s15504_s24 = smov 0  }
   0x9   :  { %s15506_s25 = smov 0   ;;  %s15508_s26 = smov 0  }
   0xa LB: > { %17188 = sst [smem:[#allocation10_spill]] %s15400_s25  ;;  %s15523_s9 = sadd.s32 4294967295, %s15404_s26   ;;  %s15404_s26 = sphi %s15508_s26, %s17203_s26   ;;  %s15400_s25 = sphi %s15506_s25, %s17200_s25   ;;  %s15396_s24 = sphi %s15504_s24, %s17202_s24   ;;  %s15392_s23 = sphi %s15502_s23, %s17201_s23  }
   0xb   : > { %s12056_s27 = sadd.s32 4294967294, %s15404_s26   ;;  %s15527_s28 = sadd.s32 1, %s15404_s26  }
   0xc   : > { %s42_s29 = sadd.s32 1, %s15400_s25  ;;  %s39_s30 = ssub.s32 %s15404_s26, %s15527_s28 }
   0xd   : > { %p49_p0 = scmp.ne.s32.totalorder %s15400_s25, %s15396_s24  ;;  %p40_p1 = scmp.eq.s32.totalorder %s39_s30, 0 }
   0xe   : > { %p50_p2 = scmp.eq.s32.totalorder %s15404_s26, 0  ;;  %p378_p3 = scmp.eq.s32.totalorder %s15523_s9, 1 }
   0xf   : > { %p383_p4 = scmp.ne.s32.totalorder %s15396_s24, %s15392_s23  ;;  %p384_p7 = scmp.eq.s32.totalorder %s12056_s27, 1 }
  0x10   : > { %s15539_s0 = scalar_select %p40_p1, %s15400_s25, %s42_s29  }
  0x11   : > { %p51_p5 = por %p50_p2, %p49_p0  ;;  %p15541_p6 = por %p378_p3, %p49_p0 }
  0x12   : > { %17189 = sst [smem:[#allocation11_spill]] %s15539_s0  ;;  %p15545_p8 = por %p384_p7, %p383_p4 }
  0x13   : > { %p12058_p9 = scmp.ge.s32.totalorder %s15404_s26, 2 }
  0x15   : > { %465 = sbr.rel (%p12058_p9) target bundleno = 46 (0x2e), region = 68 }
  0x1c   : > { %468 = sbr.rel (!%p51_p5) target bundleno = 46 (0x2e), region = 72  ;;  %s470_s19 = sand.u32 (%p51_p5), 1, %s15400_s25  }
  0x1d   : > { %s12060_s20 = sshll.u32 (%p51_p5), %s15404_s26, 3  ;;  %s12059_s21 = sshll.u32 (%p51_p5), %s470_s19, 7 }
  0x1e   : > { %s17192_s30 = sld [smem:[#allocation12_spill]] (%p51_p5)  ;;  %s472_s27 = scalar_lea.vmem (%p51_p5), [#allocation3], %s12059_s21 }
  0x24   : > { %s15557_s0 = scalar_lea.vmem %s17192_s30, %s12060_s20 }
  0x25   : > { %v532_v1 = vld [vmem:[%s15557_s0] sm:$0xff]  ;;  %v534_v2 = vld [vmem:[%s15557_s0 + $0x10] sm:$0xff] }
  0x26   : > { %v536_v3 = vld [vmem:[%s15557_s0 + $0x20] sm:$0xff]  ;;  %533 = vst [vmem:[%s472_s27] sm:$0xff] %v532_v1  ;;  %535 = vst [vmem:[%s472_s27 + $0x8] sm:$0xff] %v534_v2  ;;  %v538_v4 = vld [vmem:[%s15557_s0 + $0x30] sm:$0xff] }
  0x27   : > { %537 = vst [vmem:[%s472_s27 + $0x10] sm:$0xff] %v536_v3  ;;  %v540_v5 = vld [vmem:[%s15557_s0 + $0x40] sm:$0xff]  ;;  %v542_v6 = vld [vmem:[%s15557_s0 + $0x50] sm:$0xff]  ;;  %539 = vst [vmem:[%s472_s27 + $0x18] sm:$0xff] %v538_v4 }
  0x28   : > { %541 = vst [vmem:[%s472_s27 + $0x20] sm:$0xff] %v540_v5  ;;  %543 = vst [vmem:[%s472_s27 + $0x28] sm:$0xff] %v542_v6  ;;  %v544_v7 = vld [vmem:[%s15557_s0 + $0x60] sm:$0xff]  ;;  %v546_v8 = vld [vmem:[%s15557_s0 + $0x70] sm:$0xff] }
  0x29   : > { %v548_v9 = vld [vmem:[%s15557_s0 + $0x80] sm:$0xff]  ;;  %545 = vst [vmem:[%s472_s27 + $0x30] sm:$0xff] %v544_v7  ;;  %547 = vst [vmem:[%s472_s27 + $0x38] sm:$0xff] %v546_v8  ;;  %v550_v10 = vld [vmem:[%s15557_s0 + $0x90] sm:$0xff] }
  0x2a   : > { %549 = vst [vmem:[%s472_s27 + $0x40] sm:$0xff] %v548_v9  ;;  %v552_v11 = vld [vmem:[%s15557_s0 + $0xa0] sm:$0xff]  ;;  %v554_v12 = vld [vmem:[%s15557_s0 + $0xb0] sm:$0xff]  ;;  %551 = vst [vmem:[%s472_s27 + $0x48] sm:$0xff] %v550_v10 }
  0x2b   : > { %553 = vst [vmem:[%s472_s27 + $0x50] sm:$0xff] %v552_v11  ;;  %555 = vst [vmem:[%s472_s27 + $0x58] sm:$0xff] %v554_v12  ;;  %v556_v13 = vld [vmem:[%s15557_s0 + $0xc0] sm:$0xff]  ;;  %v558_v14 = vld [vmem:[%s15557_s0 + $0xd0] sm:$0xff] }
  0x2c   : > { %v560_v15 = vld [vmem:[%s15557_s0 + $0xe0] sm:$0xff]  ;;  %557 = vst [vmem:[%s472_s27 + $0x60] sm:$0xff] %v556_v13  ;;  %559 = vst [vmem:[%s472_s27 + $0x68] sm:$0xff] %v558_v14  ;;  %v562_v16 = vld [vmem:[%s15557_s0 + $0xf0] sm:$0xff] }
  0x2d   : > { %561 = vst [vmem:[%s472_s27 + $0x70] sm:$0xff] %v560_v15  ;;  %563 = vst [vmem:[%s472_s27 + $0x78] sm:$0xff] %v562_v16 }
  0x2e PF: > { %p12061_p10 = scmp.ge.s32.totalorder %s15404_s26, 1  ;;  %p575_p11 = scmp.lt.s32.totalorder %s15404_s26, 3 }
  0x30   : > { %p576_p12 = pnand %p12061_p10, %p575_p11 }
  0x31   : > { %s17193_s2 = sld [smem:[#allocation14_spill]] (!%p576_p12)  ;;  %v15406_v20 = vmov (!%p576_p12), 0.0|0.0   ;;  %vm15407_vm0 = vmmov (!%p576_p12), 0   ;;  %v15408_v23 = vmov (!%p576_p12), 0.0   ;;  %s15595_s19 = sand.u32 (!%p576_p12), 1, %s15396_s24   ;;  %vm688_vm1 = vcmask (!%p576_p12), 261120  }
  0x32   : > { %579 = sbr.rel (%p576_p12) target bundleno = 24615 (0x6027), region = 114  ;;  %14316 = vmatprep.subr.bf16.mxu0 (!%p576_p12), %v15406_v20  ;;  %12900 = vmatprep.mubr.msk.f32.mxu0 (!%p576_p12), %vm15407_vm0, %v15408_v23  ;;  %s12062_s20 = sshll.u32 (!%p576_p12), %s15595_s19, 7  ;;  %v15616_v26 = vld [vmem:[%s17166_s4] sm:$0xff] (!%p576_p12)  ;;  %vm762_vm2 = vcmask (!%p576_p12), 64512   ;;  %v651_v4 = vld [vmem:[%s17167_s5 + $0x8] sm:$0xff] (!%p576_p12)  ;;  %vm1061_vm3 = vcmask (!%p576_p12), 130048  }
  0x33   : > { %12903 = vmatprep.subr.mxu1 (!%p576_p12), %v15408_v23  ;;  %12905 = vmatprep.mubr.msk.f32.mxu1 (!%p576_p12), %vm15407_vm0, %v15408_v23  ;;  %s15606_s21 = scalar_lea.vmem (!%p576_p12), [#allocation3], %s12062_s20  ;;  %v15623_v27 = vld [vmem:[%s17165_s3] ss:$0 sm:$0xff] (!%p576_p12)  ;;  %s17179_s27 = smov (!%p576_p12), 120   ;;  %v657_v12 = vld [vmem:[%s17172_s10 + $0x8] sm:$0xff] (!%p576_p12) }
  0x34   : > { %v681_v25 = vld [vmem:[%s15606_s21] sm:$0xff] (!%p576_p12)  ;;  %12904 = vmatpush3.msra.mxu1 (!%p576_p12), %v15616_v26  ;;  %s17194_s13 = sld [smem:[#allocation15_spill]] (!%p576_p12)  ;;  %p640_p13 = scmp.lt.s32.totalorder (!%p576_p12), %s15523_s9, 1 }
  0x35   : > { %12908 = vmatprep.subr.mxu1 (!%p576_p12), %v15408_v23  ;;  %v15639_v39 = vld [vmem:[%s17174_s12] sm:$0xff] (!%p576_p12)  ;;  %s17195_s1 = sld [smem:[#allocation13_spill]] (!%p576_p12)  ;;  %s15410_s0 = smov (!%p576_p12), 112  }
  0x36   : > { %v650_v3 = vld [vmem:[%s17167_s5] sm:$0xff] (!%p576_p12)  ;;  %s17196_s30 = smov (!%p576_p12), 120  }
  0x37   : > { %v644_v17 = vld [vmem:[%s17193_s2] sm:$0xff] (!%p576_p12)  ;;  %v645_v18 = vld [vmem:[%s17193_s2 + $0x8] sm:$0xff] (!%p576_p12)  ;;  %v646_v19 = vld [vmem:[%s17193_s2 + $0x10] sm:$0xff] (!%p576_p12)  ;;  %v15732_v5 = vpack.c.bf16 (!%p576_p12), %v651_v4, %v650_v3 }
  0x38   : > { %v15587_v21 = vpack.c.bf16 (!%p576_p12), %v645_v18, %v644_v17  ;;  %v647_v22 = vld [vmem:[%s17193_s2 + $0x18] sm:$0xff] (!%p576_p12)  ;;  %v15750_v10 = vld [vmem:[%s17168_s6] sm:$0xff] (!%p576_p12) }
  0x39   : > { %v15602_v24 = vpack.c.bf16 %v647_v22, %v646_v19  ;;  %s641_s2 = scalar_select %p640_p13, %s15523_s9, 1  ;;  %v656_v11 = vld [vmem:[%s17172_s10] sm:$0xff]  ;;  %v677_v22 = vld [vmem:[%s17176_s14 + $0x8] sm:$0xff] }
  0x3a   : > { %14318 = vmatpush3.bf16.msra.mxu0 %v15587_v21  ;;  %v660_v41 = vld [vmem:[%s17194_s13] sm:$0xff]  ;;  %v661_v42 = vld [vmem:[%s17194_s13 + $0x8] sm:$0xff]  ;;  %v662_v46 = vld [vmem:[%s17194_s13 + $0x10] sm:$0xff]  ;;  %v15768_v13 = vpack.c.bf16 %v657_v12, %v656_v11 }
  0x3b   : > { %14319 = vmatprep.subr.bf16.mxu0 %v15406_v20  ;;  %v15649_v44 = vpack.c.bf16 %v661_v42, %v660_v41  ;;  %v663_v47 = vld [vmem:[%s17194_s13 + $0x18] sm:$0xff]  ;;  %v664_v49 = vld [vmem:[%s17194_s13 + $0x20] sm:$0xff]  ;;  %v665_v50 = vld [vmem:[%s17194_s13 + $0x28] sm:$0xff]  ;;  %s12065_s25 = sshll.u32 %s641_s2, 3 }
  0x3c   : > { %v15659_v48 = vpack.c.bf16 %v663_v47, %v662_v46  ;;  %v15671_v51 = vpack.c.bf16 %v665_v50, %v664_v49  ;;  %v666_v52 = vld [vmem:[%s17194_s13 + $0x30] sm:$0xff]  ;;  %v667_v53 = vld [vmem:[%s17194_s13 + $0x38] sm:$0xff]  ;;  %v668_v55 = vld [vmem:[%s17194_s13 + $0x40] sm:$0xff] }
  0x3d   : > { %v15681_v54 = vpack.c.bf16 %v667_v53, %v666_v52  ;;  %v669_v56 = vld [vmem:[%s17194_s13 + $0x48] sm:$0xff]  ;;  %v670_v58 = vld [vmem:[%s17194_s13 + $0x50] sm:$0xff]  ;;  %v671_v59 = vld [vmem:[%s17194_s13 + $0x58] sm:$0xff] }
  0x3e   : > { %14321 = vmatpush3.bf16.msra.mxu0 %v15602_v24  ;;  %v15691_v57 = vpack.c.bf16 %v669_v56, %v668_v55  ;;  %v15701_v60 = vpack.c.bf16 %v671_v59, %v670_v58  ;;  %v672_v61 = vld [vmem:[%s17194_s13 + $0x60] sm:$0xff]  ;;  %v673_v62 = vld [vmem:[%s17194_s13 + $0x68] sm:$0xff]  ;;  %v674_v0 = vld [vmem:[%s17194_s13 + $0x70] sm:$0xff] }
  0x3f   : > { %14346 = vmatprep.subr.bf16.mxu0 %v15406_v20  ;;  %v15711_v63 = vpack.c.bf16 %v673_v62, %v672_v61  ;;  %v675_v1 = vld [vmem:[%s17194_s13 + $0x78] sm:$0xff]  ;;  %s643_s13 = scalar_lea.vmem %s17195_s1, %s12065_s25  ;;  %v676_v19 = vld [vmem:[%s17176_s14] sm:$0xff]  ;;  %v12081_v42 = vld [vmem:[%s15606_s21 + $0x8] sm:$0xff]  ;;  %s17182_s25 = sshll.u32 %s15523_s9, 7 }
  0x40   : > { %v15722_v2 = vpack.c.bf16 %v675_v1, %v674_v0  ;;  %v15741_v6 = vld [vmem:[%s643_s13] sm:$0xff]  ;;  %s17068_s29 = scalar_lea.hbm %s17178_s16, %s17182_s25  ;;  %s11921_s13 = scalar_lea.sflag [#allocation7], %s15595_s19 }
  0x41   : > { %12901 = vmatmul.mubr.msk.f32.vlgmr.msra.gmra.mrb[0].mxu0 %vm688_vm1, %v681_v25  ;;  %v15784_v25 = vpack.c.bf16 %v677_v22, %v676_v19 }
  0x42   : > { %12957 = vmatprep.mubr.msk.f32.mxu0 %vm15407_vm0, %v15408_v23  ;;  %14348 = vmatpush3.bf16.msra.mxu0 %v15732_v5 }
  0x43   : > { %14349 = vmatprep.subr.bf16.mxu0 %v15406_v20 }
 0x114   : > { %v758_v28 = vpop.f32.mrb[0].mxu0 }
 0x115   : > { %v15626_v29 = vadd.f32 %v15623_v27, %v758_v28  ;;  %v12902_v30 = vpop.f32.mrb[1].mxu0 }
 0x117   : > { %1179 = vrot.lane.b32.xlu1 %v15626_v29, %s17179_s27  ;;  %12906 = vmatmul.mubr.msk.f32.vlgmr.msra.gmra.mrb[0].mxu1 %vm762_vm2, %v15626_v29 }
 0x118   : > { %12910 = vmatprep.mubr.msk.f32.mxu1 %vm15407_vm0, %v15408_v23  ;;  %12909 = vmatpush3.msra.mxu1 %v15639_v39 }
 0x119   : > { %14322 = vmatprep.subr.bf16.mxu1 %v15406_v20 }
 0x189   : > { %v1180_v16 = vpop.permute.xlu1 %1179 }
 0x1ea   : > { %v832_v31 = vpop.f32.mrb[0].mxu1 }
 0x1eb   : > { %v12907_v32 = vpop.f32.mrb[1].mxu1  ;;  %v836_v33 = vsel %vm762_vm2, %v832_v31, -inf }
 0x1ec   : > { %837 = vmax.xlane.f32.xlu0 %v836_v33 }
 0x279   : > { %v838_v34 = vpop.xlane.xlu0 %837 }
 0x27a   : > { %v839_v35 = vsub.f32 %v832_v31, %v838_v34  ;;  %v15793_v31 = vld [vmem:[%s17173_s11] ss:$0 sm:$0xff] }
 0x27c   : > { %v840_v36 = vmul.f32 1.442695, %v839_v35 }
 0x27e   : > { %15040 = vpow2.f32 %v840_v36 }
 0x288   : > { %v15041_v37 = vpop.eup %15040 }
 0x289   : > { %v842_v38 = vsel %vm762_vm2, %v15041_v37, 0.0 }
 0x28a   : > { %843 = vadd.xlane.f32.xlu0 %v842_v38 }
 0x317   : > { %v844_v40 = vpop.xlane.xlu0 %843 }
 0x318   : > { %15042 = vrcp.f32 %v844_v40 }
 0x322   : > { %v15043_v43 = vpop.eup %15042 }
 0x323   : > { %v846_v45 = vmul.f32 %v15043_v43, %v15041_v37 }
 0x325   : > { %12911 = vmatmul.mubr.msk.f32.vlgmr.msra.gmra.mrb[2].mxu1 %vm762_vm2, %v846_v45 }
 0x326   : > { %14324 = vmatpush3.bf16.msra.mxu1 %v15649_v44  ;;  %12945 = vmatprep.mubr.msk.f32.mxu1 %vm15407_vm0, %v15408_v23 }
 0x327   : > { %14325 = vmatprep.subr.bf16.mxu1 %v15406_v20 }
 0x32a   : > { %14327 = vmatpush3.bf16.msra.mxu1 %v15659_v48 }
 0x32b   : > { %14328 = vmatprep.subr.bf16.mxu1 %v15406_v20 }
 0x32e   : > { %14330 = vmatpush3.bf16.msra.mxu1 %v15671_v51 }
 0x32f   : > { %14331 = vmatprep.subr.bf16.mxu1 %v15406_v20 }
 0x332   : > { %14333 = vmatpush3.bf16.msra.mxu1 %v15681_v54 }
 0x333   : > { %14334 = vmatprep.subr.bf16.mxu1 %v15406_v20 }
 0x336   : > { %14336 = vmatpush3.bf16.msra.mxu1 %v15691_v57 }
 0x337   : > { %14337 = vmatprep.subr.bf16.mxu1 %v15406_v20 }
 0x33a   : > { %14339 = vmatpush3.bf16.msra.mxu1 %v15701_v60 }
 0x33b   : > { %14340 = vmatprep.subr.bf16.mxu1 %v15406_v20 }
 0x33e   : > { %14342 = vmatpush3.bf16.msra.mxu1 %v15711_v63 }
 0x33f   : > { %14343 = vmatprep.subr.bf16.mxu1 %v15406_v20 }
 0x342   : > { %14345 = vmatpush3.bf16.msra.mxu1 %v15722_v2 }
 0x343   : > { %12948 = vmatprep.subr.mxu1 %v15408_v23 }
 0x3f8   : > { %v15743_v7 = vpop.f32.mrb[2].mxu1 }
 0x3f9   : > { %v920_v8 = vmul.f32 %v15743_v7, %v15741_v6  ;;  %v12912_v9 = vpop.f32.mrb[3].mxu1 }
 0x3fb   : > { %12946 = vmatmul.mubr.f32.vlgmr.msra.gmra.mrb[4].mxu1 %v920_v8 }
 0x3fc   : > { %12949 = vmatpush3.msra.mxu1 %v15750_v10  ;;  %12950 = vmatprep.mubr.msk.f32.mxu1 %vm15407_vm0, %v15408_v23 }
 0x3fd   : > { %12997 = vmatprep.subr.mxu1 %v15408_v23 }
 0x3ff   : > { %12951 = vmatmul.mubr.msk.f32.vlgmr.msra.gmra.mrb[6].mxu1 %vm762_vm2, %v15626_v29 }
 0x400   : > { %12998 = vmatpush3.msra.mxu1 %v15639_v39  ;;  %12999 = vmatprep.mubr.msk.f32.mxu1 %vm15407_vm0, %v15408_v23 }
 0x401   : > { %13037 = vmatprep.subr.mxu1 %v15408_v23 }
 0x4ce   : > { %v987_v14 = vpop.f32.mrb[4].mxu1 }
 0x4cf   : > { %v12947_v15 = vpop.f32.mrb[5].mxu1  ;;  %12958 = vmatmul.mubr.msk.f32.vlgmr.msra.gmra.mrb[2].mxu0 %vm1061_vm3, %v987_v14 }
 0x4d0   : > { %14351 = vmatpush3.bf16.msra.mxu0 %v15768_v13  ;;  %12964 = vmatprep.mubr.msk.f32.mxu0 %vm15407_vm0, %v15408_v23 }
 0x4d1   : > { %14352 = vmatprep.subr.bf16.mxu0 %v15406_v20 }
 0x4d2   : > { %v1057_v17 = vpop.f32.mrb[6].mxu1 }
 0x4d3   : > { %v12952_v18 = vpop.f32.mrb[7].mxu1  ;;  %12965 = vmatmul.mubr.msk.f32.vlgmr.msra.gmra.mrb[4].mxu0 %vm1061_vm3, %v1180_v16 }
 0x4d4   : > { %12971 = vmatprep.mubr.msk.f32.mxu0 %vm15407_vm0, %v15408_v23  ;;  %14354 = vmatpush3.bf16.msra.mxu0 %v15784_v25 }
 0x4d5   : > { %14355 = vmatprep.subr.bf16.mxu0 %v15406_v20 }
 0x5a2   : > { %v1131_v28 = vpop.f32.mrb[2].mxu0 }
 0x5a3   : > { %v15788_v29 = vadd.f32 %v1131_v28, %v1057_v17  ;;  %v12959_v30 = vpop.f32.mrb[3].mxu0 }
 0x5a6   : > { %v1249_v32 = vpop.f32.mrb[4].mxu0 }
 0x5a7   : > { %v1250_v33 = vadd.f32 %v15793_v31, %v1249_v32  ;;  %v12966_v34 = vpop.f32.mrb[5].mxu0 }
 0x5a9   : > { %v12078_v35 = vmul.f32 -1.442695, %v1250_v33  ;;  %15044 = vtanh.f32 %v1250_v33 }
 0x5ab   : > { %15046 = vpow2.f32 %v12078_v35 }
 0x5b3   : > { %v15045_v36 = vpop.eup %15044 }
 0x5b4   : > { %1334 = vrot.lane.b32.xlu1 %v15045_v36, %s15410_s0 }
 0x5b5   : > { %v15047_v37 = vpop.eup %15046 }
 0x5b6   : > { %v1256_v38 = vadd.f32 1.0, %v15047_v37 }
 0x5b8   : > { %15048 = vrcp.f32 %v1256_v38 }
 0x5c2   : > { %v15049_v40 = vpop.eup %15048 }
 0x5c3   : > { %12972 = vmatmul.mubr.msk.f32.vlgmr.msra.gmra.mrb[6].mxu0 %vm1061_vm3, %v15049_v40 }
 0x5c4   : > { %14357 = vmatpush3.bf16.msra.mxu0 %v15784_v25  ;;  %12978 = vmatprep.mubr.msk.f32.mxu0 %vm15407_vm0, %v15408_v23 }
 0x5c5   : > { %14358 = vmatprep.subr.bf16.mxu0 %v15406_v20 }
 0x626   : > { %v1335_v41 = vpop.permute.xlu1 %1334 }
 0x627   : > { %12979 = vmatmul.mubr.msk.f32.vlgmr.msra.gmra.mrb[8].mxu0 %vm1061_vm3, %v1335_v41 }
 0x628   : > { %14360 = vmatpush3.bf16.msra.mxu0 %v15587_v21  ;;  %12989 = vmatprep.mubr.msk.f32.mxu0 %vm15407_vm0, %v15408_v23 }
 0x629   : > { %14361 = vmatprep.subr.bf16.mxu0 %v15406_v20 }
 0x62c   : > { %14363 = vmatpush3.bf16.msra.mxu0 %v15602_v24 }
 0x62d   : > { %12992 = vmatprep.subr.mxu0 %v15408_v23 }
 0x62f   : > { %12990 = vmatmul.mubr.msk.f32.vlgmr.msra.gmra.mrb[10].mxu0 %vm688_vm1, %v12081_v42 }
 0x630   : > { %12993 = vmatpush3.msra.mxu0 %v15616_v26  ;;  %12994 = vmatprep.mubr.msk.f32.mxu0 %vm15407_vm0, %v15408_v23 }
 0x631   : > { %14364 = vmatprep.subr.bf16.mxu0 %v15406_v20 }
 0x696   : > { %v1329_v43 = vpop.f32.mrb[6].mxu0 }
 0x697   : > { %v1408_v45 = vmul.f32 %v1329_v43, %v15743_v7  ;;  %v12973_v46 = vpop.f32.mrb[7].mxu0  ;;  %v12092_v43 = vld [vmem:[%s15606_s21 + $0x10] sm:$0xff] }
 0x699   : > { %v1409_v47 = vsub.f32 1.0, %v1408_v45 }
 0x69b   : > { %v1410_v50 = vmul.f32 %v1409_v47, %v15741_v6 }
 0x6fa   : > { %v1404_v49 = vpop.f32.mrb[8].mxu0 }
 0x6fb   : > { %v1411_v52 = vmul.f32 %v1404_v49, %v15743_v7  ;;  %v12980_v53 = vpop.f32.mrb[9].mxu0 }
 0x6fd   : > { %v15818_v55 = vadd.f32 %v1411_v52, %v1410_v50 }
 0x702   : > { %v1484_v56 = vpop.f32.mrb[10].mxu0 }
 0x703   : > { %v1485_v58 = vadd.f32 %v15623_v27, %v1484_v56  ;;  %v12991_v59 = vpop.f32.mrb[11].mxu0 }
 0x705   : > { %12995 = vmatmul.mubr.msk.f32.vlgmr.msra.gmra.mrb[12].mxu0 %vm762_vm2, %v1485_v58 }
 0x706   : > { %14366 = vmatpush3.bf16.msra.mxu0 %v15649_v44  ;;  %13034 = vmatprep.mubr.msk.f32.mxu0 %vm15407_vm0, %v15408_v23 }
 0x707   : > { %14367 = vmatprep.subr.bf16.mxu0 %v15406_v20 }
 0x70a   : > { %14369 = vmatpush3.bf16.msra.mxu0 %v15659_v48 }
 0x70b   : > { %14370 = vmatprep.subr.bf16.mxu0 %v15406_v20 }
 0x70e   : > { %14372 = vmatpush3.bf16.msra.mxu0 %v15671_v51 }
 0x70f   : > { %14373 = vmatprep.subr.bf16.mxu0 %v15406_v20 }
 0x712   : > { %14375 = vmatpush3.bf16.msra.mxu0 %v15681_v54 }
 0x713   : > { %14376 = vmatprep.subr.bf16.mxu0 %v15406_v20 }
 0x716   : > { %14378 = vmatpush3.bf16.msra.mxu0 %v15691_v57 }
 0x717   : > { %14379 = vmatprep.subr.bf16.mxu0 %v15406_v20 }
 0x71a   : > { %14381 = vmatpush3.bf16.msra.mxu0 %v15701_v60 }
 0x71b   : > { %14382 = vmatprep.subr.bf16.mxu0 %v15406_v20 }
 0x71e   : > { %14384 = vmatpush3.bf16.msra.mxu0 %v15711_v63 }
 0x71f   : > { %14385 = vmatprep.subr.bf16.mxu0 %v15406_v20 }
 0x722   : > { %14387 = vmatpush3.bf16.msra.mxu0 %v15722_v2 }
 0x723   : > { %13086 = vmatprep.subr.mxu0 %v15408_v23 }
 0x7d8   : > { %v1557_v61 = vpop.f32.mrb[12].mxu0 }
 0x7d9   : > { %v12996_v62 = vpop.f32.mrb[13].mxu0  ;;  %v1561_v0 = vsel %vm762_vm2, %v1557_v61, -inf }
 0x7da   : > { %1562 = vmax.xlane.f32.xlu0 %v1561_v0 }
 0x7f0   : > { %1879 = vrot.lane.b32.xlu0 %v1485_v58, %s17196_s30 }
 0x867   : > { %v1563_v1 = vpop.xlane.xlu0 %1562 }
 0x868   : > { %v1564_v3 = vsub.f32 %v1557_v61, %v1563_v1 }
 0x86a   : > { %v1565_v4 = vmul.f32 1.442695, %v1564_v3 }
 0x86b   : > { %v1880_v22 = vpop.permute.xlu0 %1879 }
 0x86c   : > { %15050 = vpow2.f32 %v1565_v4 }
 0x876   : > { %v15051_v6 = vpop.eup %15050 }
 0x877   : > { %v1567_v7 = vsel %vm762_vm2, %v15051_v6, 0.0 }
 0x878   : > { %1568 = vadd.xlane.f32.xlu1 %v1567_v7 }
 0x905   : > { %v1569_v8 = vpop.xlane.xlu1 %1568 }
 0x906   : > { %15052 = vrcp.f32 %v1569_v8 }
 0x910   : > { %v15053_v9 = vpop.eup %15052 }
 0x911   : > { %v1571_v11 = vmul.f32 %v15053_v9, %v15051_v6 }
 0x913   : > { %13000 = vmatmul.mubr.msk.f32.vlgmr.msra.gmra.mrb[8].mxu1 %vm762_vm2, %v1571_v11 }
 0x914   : > { %13038 = vmatpush3.msra.mxu1 %v15750_v10  ;;  %13039 = vmatprep.mubr.msk.f32.mxu1 %vm15407_vm0, %v15408_v23 }
 0x915   : > { %14388 = vmatprep.subr.bf16.mxu1 %v15406_v20 }
 0x917   : > { %13040 = vmatmul.mubr.msk.f32.vlgmr.msra.gmra.mrb[10].mxu1 %vm762_vm2, %v1485_v58 }
 0x918   : > { %14390 = vmatpush3.bf16.msra.mxu1 %v15732_v5  ;;  %13046 = vmatprep.mubr.msk.f32.mxu1 %vm15407_vm0, %v15408_v23 }
 0x919   : > { %14391 = vmatprep.subr.bf16.mxu1 %v15406_v20 }
 0x9e6   : > { %v1641_v12 = vpop.f32.mrb[8].mxu1 }
 0x9e7   : > { %v1645_v14 = vmul.f32 %v1641_v12, %v15818_v55  ;;  %v13001_v15 = vpop.f32.mrb[9].mxu1 }
 0x9e9   : > { %13035 = vmatmul.mubr.f32.vlgmr.msra.gmra.mrb[14].mxu0 %v1645_v14 }
 0x9ea   : > { %v1782_v16 = vpop.f32.mrb[10].mxu1  ;;  %13087 = vmatpush3.msra.mxu0 %v15639_v39  ;;  %13088 = vmatprep.mubr.msk.f32.mxu0 %vm15407_vm0, %v15408_v23 }
 0x9eb   : > { %v13041_v17 = vpop.f32.mrb[11].mxu1  ;;  %13126 = vmatprep.subr.mxu0 %v15408_v23 }
 0xabc   : > { %v1712_v18 = vpop.f32.mrb[14].mxu0 }
 0xabd   : > { %v13036_v19 = vpop.f32.mrb[15].mxu0  ;;  %13047 = vmatmul.mubr.msk.f32.vlgmr.msra.gmra.mrb[12].mxu1 %vm1061_vm3, %v1712_v18 }
 0xabe   : > { %14393 = vmatpush3.bf16.msra.mxu1 %v15768_v13  ;;  %13053 = vmatprep.mubr.msk.f32.mxu1 %vm15407_vm0, %v15408_v23 }
 0xabf   : > { %14394 = vmatprep.subr.bf16.mxu1 %v15406_v20 }
 0xac1   : > { %13054 = vmatmul.mubr.msk.f32.vlgmr.msra.gmra.mrb[14].mxu1 %vm1061_vm3, %v1880_v22 }
 0xac2   : > { %14396 = vmatpush3.bf16.msra.mxu1 %v15784_v25  ;;  %13060 = vmatprep.mubr.msk.f32.mxu1 %vm15407_vm0, %v15408_v23 }
 0xac3   : > { %14397 = vmatprep.subr.bf16.mxu1 %v15406_v20 }
 0xb90   : > { %v1855_v28 = vpop.f32.mrb[12].mxu1 }
 0xb91   : > { %v15868_v30 = vadd.f32 %v1855_v28, %v1782_v16  ;;  %v13048_v32 = vpop.f32.mrb[13].mxu1 }
 0xb94   : > { %v1949_v33 = vpop.f32.mrb[14].mxu1 }
 0xb95   : > { %v1950_v34 = vadd.f32 %v15793_v31, %v1949_v33  ;;  %v13055_v35 = vpop.f32.mrb[15].mxu1 }
 0xb97   : > { %v12089_v36 = vmul.f32 -1.442695, %v1950_v34  ;;  %15054 = vtanh.f32 %v1950_v34 }
 0xb99   : > { %15056 = vpow2.f32 %v12089_v36 }
 0xba1   : > { %v15055_v37 = vpop.eup %15054 }
 0xba2   : > { %2034 = vrot.lane.b32.xlu0 %v15055_v37, %s15410_s0 }
 0xba3   : > { %v15057_v38 = vpop.eup %15056 }
 0xba4   : > { %v1956_v40 = vadd.f32 1.0, %v15057_v38 }
 0xba6   : > { %15058 = vrcp.f32 %v1956_v40 }
 0xbb0   : > { %v15059_v41 = vpop.eup %15058 }
 0xbb1   : > { %13061 = vmatmul.mubr.msk.f32.vlgmr.msra.gmra.mrb[16].mxu1 %vm1061_vm3, %v15059_v41 }
 0xbb2   : > { %14399 = vmatpush3.bf16.msra.mxu1 %v15784_v25  ;;  %13067 = vmatprep.mubr.msk.f32.mxu1 %vm15407_vm0, %v15408_v23 }
 0xbb3   : > { %14400 = vmatprep.subr.bf16.mxu1 %v15406_v20 }
 0xc14   : > { %v2035_v42 = vpop.permute.xlu0 %2034 }
 0xc15   : > { %13068 = vmatmul.mubr.msk.f32.vlgmr.msra.gmra.mrb[18].mxu1 %vm1061_vm3, %v2035_v42 }
 0xc16   : > { %14402 = vmatpush3.bf16.msra.mxu1 %v15587_v21  ;;  %13078 = vmatprep.mubr.msk.f32.mxu1 %vm15407_vm0, %v15408_v23 }
 0xc17   : > { %14403 = vmatprep.subr.bf16.mxu1 %v15406_v20 }
 0xc1a   : > { %14405 = vmatpush3.bf16.msra.mxu1 %v15602_v24 }
 0xc1b   : > { %13081 = vmatprep.subr.mxu1 %v15408_v23 }
 0xc1d   : > { %13079 = vmatmul.mubr.msk.f32.vlgmr.msra.gmra.mrb[20].mxu1 %vm688_vm1, %v12092_v43 }
 0xc1e   : > { %13082 = vmatpush3.msra.mxu1 %v15616_v26  ;;  %13083 = vmatprep.mubr.msk.f32.mxu1 %vm15407_vm0, %v15408_v23 }
 0xc1f   : > { %14406 = vmatprep.subr.bf16.mxu1 %v15406_v20 }
 0xc84   : > { %v2029_v45 = vpop.f32.mrb[16].mxu1 }
 0xc85   : > { %v2108_v46 = vmul.f32 %v2029_v45, %v1641_v12  ;;  %v13062_v47 = vpop.f32.mrb[17].mxu1 }
 0xc87   : > { %v2109_v49 = vsub.f32 1.0, %v2108_v46  ;;  %v12103_v46 = vld [vmem:[%s15606_s21 + $0x18] sm:$0xff] }
 0xc89   : > { %v2110_v52 = vmul.f32 %v2109_v49, %v15818_v55 }
 0xce8   : > { %v2104_v50 = vpop.f32.mrb[18].mxu1 }
 0xce9   : > { %v2111_v53 = vmul.f32 %v2104_v50, %v1641_v12  ;;  %v13069_v56 = vpop.f32.mrb[19].mxu1 }
 0xceb   : > { %v15891_v58 = vadd.f32 %v2111_v53, %v2110_v52 }
 0xcf0   : > { %v2184_v59 = vpop.f32.mrb[20].mxu1 }
 0xcf1   : > { %v2185_v61 = vadd.f32 %v15623_v27, %v2184_v59  ;;  %v13080_v62 = vpop.f32.mrb[21].mxu1 }
 0xcf3   : > { %13084 = vmatmul.mubr.msk.f32.vlgmr.msra.gmra.mrb[22].mxu1 %vm762_vm2, %v2185_v61 }
 0xcf4   : > { %14408 = vmatpush3.bf16.msra.mxu1 %v15649_v44  ;;  %13123 = vmatprep.mubr.msk.f32.mxu1 %vm15407_vm0, %v15408_v23 }
 0xcf5   : > { %14409 = vmatprep.subr.bf16.mxu1 %v15406_v20 }
 0xcf8   : > { %14411 = vmatpush3.bf16.msra.mxu1 %v15659_v48 }
 0xcf9   : > { %14412 = vmatprep.subr.bf16.mxu1 %v15406_v20 }
 0xcfc   : > { %14414 = vmatpush3.bf16.msra.mxu1 %v15671_v51 }
 0xcfd   : > { %14415 = vmatprep.subr.bf16.mxu1 %v15406_v20 }
 0xd00   : > { %14417 = vmatpush3.bf16.msra.mxu1 %v15681_v54 }
 0xd01   : > { %14418 = vmatprep.subr.bf16.mxu1 %v15406_v20 }
 0xd04   : > { %14420 = vmatpush3.bf16.msra.mxu1 %v15691_v57 }
 0xd05   : > { %14421 = vmatprep.subr.bf16.mxu1 %v15406_v20 }
 0xd08   : > { %14423 = vmatpush3.bf16.msra.mxu1 %v15701_v60 }
 0xd09   : > { %14424 = vmatprep.subr.bf16.mxu1 %v15406_v20 }
 0xd0c   : > { %14426 = vmatpush3.bf16.msra.mxu1 %v15711_v63 }
 0xd0d   : > { %14427 = vmatprep.subr.bf16.mxu1 %v15406_v20 }
 0xd10   : > { %14429 = vmatpush3.bf16.msra.mxu1 %v15722_v2 }
 0xd11   : > { %13175 = vmatprep.subr.mxu1 %v15408_v23 }
 0xdc6   : > { %v2257_v55 = vpop.f32.mrb[22].mxu1 }
 0xdc7   : > { %v13085_v0 = vpop.f32.mrb[23].mxu1  ;;  %v2261_v1 = vsel %vm762_vm2, %v2257_v55, -inf }
 0xdc8   : > { %2262 = vmax.xlane.f32.xlu0 %v2261_v1 }
 0xe55   : > { %v2263_v3 = vpop.xlane.xlu0 %2262 }
 0xe56   : > { %v2264_v4 = vsub.f32 %v2257_v55, %v2263_v3 }
 0xe58   : > { %v2265_v6 = vmul.f32 1.442695, %v2264_v4 }
 0xe5a   : > { %15060 = vpow2.f32 %v2265_v6 }
 0xe64   : > { %v15061_v7 = vpop.eup %15060 }
 0xe65   : > { %v2267_v8 = vsel %vm762_vm2, %v15061_v7, 0.0 }
 0xe66   : > { %2268 = vadd.xlane.f32.xlu1 %v2267_v8 }
 0xe77   : > { %2579 = vrot.lane.b32.xlu1 %v2185_v61, %s17196_s30 }
 0xef3   : > { %v2269_v9 = vpop.xlane.xlu1 %2268 }
 0xef4   : > { %15062 = vrcp.f32 %v2269_v9 }
 0xef7   : > { %v2580_v28 = vpop.permute.xlu1 %2579 }
 0xefe   : > { %v15063_v11 = vpop.eup %15062 }
 0xeff   : > { %v2271_v12 = vmul.f32 %v15063_v11, %v15061_v7 }
 0xf01   : > { %13089 = vmatmul.mubr.msk.f32.vlgmr.msra.gmra.mrb[16].mxu0 %vm762_vm2, %v2271_v12 }
 0xf02   : > { %13127 = vmatpush3.msra.mxu0 %v15750_v10  ;;  %13128 = vmatprep.mubr.msk.f32.mxu0 %vm15407_vm0, %v15408_v23 }
 0xf03   : > { %14430 = vmatprep.subr.bf16.mxu0 %v15406_v20 }
 0xf05   : > { %13129 = vmatmul.mubr.msk.f32.vlgmr.msra.gmra.mrb[18].mxu0 %vm762_vm2, %v2185_v61 }
 0xf06   : > { %14432 = vmatpush3.bf16.msra.mxu0 %v15732_v5  ;;  %13135 = vmatprep.mubr.msk.f32.mxu0 %vm15407_vm0, %v15408_v23 }
 0xf07   : > { %14433 = vmatprep.subr.bf16.mxu0 %v15406_v20 }
 0xfd4   : > { %v2341_v14 = vpop.f32.mrb[16].mxu0 }
 0xfd5   : > { %v2345_v15 = vmul.f32 %v2341_v14, %v15891_v58  ;;  %v13090_v16 = vpop.f32.mrb[17].mxu0 }
 0xfd7   : > { %13124 = vmatmul.mubr.f32.vlgmr.msra.gmra.mrb[24].mxu1 %v2345_v15 }
 0xfd8   : > { %v2482_v17 = vpop.f32.mrb[18].mxu0  ;;  %13176 = vmatpush3.msra.mxu1 %v15639_v39  ;;  %13177 = vmatprep.mubr.msk.f32.mxu1 %vm15407_vm0, %v15408_v23 }
 0xfd9   : > { %v13130_v18 = vpop.f32.mrb[19].mxu0  ;;  %13215 = vmatprep.subr.mxu1 %v15408_v23 }
0x10aa   : > { %v2412_v19 = vpop.f32.mrb[24].mxu1 }
0x10ab   : > { %v13125_v22 = vpop.f32.mrb[25].mxu1  ;;  %13136 = vmatmul.mubr.msk.f32.vlgmr.msra.gmra.mrb[20].mxu0 %vm1061_vm3, %v2412_v19 }
0x10ac   : > { %14435 = vmatpush3.bf16.msra.mxu0 %v15768_v13  ;;  %13142 = vmatprep.mubr.msk.f32.mxu0 %vm15407_vm0, %v15408_v23 }
0x10ad   : > { %14436 = vmatprep.subr.bf16.mxu0 %v15406_v20 }
0x10af   : > { %13143 = vmatmul.mubr.msk.f32.vlgmr.msra.gmra.mrb[22].mxu0 %vm1061_vm3, %v2580_v28 }
0x10b0   : > { %14438 = vmatpush3.bf16.msra.mxu0 %v15784_v25  ;;  %13149 = vmatprep.mubr.msk.f32.mxu0 %vm15407_vm0, %v15408_v23 }
0x10b1   : > { %14439 = vmatprep.subr.bf16.mxu0 %v15406_v20 }
0x117e   : > { %v2555_v32 = vpop.f32.mrb[20].mxu0 }
0x117f   : > { %v15941_v33 = vadd.f32 %v2555_v32, %v2482_v17  ;;  %v13137_v34 = vpop.f32.mrb[21].mxu0 }
0x1182   : > { %v2649_v35 = vpop.f32.mrb[22].mxu0 }
0x1183   : > { %v2650_v36 = vadd.f32 %v15793_v31, %v2649_v35  ;;  %v13144_v37 = vpop.f32.mrb[23].mxu0 }
0x1185   : > { %v12100_v38 = vmul.f32 -1.442695, %v2650_v36  ;;  %15064 = vtanh.f32 %v2650_v36 }
0x1187   : > { %15066 = vpow2.f32 %v12100_v38 }
0x118f   : > { %v15065_v40 = vpop.eup %15064 }
0x1190   : > { %2734 = vrot.lane.b32.xlu1 %v15065_v40, %s15410_s0 }
0x1191   : > { %v15067_v41 = vpop.eup %15066 }
0x1192   : > { %v2656_v42 = vadd.f32 1.0, %v15067_v41 }
0x1194   : > { %15068 = vrcp.f32 %v2656_v42 }
0x119e   : > { %v15069_v43 = vpop.eup %15068 }
0x119f   : > { %13150 = vmatmul.mubr.msk.f32.vlgmr.msra.gmra.mrb[24].mxu0 %vm1061_vm3, %v15069_v43 }
0x11a0   : > { %14441 = vmatpush3.bf16.msra.mxu0 %v15784_v25  ;;  %13156 = vmatprep.mubr.msk.f32.mxu0 %vm15407_vm0, %v15408_v23 }
0x11a1   : > { %14442 = vmatprep.subr.bf16.mxu0 %v15406_v20 }
0x1202   : > { %v2735_v45 = vpop.permute.xlu1 %2734 }
0x1203   : > { %13157 = vmatmul.mubr.msk.f32.vlgmr.msra.gmra.mrb[26].mxu0 %vm1061_vm3, %v2735_v45 }
0x1204   : > { %14444 = vmatpush3.bf16.msra.mxu0 %v15587_v21  ;;  %13167 = vmatprep.mubr.msk.f32.mxu0 %vm15407_vm0, %v15408_v23 }
0x1205   : > { %14445 = vmatprep.subr.bf16.mxu0 %v15406_v20 }
0x1208   : > { %14447 = vmatpush3.bf16.msra.mxu0 %v15602_v24 }
0x1209   : > { %13170 = vmatprep.subr.mxu0 %v15408_v23 }
0x120b   : > { %13168 = vmatmul.mubr.msk.f32.vlgmr.msra.gmra.mrb[28].mxu0 %vm688_vm1, %v12103_v46 }
0x120c   : > { %13171 = vmatpush3.msra.mxu0 %v15616_v26  ;;  %13172 = vmatprep.mubr.msk.f32.mxu0 %vm15407_vm0, %v15408_v23 }
0x120d   : > { %14448 = vmatprep.subr.bf16.mxu0 %v15406_v20 }
0x1272   : > { %v2729_v47 = vpop.f32.mrb[24].mxu0 }
0x1273   : > { %v2808_v49 = vmul.f32 %v2729_v47, %v2341_v14  ;;  %v13151_v50 = vpop.f32.mrb[25].mxu0 }
0x1274   : > { %v12114_v50 = vld [vmem:[%s15606_s21 + $0x20] sm:$0xff] }
0x1275   : > { %v2809_v52 = vsub.f32 1.0, %v2808_v49 }
0x1277   : > { %v2810_v56 = vmul.f32 %v2809_v52, %v15891_v58 }
0x12d6   : > { %v2804_v53 = vpop.f32.mrb[26].mxu0 }
0x12d7   : > { %v2811_v59 = vmul.f32 %v2804_v53, %v2341_v14  ;;  %v13158_v61 = vpop.f32.mrb[27].mxu0 }
0x12d9   : > { %v15964_v62 = vadd.f32 %v2811_v59, %v2810_v56 }
0x12de   : > { %v2884_v55 = vpop.f32.mrb[28].mxu0 }
0x12df   : > { %v2885_v0 = vadd.f32 %v15623_v27, %v2884_v55  ;;  %v13169_v1 = vpop.f32.mrb[29].mxu0 }
0x12e1   : > { %13173 = vmatmul.mubr.msk.f32.vlgmr.msra.gmra.mrb[30].mxu0 %vm762_vm2, %v2885_v0 }
0x12e2   : > { %14450 = vmatpush3.bf16.msra.mxu0 %v15649_v44  ;;  %13212 = vmatprep.mubr.msk.f32.mxu0 %vm15407_vm0, %v15408_v23 }
0x12e3   : > { %14451 = vmatprep.subr.bf16.mxu0 %v15406_v20 }
0x12e6   : > { %14453 = vmatpush3.bf16.msra.mxu0 %v15659_v48 }
0x12e7   : > { %14454 = vmatprep.subr.bf16.mxu0 %v15406_v20 }
0x12ea   : > { %14456 = vmatpush3.bf16.msra.mxu0 %v15671_v51 }
0x12eb   : > { %14457 = vmatprep.subr.bf16.mxu0 %v15406_v20 }
0x12ee   : > { %14459 = vmatpush3.bf16.msra.mxu0 %v15681_v54 }
0x12ef   : > { %14460 = vmatprep.subr.bf16.mxu0 %v15406_v20 }
0x12f2   : > { %14462 = vmatpush3.bf16.msra.mxu0 %v15691_v57 }
0x12f3   : > { %14463 = vmatprep.subr.bf16.mxu0 %v15406_v20 }
0x12f6   : > { %14465 = vmatpush3.bf16.msra.mxu0 %v15701_v60 }
0x12f7   : > { %14466 = vmatprep.subr.bf16.mxu0 %v15406_v20 }
0x12fa   : > { %14468 = vmatpush3.bf16.msra.mxu0 %v15711_v63 }
0x12fb   : > { %14469 = vmatprep.subr.bf16.mxu0 %v15406_v20 }
0x12fe   : > { %14471 = vmatpush3.bf16.msra.mxu0 %v15722_v2 }
0x12ff   : > { %13264 = vmatprep.subr.mxu0 %v15408_v23 }
0x13b4   : > { %v2957_v58 = vpop.f32.mrb[30].mxu0 }
0x13b5   : > { %v13174_v3 = vpop.f32.mrb[31].mxu0  ;;  %v2961_v4 = vsel %vm762_vm2, %v2957_v58, -inf }
0x13b6   : > { %2962 = vmax.xlane.f32.xlu0 %v2961_v4 }
0x13cc   : > { %3279 = vrot.lane.b32.xlu0 %v2885_v0, %s17196_s30 }
0x1443   : > { %v2963_v6 = vpop.xlane.xlu0 %2962 }
0x1444   : > { %v2964_v7 = vsub.f32 %v2957_v58, %v2963_v6 }
0x1446   : > { %v2965_v8 = vmul.f32 1.442695, %v2964_v7 }
0x1447   : > { %v3280_v34 = vpop.permute.xlu0 %3279 }
0x1448   : > { %15070 = vpow2.f32 %v2965_v8 }
0x1452   : > { %v15071_v9 = vpop.eup %15070 }
0x1453   : > { %v2967_v11 = vsel %vm762_vm2, %v15071_v9, 0.0 }
0x1454   : > { %2968 = vadd.xlane.f32.xlu1 %v2967_v11 }
0x14e1   : > { %v2969_v12 = vpop.xlane.xlu1 %2968 }
0x14e2   : > { %15072 = vrcp.f32 %v2969_v12 }
0x14ec   : > { %v15073_v14 = vpop.eup %15072 }
0x14ed   : > { %v2971_v15 = vmul.f32 %v15073_v14, %v15071_v9 }
0x14ef   : > { %13178 = vmatmul.mubr.msk.f32.vlgmr.msra.gmra.mrb[26].mxu1 %vm762_vm2, %v2971_v15 }
0x14f0   : > { %13216 = vmatpush3.msra.mxu1 %v15750_v10  ;;  %13217 = vmatprep.mubr.msk.f32.mxu1 %vm15407_vm0, %v15408_v23 }
0x14f1   : > { %14472 = vmatprep.subr.bf16.mxu1 %v15406_v20 }
0x14f3   : > { %13218 = vmatmul.mubr.msk.f32.vlgmr.msra.gmra.mrb[28].mxu1 %vm762_vm2, %v2885_v0 }
0x14f4   : > { %14474 = vmatpush3.bf16.msra.mxu1 %v15732_v5  ;;  %13224 = vmatprep.mubr.msk.f32.mxu1 %vm15407_vm0, %v15408_v23 }
0x14f5   : > { %14475 = vmatprep.subr.bf16.mxu1 %v15406_v20 }
0x15c2   : > { %v3041_v16 = vpop.f32.mrb[26].mxu1 }
0x15c3   : > { %v3045_v17 = vmul.f32 %v3041_v16, %v15964_v62  ;;  %v13179_v18 = vpop.f32.mrb[27].mxu1 }
0x15c5   : > { %13213 = vmatmul.mubr.f32.vlgmr.msra.gmra.mrb[32].mxu0 %v3045_v17 }
0x15c6   : > { %v3182_v19 = vpop.f32.mrb[28].mxu1  ;;  %13265 = vmatpush3.msra.mxu0 %v15639_v39  ;;  %13266 = vmatprep.mubr.msk.f32.mxu0 %vm15407_vm0, %v15408_v23 }
0x15c7   : > { %v13219_v22 = vpop.f32.mrb[29].mxu1  ;;  %13304 = vmatprep.subr.mxu0 %v15408_v23 }
0x1698   : > { %v3112_v28 = vpop.f32.mrb[32].mxu0 }
0x1699   : > { %v13214_v32 = vpop.f32.mrb[33].mxu0  ;;  %13225 = vmatmul.mubr.msk.f32.vlgmr.msra.gmra.mrb[30].mxu1 %vm1061_vm3, %v3112_v28 }
0x169a   : > { %14477 = vmatpush3.bf16.msra.mxu1 %v15768_v13  ;;  %13231 = vmatprep.mubr.msk.f32.mxu1 %vm15407_vm0, %v15408_v23 }
0x169b   : > { %14478 = vmatprep.subr.bf16.mxu1 %v15406_v20 }
0x169d   : > { %13232 = vmatmul.mubr.msk.f32.vlgmr.msra.gmra.mrb[32].mxu1 %vm1061_vm3, %v3280_v34 }
0x169e   : > { %14480 = vmatpush3.bf16.msra.mxu1 %v15784_v25  ;;  %13238 = vmatprep.mubr.msk.f32.mxu1 %vm15407_vm0, %v15408_v23 }
0x169f   : > { %14481 = vmatprep.subr.bf16.mxu1 %v15406_v20 }
0x176c   : > { %v3255_v35 = vpop.f32.mrb[30].mxu1 }
0x176d   : > { %v16014_v36 = vadd.f32 %v3255_v35, %v3182_v19  ;;  %v13226_v37 = vpop.f32.mrb[31].mxu1 }
0x1770   : > { %v3349_v38 = vpop.f32.mrb[32].mxu1 }
0x1771   : > { %v3350_v40 = vadd.f32 %v15793_v31, %v3349_v38  ;;  %v13233_v41 = vpop.f32.mrb[33].mxu1 }
0x1773   : > { %v12111_v42 = vmul.f32 -1.442695, %v3350_v40  ;;  %15074 = vtanh.f32 %v3350_v40 }
0x1775   : > { %15076 = vpow2.f32 %v12111_v42 }
0x177d   : > { %v15075_v43 = vpop.eup %15074 }
0x177e   : > { %3434 = vrot.lane.b32.xlu0 %v15075_v43, %s15410_s0 }
0x177f   : > { %v15077_v45 = vpop.eup %15076 }
0x1780   : > { %v3356_v46 = vadd.f32 1.0, %v15077_v45 }
0x1782   : > { %15078 = vrcp.f32 %v3356_v46 }
0x178c   : > { %v15079_v47 = vpop.eup %15078 }
0x178d   : > { %13239 = vmatmul.mubr.msk.f32.vlgmr.msra.gmra.mrb[34].mxu1 %vm1061_vm3, %v15079_v47 }
0x178e   : > { %14483 = vmatpush3.bf16.msra.mxu1 %v15784_v25  ;;  %13245 = vmatprep.mubr.msk.f32.mxu1 %vm15407_vm0, %v15408_v23 }
0x178f   : > { %14484 = vmatprep.subr.bf16.mxu1 %v15406_v20 }
0x17f0   : > { %v3435_v49 = vpop.permute.xlu0 %3434 }
0x17f1   : > { %13246 = vmatmul.mubr.msk.f32.vlgmr.msra.gmra.mrb[36].mxu1 %vm1061_vm3, %v3435_v49  ;;  %v12125_v49 = vld [vmem:[%s15606_s21 + $0x28] sm:$0xff] }
0x17f2   : > { %14486 = vmatpush3.bf16.msra.mxu1 %v15587_v21  ;;  %13256 = vmatprep.mubr.msk.f32.mxu1 %vm15407_vm0, %v15408_v23 }
0x17f3   : > { %14487 = vmatprep.subr.bf16.mxu1 %v15406_v20 }
0x17f6   : > { %14489 = vmatpush3.bf16.msra.mxu1 %v15602_v24 }
0x17f7   : > { %13259 = vmatprep.subr.mxu1 %v15408_v23 }
0x17f9   : > { %13257 = vmatmul.mubr.msk.f32.vlgmr.msra.gmra.mrb[38].mxu1 %vm688_vm1, %v12114_v50  ;;  %v16108_v50 = vld [vmem:[%s17166_s4] sm:$0xff] }
0x17fa   : > { %13260 = vmatpush3.msra.mxu1 %v15616_v26  ;;  %13261 = vmatprep.mubr.msk.f32.mxu1 %vm15407_vm0, %v15408_v23 }
0x17fb   : > { %14490 = vmatprep.subr.bf16.mxu1 %v15406_v20 }
0x1860   : > { %v3429_v52 = vpop.f32.mrb[34].mxu1 }
0x1861   : > { %v3508_v53 = vmul.f32 %v3429_v52, %v3041_v16  ;;  %v13240_v56 = vpop.f32.mrb[35].mxu1 }
0x1863   : > { %v3509_v59 = vsub.f32 1.0, %v3508_v53 }
0x1865   : > { %v3510_v55 = vmul.f32 %v3509_v59, %v15964_v62 }
0x18c4   : > { %v3504_v61 = vpop.f32.mrb[36].mxu1 }
0x18c5   : > { %v3511_v0 = vmul.f32 %v3504_v61, %v3041_v16  ;;  %v13247_v1 = vpop.f32.mrb[37].mxu1 }
0x18c7   : > { %v16037_v58 = vadd.f32 %v3511_v0, %v3510_v55 }
0x18cc   : > { %v3584_v3 = vpop.f32.mrb[38].mxu1 }
0x18cd   : > { %v3585_v4 = vadd.f32 %v15623_v27, %v3584_v3  ;;  %v13258_v26 = vpop.f32.mrb[39].mxu1 }
0x18ce   : > { %v16120_v26 = vld [vmem:[%s17165_s3] ss:$0 sm:$0xff] }
0x18cf   : > { %13262 = vmatmul.mubr.msk.f32.vlgmr.msra.gmra.mrb[40].mxu1 %vm762_vm2, %v3585_v4 }
0x18d0   : > { %14492 = vmatpush3.bf16.msra.mxu1 %v15649_v44  ;;  %13301 = vmatprep.mubr.msk.f32.mxu1 %vm15407_vm0, %v15408_v23 }
0x18d1   : > { %14493 = vmatprep.subr.bf16.mxu1 %v15406_v20 }
0x18d4   : > { %14495 = vmatpush3.bf16.msra.mxu1 %v15659_v48 }
0x18d5   : > { %14496 = vmatprep.subr.bf16.mxu1 %v15406_v20 }
0x18d8   : > { %14498 = vmatpush3.bf16.msra.mxu1 %v15671_v51 }
0x18d9   : > { %14499 = vmatprep.subr.bf16.mxu1 %v15406_v20 }
0x18dc   : > { %14501 = vmatpush3.bf16.msra.mxu1 %v15681_v54 }
0x18dd   : > { %14502 = vmatprep.subr.bf16.mxu1 %v15406_v20 }
0x18e0   : > { %14504 = vmatpush3.bf16.msra.mxu1 %v15691_v57 }
0x18e1   : > { %14505 = vmatprep.subr.bf16.mxu1 %v15406_v20 }
0x18e4   : > { %14507 = vmatpush3.bf16.msra.mxu1 %v15701_v60 }
0x18e5   : > { %14508 = vmatprep.subr.bf16.mxu1 %v15406_v20 }
0x18e8   : > { %14510 = vmatpush3.bf16.msra.mxu1 %v15711_v63 }
0x18e9   : > { %14511 = vmatprep.subr.bf16.mxu1 %v15406_v20 }
0x18ec   : > { %14513 = vmatpush3.bf16.msra.mxu1 %v15722_v2 }
0x18ed   : > { %13353 = vmatprep.subr.mxu1 %v15408_v23 }
0x19a2   : > { %v3657_v27 = vpop.f32.mrb[40].mxu1 }
0x19a3   : > { %v13263_v62 = vpop.f32.mrb[41].mxu1  ;;  %v3661_v6 = vsel %vm762_vm2, %v3657_v27, -inf }
0x19a4   : > { %3662 = vmax.xlane.f32.xlu0 %v3661_v6 }
0x1a31   : > { %v3663_v7 = vpop.xlane.xlu0 %3662 }
0x1a32   : > { %v3664_v8 = vsub.f32 %v3657_v27, %v3663_v7 }
0x1a34   : > { %v3665_v9 = vmul.f32 1.442695, %v3664_v8 }
0x1a36   : > { %15080 = vpow2.f32 %v3665_v9 }
0x1a40   : > { %v15081_v11 = vpop.eup %15080 }
0x1a41   : > { %v3667_v12 = vsel %vm762_vm2, %v15081_v11, 0.0 }
0x1a42   : > { %3668 = vadd.xlane.f32.xlu1 %v3667_v12 }
0x1a53   : > { %3979 = vrot.lane.b32.xlu1 %v3585_v4, %s17196_s30 }
0x1acf   : > { %v3669_v14 = vpop.xlane.xlu1 %3668 }
0x1ad0   : > { %15082 = vrcp.f32 %v3669_v14 }
0x1ad3   : > { %v3980_v34 = vpop.permute.xlu1 %3979 }
0x1ada   : > { %v15083_v15 = vpop.eup %15082 }
0x1adb   : > { %v3671_v16 = vmul.f32 %v15083_v15, %v15081_v11 }
0x1add   : > { %13267 = vmatmul.mubr.msk.f32.vlgmr.msra.gmra.mrb[34].mxu0 %vm762_vm2, %v3671_v16 }
0x1ade   : > { %13305 = vmatpush3.msra.mxu0 %v15750_v10  ;;  %13306 = vmatprep.mubr.msk.f32.mxu0 %vm15407_vm0, %v15408_v23 }
0x1adf   : > { %14514 = vmatprep.subr.bf16.mxu0 %v15406_v20 }
0x1ae1   : > { %13307 = vmatmul.mubr.msk.f32.vlgmr.msra.gmra.mrb[36].mxu0 %vm762_vm2, %v3585_v4 }
0x1ae2   : > { %14516 = vmatpush3.bf16.msra.mxu0 %v15732_v5  ;;  %13313 = vmatprep.mubr.msk.f32.mxu0 %vm15407_vm0, %v15408_v23 }
0x1ae3   : > { %14517 = vmatprep.subr.bf16.mxu0 %v15406_v20 }
0x1bb0   : > { %v3741_v17 = vpop.f32.mrb[34].mxu0 }
0x1bb1   : > { %v3745_v18 = vmul.f32 %v3741_v17, %v16037_v58  ;;  %v13268_v19 = vpop.f32.mrb[35].mxu0 }
0x1bb3   : > { %13302 = vmatmul.mubr.f32.vlgmr.msra.gmra.mrb[42].mxu1 %v3745_v18  ;;  %v16149_v18 = vld [vmem:[%s17168_s6] sm:$0xff] }
0x1bb4   : > { %v3882_v10 = vpop.f32.mrb[36].mxu0  ;;  %13354 = vmatpush3.msra.mxu1 %v15639_v39  ;;  %13355 = vmatprep.mubr.msk.f32.mxu1 %vm15407_vm0, %v15408_v23 }
0x1bb5   : > { %v13308_v22 = vpop.f32.mrb[37].mxu0  ;;  %13393 = vmatprep.subr.mxu1 %v15408_v23 }
0x1c86   : > { %v3812_v28 = vpop.f32.mrb[42].mxu1 }
0x1c87   : > { %v13303_v32 = vpop.f32.mrb[43].mxu1  ;;  %13314 = vmatmul.mubr.msk.f32.vlgmr.msra.gmra.mrb[38].mxu0 %vm1061_vm3, %v3812_v28 }
0x1c88   : > { %14519 = vmatpush3.bf16.msra.mxu0 %v15768_v13  ;;  %13320 = vmatprep.mubr.msk.f32.mxu0 %vm15407_vm0, %v15408_v23  ;;  %v16164_v32 = vld [vmem:[%s17174_s12] sm:$0xff] }
0x1c89   : > { %14520 = vmatprep.subr.bf16.mxu0 %v15406_v20 }
0x1c8b   : > { %13321 = vmatmul.mubr.msk.f32.vlgmr.msra.gmra.mrb[40].mxu0 %vm1061_vm3, %v3980_v34 }
0x1c8c   : > { %14522 = vmatpush3.bf16.msra.mxu0 %v15784_v25  ;;  %13327 = vmatprep.mubr.msk.f32.mxu0 %vm15407_vm0, %v15408_v23 }
0x1c8d   : > { %14523 = vmatprep.subr.bf16.mxu0 %v15406_v20 }
0x1d5a   : > { %v3955_v39 = vpop.f32.mrb[38].mxu0 }
0x1d5b   : > { %v16087_v35 = vadd.f32 %v3955_v39, %v3882_v10  ;;  %v13315_v37 = vpop.f32.mrb[39].mxu0 }
0x1d5e   : > { %v4049_v38 = vpop.f32.mrb[40].mxu0 }
0x1d5f   : > { %v4050_v40 = vadd.f32 %v15793_v31, %v4049_v38  ;;  %v13322_v41 = vpop.f32.mrb[41].mxu0 }
0x1d61   : > { %v12122_v42 = vmul.f32 -1.442695, %v4050_v40  ;;  %15084 = vtanh.f32 %v4050_v40 }
0x1d63   : > { %15086 = vpow2.f32 %v12122_v42 }
0x1d6b   : > { %v15085_v43 = vpop.eup %15084 }
0x1d6c   : > { %4134 = vrot.lane.b32.xlu1 %v15085_v43, %s15410_s0 }
0x1d6d   : > { %v15087_v45 = vpop.eup %15086 }
0x1d6e   : > { %v4056_v46 = vadd.f32 1.0, %v15087_v45  ;;  %v16185_v45 = vld [vmem:[%s17173_s11] ss:$0 sm:$0xff] }
0x1d70   : > { %15088 = vrcp.f32 %v4056_v46 }
0x1d7a   : > { %v15089_v47 = vpop.eup %15088 }
0x1d7b   : > { %13328 = vmatmul.mubr.msk.f32.vlgmr.msra.gmra.mrb[42].mxu0 %vm1061_vm3, %v15089_v47 }
0x1d7c   : > { %14525 = vmatpush3.bf16.msra.mxu0 %v15784_v25  ;;  %13334 = vmatprep.mubr.msk.f32.mxu0 %vm15407_vm0, %v15408_v23 }
0x1d7d   : > { %14526 = vmatprep.subr.bf16.mxu0 %v15406_v20 }
0x1dde   : > { %v4135_v31 = vpop.permute.xlu1 %4134 }
0x1ddf   : > { %13335 = vmatmul.mubr.msk.f32.vlgmr.msra.gmra.mrb[44].mxu0 %vm1061_vm3, %v4135_v31 }
0x1de0   : > { %14528 = vmatpush3.bf16.msra.mxu0 %v15587_v21  ;;  %13345 = vmatprep.mubr.msk.f32.mxu0 %vm15407_vm0, %v15408_v23 }
0x1de1   : > { %14529 = vmatprep.subr.bf16.mxu0 %v15406_v20 }
0x1de4   : > { %14531 = vmatpush3.bf16.msra.mxu0 %v15602_v24 }
0x1de5   : > { %13348 = vmatprep.subr.mxu0 %v15408_v23 }
0x1de7   : > { %13346 = vmatmul.mubr.msk.f32.vlgmr.msra.gmra.mrb[46].mxu0 %vm688_vm1, %v12125_v49 }
0x1de8   : > { %13349 = vmatpush3.msra.mxu0 %v16108_v50  ;;  %13350 = vmatprep.mubr.msk.f32.mxu0 %vm15407_vm0, %v15408_v23 }
0x1de9   : > { %14532 = vmatprep.subr.bf16.mxu0 %v15406_v20 }
0x1e4e   : > { %v4129_v52 = vpop.f32.mrb[42].mxu0 }
0x1e4f   : > { %v4208_v53 = vmul.f32 %v4129_v52, %v3741_v17  ;;  %v13329_v56 = vpop.f32.mrb[43].mxu0 }
0x1e51   : > { %v4209_v59 = vsub.f32 1.0, %v4208_v53 }
0x1e53   : > { %v4210_v55 = vmul.f32 %v4209_v59, %v16037_v58 }
0x1eb2   : > { %v4204_v61 = vpop.f32.mrb[44].mxu0 }
0x1eb3   : > { %v4211_v0 = vmul.f32 %v4204_v61, %v3741_v17  ;;  %v13336_v1 = vpop.f32.mrb[45].mxu0  ;;  %v12136_v61 = vld [vmem:[%s15606_s21 + $0x30] sm:$0xff] }
0x1eb5   : > { %v16115_v3 = vadd.f32 %v4211_v0, %v4210_v55 }
0x1eba   : > { %v4284_v4 = vpop.f32.mrb[46].mxu0 }
0x1ebb   : > { %v4285_v27 = vadd.f32 %v16120_v26, %v4284_v4  ;;  %v13347_v62 = vpop.f32.mrb[47].mxu0 }
0x1ebd   : > { %13351 = vmatmul.mubr.msk.f32.vlgmr.msra.gmra.mrb[48].mxu0 %vm762_vm2, %v4285_v27 }
0x1ebe   : > { %14534 = vmatpush3.bf16.msra.mxu0 %v15649_v44  ;;  %13390 = vmatprep.mubr.msk.f32.mxu0 %vm15407_vm0, %v15408_v23 }
0x1ebf   : > { %14535 = vmatprep.subr.bf16.mxu0 %v15406_v20 }
0x1ec2   : > { %14537 = vmatpush3.bf16.msra.mxu0 %v15659_v48 }
0x1ec3   : > { %14538 = vmatprep.subr.bf16.mxu0 %v15406_v20 }
0x1ec6   : > { %14540 = vmatpush3.bf16.msra.mxu0 %v15671_v51 }
0x1ec7   : > { %14541 = vmatprep.subr.bf16.mxu0 %v15406_v20 }
0x1eca   : > { %14543 = vmatpush3.bf16.msra.mxu0 %v15681_v54 }
0x1ecb   : > { %14544 = vmatprep.subr.bf16.mxu0 %v15406_v20 }
0x1ece   : > { %14546 = vmatpush3.bf16.msra.mxu0 %v15691_v57 }
0x1ecf   : > { %14547 = vmatprep.subr.bf16.mxu0 %v15406_v20 }
0x1ed2   : > { %14549 = vmatpush3.bf16.msra.mxu0 %v15701_v60 }
0x1ed3   : > { %14550 = vmatprep.subr.bf16.mxu0 %v15406_v20 }
0x1ed6   : > { %14552 = vmatpush3.bf16.msra.mxu0 %v15711_v63 }
0x1ed7   : > { %14553 = vmatprep.subr.bf16.mxu0 %v15406_v20 }
0x1eda   : > { %14555 = vmatpush3.bf16.msra.mxu0 %v15722_v2 }
0x1edb   : > { %13442 = vmatprep.subr.mxu0 %v15408_v23 }
0x1f90   : > { %v4357_v58 = vpop.f32.mrb[48].mxu0 }
0x1f91   : > { %v13352_v6 = vpop.f32.mrb[49].mxu0  ;;  %v4361_v7 = vsel %vm762_vm2, %v4357_v58, -inf }
0x1f92   : > { %4362 = vmax.xlane.f32.xlu0 %v4361_v7 }
0x1fa8   : > { %4679 = vrot.lane.b32.xlu0 %v4285_v27, %s17196_s30 }
0x201f   : > { %v4363_v8 = vpop.xlane.xlu0 %4362 }
0x2020   : > { %v4364_v9 = vsub.f32 %v4357_v58, %v4363_v8 }
0x2022   : > { %v4365_v11 = vmul.f32 1.442695, %v4364_v9 }
0x2023   : > { %v4680_v38 = vpop.permute.xlu0 %4679 }
0x2024   : > { %15090 = vpow2.f32 %v4365_v11 }
0x202e   : > { %v15091_v12 = vpop.eup %15090 }
0x202f   : > { %v4367_v14 = vsel %vm762_vm2, %v15091_v12, 0.0 }
0x2030   : > { %4368 = vadd.xlane.f32.xlu1 %v4367_v14 }
0x20bd   : > { %v4369_v15 = vpop.xlane.xlu1 %4368 }
0x20be   : > { %15092 = vrcp.f32 %v4369_v15 }
0x20c8   : > { %v15093_v16 = vpop.eup %15092 }
0x20c9   : > { %v4371_v17 = vmul.f32 %v15093_v16, %v15091_v12 }
0x20cb   : > { %13356 = vmatmul.mubr.msk.f32.vlgmr.msra.gmra.mrb[44].mxu1 %vm762_vm2, %v4371_v17 }
0x20cc   : > { %13394 = vmatpush3.msra.mxu1 %v16149_v18  ;;  %13395 = vmatprep.mubr.msk.f32.mxu1 %vm15407_vm0, %v15408_v23 }
0x20cd   : > { %14556 = vmatprep.subr.bf16.mxu1 %v15406_v20 }
0x20cf   : > { %13396 = vmatmul.mubr.msk.f32.vlgmr.msra.gmra.mrb[46].mxu1 %vm762_vm2, %v4285_v27 }
0x20d0   : > { %14558 = vmatpush3.bf16.msra.mxu1 %v15732_v5  ;;  %13402 = vmatprep.mubr.msk.f32.mxu1 %vm15407_vm0, %v15408_v23 }
0x20d1   : > { %14559 = vmatprep.subr.bf16.mxu1 %v15406_v20 }
0x219e   : > { %v4441_v19 = vpop.f32.mrb[44].mxu1 }
0x219f   : > { %v4445_v10 = vmul.f32 %v4441_v19, %v16115_v3  ;;  %v13357_v22 = vpop.f32.mrb[45].mxu1 }
0x21a1   : > { %13391 = vmatmul.mubr.f32.vlgmr.msra.gmra.mrb[50].mxu0 %v4445_v10 }
0x21a2   : > { %v4582_v28 = vpop.f32.mrb[46].mxu1  ;;  %13443 = vmatpush3.msra.mxu0 %v16164_v32  ;;  %13444 = vmatprep.mubr.msk.f32.mxu0 %vm15407_vm0, %v15408_v23 }
0x21a3   : > { %v13397_v34 = vpop.f32.mrb[47].mxu1  ;;  %13482 = vmatprep.subr.mxu0 %v15408_v23 }
0x2274   : > { %v4512_v39 = vpop.f32.mrb[50].mxu0 }
0x2275   : > { %v13392_v37 = vpop.f32.mrb[51].mxu0  ;;  %13403 = vmatmul.mubr.msk.f32.vlgmr.msra.gmra.mrb[48].mxu1 %vm1061_vm3, %v4512_v39 }
0x2276   : > { %14561 = vmatpush3.bf16.msra.mxu1 %v15768_v13  ;;  %13409 = vmatprep.mubr.msk.f32.mxu1 %vm15407_vm0, %v15408_v23 }
0x2277   : > { %14562 = vmatprep.subr.bf16.mxu1 %v15406_v20 }
0x2279   : > { %13410 = vmatmul.mubr.msk.f32.vlgmr.msra.gmra.mrb[50].mxu1 %vm1061_vm3, %v4680_v38 }
0x227a   : > { %14564 = vmatpush3.bf16.msra.mxu1 %v15784_v25  ;;  %13416 = vmatprep.mubr.msk.f32.mxu1 %vm15407_vm0, %v15408_v23 }
0x227b   : > { %14565 = vmatprep.subr.bf16.mxu1 %v15406_v20 }
0x2348   : > { %v4655_v40 = vpop.f32.mrb[48].mxu1 }
0x2349   : > { %v16180_v41 = vadd.f32 %v4655_v40, %v4582_v28  ;;  %v13404_v42 = vpop.f32.mrb[49].mxu1 }
0x234c   : > { %v4749_v43 = vpop.f32.mrb[50].mxu1 }
0x234d   : > { %v4750_v46 = vadd.f32 %v16185_v45, %v4749_v43  ;;  %v13411_v47 = vpop.f32.mrb[51].mxu1 }
0x234f   : > { %v12133_v31 = vmul.f32 -1.442695, %v4750_v46  ;;  %15094 = vtanh.f32 %v4750_v46 }
0x2351   : > { %15096 = vpow2.f32 %v12133_v31 }
0x2359   : > { %v15095_v49 = vpop.eup %15094 }
0x235a   : > { %4834 = vrot.lane.b32.xlu0 %v15095_v49, %s15410_s0 }
0x235b   : > { %v15097_v52 = vpop.eup %15096 }
0x235c   : > { %v4756_v53 = vadd.f32 1.0, %v15097_v52 }
0x235e   : > { %15098 = vrcp.f32 %v4756_v53 }
0x2368   : > { %v15099_v56 = vpop.eup %15098 }
0x2369   : > { %13417 = vmatmul.mubr.msk.f32.vlgmr.msra.gmra.mrb[52].mxu1 %vm1061_vm3, %v15099_v56 }
0x236a   : > { %14567 = vmatpush3.bf16.msra.mxu1 %v15784_v25  ;;  %13423 = vmatprep.mubr.msk.f32.mxu1 %vm15407_vm0, %v15408_v23 }
0x236b   : > { %14568 = vmatprep.subr.bf16.mxu1 %v15406_v20 }
0x23cc   : > { %v4835_v59 = vpop.permute.xlu0 %4834 }
0x23cd   : > { %13424 = vmatmul.mubr.msk.f32.vlgmr.msra.gmra.mrb[54].mxu1 %vm1061_vm3, %v4835_v59 }
0x23ce   : > { %14570 = vmatpush3.bf16.msra.mxu1 %v15587_v21  ;;  %13434 = vmatprep.mubr.msk.f32.mxu1 %vm15407_vm0, %v15408_v23 }
0x23cf   : > { %14571 = vmatprep.subr.bf16.mxu1 %v15406_v20 }
0x23d2   : > { %14573 = vmatpush3.bf16.msra.mxu1 %v15602_v24 }
0x23d3   : > { %13437 = vmatprep.subr.mxu1 %v15408_v23 }
0x23d5   : > { %13435 = vmatmul.mubr.msk.f32.vlgmr.msra.gmra.mrb[56].mxu1 %vm688_vm1, %v12136_v61 }
0x23d6   : > { %13438 = vmatpush3.msra.mxu1 %v16108_v50  ;;  %13439 = vmatprep.mubr.msk.f32.mxu1 %vm15407_vm0, %v15408_v23 }
0x23d7   : > { %14574 = vmatprep.subr.bf16.mxu1 %v15406_v20 }
0x243c   : > { %v4829_v55 = vpop.f32.mrb[52].mxu1 }
0x243d   : > { %v4908_v0 = vmul.f32 %v4829_v55, %v4441_v19  ;;  %v13418_v1 = vpop.f32.mrb[53].mxu1 }
0x243f   : > { %v4909_v4 = vsub.f32 1.0, %v4908_v0 }
0x2441   : > { %v4910_v62 = vmul.f32 %v4909_v4, %v16115_v3 }
0x24a0   : > { %v4904_v27 = vpop.f32.mrb[54].mxu1 }
0x24a1   : > { %v4911_v58 = vmul.f32 %v4904_v27, %v4441_v19  ;;  %v13425_v6 = vpop.f32.mrb[55].mxu1 }
0x24a3   : > { %v16208_v7 = vadd.f32 %v4911_v58, %v4910_v62  ;;  %v12147_v62 = vld [vmem:[%s15606_s21 + $0x38] sm:$0xff] }
0x24a8   : > { %v4984_v8 = vpop.f32.mrb[56].mxu1 }
0x24a9   : > { %v4985_v9 = vadd.f32 %v16120_v26, %v4984_v8  ;;  %v13436_v11 = vpop.f32.mrb[57].mxu1 }
0x24ab   : > { %13440 = vmatmul.mubr.msk.f32.vlgmr.msra.gmra.mrb[58].mxu1 %vm762_vm2, %v4985_v9 }
0x24ac   : > { %14576 = vmatpush3.bf16.msra.mxu1 %v15649_v44  ;;  %13479 = vmatprep.mubr.msk.f32.mxu1 %vm15407_vm0, %v15408_v23 }
0x24ad   : > { %14577 = vmatprep.subr.bf16.mxu1 %v15406_v20 }
0x24b0   : > { %14579 = vmatpush3.bf16.msra.mxu1 %v15659_v48 }
0x24b1   : > { %14580 = vmatprep.subr.bf16.mxu1 %v15406_v20 }
0x24b4   : > { %14582 = vmatpush3.bf16.msra.mxu1 %v15671_v51 }
0x24b5   : > { %14583 = vmatprep.subr.bf16.mxu1 %v15406_v20 }
0x24b8   : > { %14585 = vmatpush3.bf16.msra.mxu1 %v15681_v54 }
0x24b9   : > { %14586 = vmatprep.subr.bf16.mxu1 %v15406_v20 }
0x24bc   : > { %14588 = vmatpush3.bf16.msra.mxu1 %v15691_v57 }
0x24bd   : > { %14589 = vmatprep.subr.bf16.mxu1 %v15406_v20 }
0x24c0   : > { %14591 = vmatpush3.bf16.msra.mxu1 %v15701_v60 }
0x24c1   : > { %14592 = vmatprep.subr.bf16.mxu1 %v15406_v20 }
0x24c4   : > { %14594 = vmatpush3.bf16.msra.mxu1 %v15711_v63 }
0x24c5   : > { %14595 = vmatprep.subr.bf16.mxu1 %v15406_v20 }
0x24c8   : > { %14597 = vmatpush3.bf16.msra.mxu1 %v15722_v2 }
0x24c9   : > { %13531 = vmatprep.subr.mxu1 %v15408_v23 }
0x257e   : > { %v5057_v3 = vpop.f32.mrb[58].mxu1 }
0x257f   : > { %v13441_v12 = vpop.f32.mrb[59].mxu1  ;;  %v5061_v14 = vsel %vm762_vm2, %v5057_v3, -inf }
0x2580   : > { %5062 = vmax.xlane.f32.xlu0 %v5061_v14 }
0x260d   : > { %v5063_v15 = vpop.xlane.xlu0 %5062 }
0x260e   : > { %v5064_v16 = vsub.f32 %v5057_v3, %v5063_v15 }
0x2610   : > { %v5065_v17 = vmul.f32 1.442695, %v5064_v16 }
0x2612   : > { %15100 = vpow2.f32 %v5065_v17 }
0x261c   : > { %v15101_v19 = vpop.eup %15100 }
0x261d   : > { %v5067_v10 = vsel %vm762_vm2, %v15101_v19, 0.0 }
0x261e   : > { %5068 = vadd.xlane.f32.xlu1 %v5067_v10 }
0x262f   : > { %5379 = vrot.lane.b32.xlu1 %v4985_v9, %s17196_s30 }
0x26ab   : > { %v5069_v22 = vpop.xlane.xlu1 %5068 }
0x26ac   : > { %15102 = vrcp.f32 %v5069_v22 }
0x26af   : > { %v5380_v47 = vpop.permute.xlu1 %5379 }
0x26b6   : > { %v15103_v28 = vpop.eup %15102 }
0x26b7   : > { %v5071_v34 = vmul.f32 %v15103_v28, %v15101_v19 }
0x26b9   : > { %13445 = vmatmul.mubr.msk.f32.vlgmr.msra.gmra.mrb[52].mxu0 %vm762_vm2, %v5071_v34 }
0x26ba   : > { %13483 = vmatpush3.msra.mxu0 %v16149_v18  ;;  %13484 = vmatprep.mubr.msk.f32.mxu0 %vm15407_vm0, %v15408_v23 }
0x26bb   : > { %14598 = vmatprep.subr.bf16.mxu0 %v15406_v20 }
0x26bd   : > { %13485 = vmatmul.mubr.msk.f32.vlgmr.msra.gmra.mrb[54].mxu0 %vm762_vm2, %v4985_v9 }
0x26be   : > { %14600 = vmatpush3.bf16.msra.mxu0 %v15732_v5  ;;  %13491 = vmatprep.mubr.msk.f32.mxu0 %vm15407_vm0, %v15408_v23 }
0x26bf   : > { %14601 = vmatprep.subr.bf16.mxu0 %v15406_v20 }
0x278c   : > { %v5141_v39 = vpop.f32.mrb[52].mxu0 }
0x278d   : > { %v5145_v37 = vmul.f32 %v5141_v39, %v16208_v7  ;;  %v13446_v38 = vpop.f32.mrb[53].mxu0 }
0x278f   : > { %13480 = vmatmul.mubr.f32.vlgmr.msra.gmra.mrb[60].mxu1 %v5145_v37 }
0x2790   : > { %v5282_v40 = vpop.f32.mrb[54].mxu0  ;;  %13532 = vmatpush3.msra.mxu1 %v16164_v32  ;;  %13533 = vmatprep.mubr.msk.f32.mxu1 %vm15407_vm0, %v15408_v23 }
0x2791   : > { %v13486_v42 = vpop.f32.mrb[55].mxu0  ;;  %13571 = vmatprep.subr.mxu1 %v15408_v23 }
0x2862   : > { %v5212_v43 = vpop.f32.mrb[60].mxu1 }
0x2863   : > { %v13481_v46 = vpop.f32.mrb[61].mxu1  ;;  %13492 = vmatmul.mubr.msk.f32.vlgmr.msra.gmra.mrb[56].mxu0 %vm1061_vm3, %v5212_v43 }
0x2864   : > { %14603 = vmatpush3.bf16.msra.mxu0 %v15768_v13  ;;  %13498 = vmatprep.mubr.msk.f32.mxu0 %vm15407_vm0, %v15408_v23 }
0x2865   : > { %14604 = vmatprep.subr.bf16.mxu0 %v15406_v20 }
0x2867   : > { %13499 = vmatmul.mubr.msk.f32.vlgmr.msra.gmra.mrb[58].mxu0 %vm1061_vm3, %v5380_v47 }
0x2868   : > { %14606 = vmatpush3.bf16.msra.mxu0 %v15784_v25  ;;  %13505 = vmatprep.mubr.msk.f32.mxu0 %vm15407_vm0, %v15408_v23 }
0x2869   : > { %14607 = vmatprep.subr.bf16.mxu0 %v15406_v20 }
0x2936   : > { %v5355_v31 = vpop.f32.mrb[56].mxu0 }
0x2937   : > { %v16258_v49 = vadd.f32 %v5355_v31, %v5282_v40  ;;  %v13493_v52 = vpop.f32.mrb[57].mxu0 }
0x293a   : > { %v5449_v53 = vpop.f32.mrb[58].mxu0 }
0x293b   : > { %v5450_v56 = vadd.f32 %v16185_v45, %v5449_v53  ;;  %v13500_v59 = vpop.f32.mrb[59].mxu0 }
0x293d   : > { %v12144_v61 = vmul.f32 -1.442695, %v5450_v56  ;;  %15104 = vtanh.f32 %v5450_v56 }
0x293f   : > { %15106 = vpow2.f32 %v12144_v61 }
0x2947   : > { %v15105_v55 = vpop.eup %15104 }
0x2948   : > { %5534 = vrot.lane.b32.xlu1 %v15105_v55, %s15410_s0 }
0x2949   : > { %v15107_v0 = vpop.eup %15106 }
0x294a   : > { %v5456_v1 = vadd.f32 1.0, %v15107_v0 }
0x294c   : > { %15108 = vrcp.f32 %v5456_v1 }
0x2956   : > { %v15109_v4 = vpop.eup %15108 }
0x2957   : > { %13506 = vmatmul.mubr.msk.f32.vlgmr.msra.gmra.mrb[60].mxu0 %vm1061_vm3, %v15109_v4 }
0x2958   : > { %14609 = vmatpush3.bf16.msra.mxu0 %v15784_v25  ;;  %13512 = vmatprep.mubr.msk.f32.mxu0 %vm15407_vm0, %v15408_v23 }
0x2959   : > { %14610 = vmatprep.subr.bf16.mxu0 %v15406_v20 }
0x29ba   : > { %v5535_v27 = vpop.permute.xlu1 %5534 }
0x29bb   : > { %13513 = vmatmul.mubr.msk.f32.vlgmr.msra.gmra.mrb[62].mxu0 %vm1061_vm3, %v5535_v27 }
0x29bc   : > { %14612 = vmatpush3.bf16.msra.mxu0 %v15587_v21  ;;  %13523 = vmatprep.mubr.msk.f32.mxu0 %vm15407_vm0, %v15408_v23 }
0x29bd   : > { %14613 = vmatprep.subr.bf16.mxu0 %v15406_v20 }
0x29c0   : > { %14615 = vmatpush3.bf16.msra.mxu0 %v15602_v24 }
0x29c1   : > { %13526 = vmatprep.subr.mxu0 %v15408_v23 }
0x29c3   : > { %13524 = vmatmul.mubr.msk.f32.vlgmr.msra.gmra.mrb[64].mxu0 %vm688_vm1, %v12147_v62 }
0x29c4   : > { %13527 = vmatpush3.msra.mxu0 %v16108_v50  ;;  %13528 = vmatprep.mubr.msk.f32.mxu0 %vm15407_vm0, %v15408_v23 }
0x29c5   : > { %14616 = vmatprep.subr.bf16.mxu0 %v15406_v20 }
0x2a2a   : > { %v5529_v58 = vpop.f32.mrb[60].mxu0 }
0x2a2b   : > { %v5608_v6 = vmul.f32 %v5529_v58, %v5141_v39  ;;  %v13507_v8 = vpop.f32.mrb[61].mxu0 }
0x2a2d   : > { %v5609_v9 = vsub.f32 1.0, %v5608_v6 }
0x2a2f   : > { %v5610_v3 = vmul.f32 %v5609_v9, %v16208_v7 }
0x2a8e   : > { %v5604_v11 = vpop.f32.mrb[62].mxu0 }
0x2a8f   : > { %v5611_v12 = vmul.f32 %v5604_v11, %v5141_v39  ;;  %v13514_v14 = vpop.f32.mrb[63].mxu0 }
0x2a91   : > { %v16281_v15 = vadd.f32 %v5611_v12, %v5610_v3  ;;  %v12158_v12 = vld [vmem:[%s15606_s21 + $0x40] sm:$0xff] }
0x2a96   : > { %v5684_v16 = vpop.f32.mrb[64].mxu0 }
0x2a97   : > { %v5685_v17 = vadd.f32 %v16120_v26, %v5684_v16  ;;  %v13525_v19 = vpop.f32.mrb[65].mxu0 }
0x2a99   : > { %13529 = vmatmul.mubr.msk.f32.vlgmr.msra.gmra.mrb[66].mxu0 %vm762_vm2, %v5685_v17 }
0x2a9a   : > { %14618 = vmatpush3.bf16.msra.mxu0 %v15649_v44  ;;  %13568 = vmatprep.mubr.msk.f32.mxu0 %vm15407_vm0, %v15408_v23 }
0x2a9b   : > { %14619 = vmatprep.subr.bf16.mxu0 %v15406_v20 }
0x2a9e   : > { %14621 = vmatpush3.bf16.msra.mxu0 %v15659_v48 }
0x2a9f   : > { %14622 = vmatprep.subr.bf16.mxu0 %v15406_v20 }
0x2aa2   : > { %14624 = vmatpush3.bf16.msra.mxu0 %v15671_v51 }
0x2aa3   : > { %14625 = vmatprep.subr.bf16.mxu0 %v15406_v20 }
0x2aa6   : > { %14627 = vmatpush3.bf16.msra.mxu0 %v15681_v54 }
0x2aa7   : > { %14628 = vmatprep.subr.bf16.mxu0 %v15406_v20 }
0x2aaa   : > { %14630 = vmatpush3.bf16.msra.mxu0 %v15691_v57 }
0x2aab   : > { %14631 = vmatprep.subr.bf16.mxu0 %v15406_v20 }
0x2aae   : > { %14633 = vmatpush3.bf16.msra.mxu0 %v15701_v60 }
0x2aaf   : > { %14634 = vmatprep.subr.bf16.mxu0 %v15406_v20 }
0x2ab2   : > { %14636 = vmatpush3.bf16.msra.mxu0 %v15711_v63 }
0x2ab3   : > { %14637 = vmatprep.subr.bf16.mxu0 %v15406_v20 }
0x2ab6   : > { %14639 = vmatpush3.bf16.msra.mxu0 %v15722_v2 }
0x2ab7   : > { %13620 = vmatprep.subr.mxu0 %v15408_v23 }
0x2b6c   : > { %v5757_v7 = vpop.f32.mrb[66].mxu0 }
0x2b6d   : > { %v13530_v10 = vpop.f32.mrb[67].mxu0  ;;  %v5761_v22 = vsel %vm762_vm2, %v5757_v7, -inf }
0x2b6e   : > { %5762 = vmax.xlane.f32.xlu0 %v5761_v22 }
0x2b84   : > { %6079 = vrot.lane.b32.xlu0 %v5685_v17, %s17196_s30 }
0x2bfb   : > { %v5763_v28 = vpop.xlane.xlu0 %5762 }
0x2bfc   : > { %v5764_v34 = vsub.f32 %v5757_v7, %v5763_v28 }
0x2bfe   : > { %v5765_v39 = vmul.f32 1.442695, %v5764_v34 }
0x2bff   : > { %v6080_v61 = vpop.permute.xlu0 %6079 }
0x2c00   : > { %15110 = vpow2.f32 %v5765_v39 }
0x2c0a   : > { %v15111_v37 = vpop.eup %15110 }
0x2c0b   : > { %v5767_v38 = vsel %vm762_vm2, %v15111_v37, 0.0 }
0x2c0c   : > { %5768 = vadd.xlane.f32.xlu1 %v5767_v38 }
0x2c99   : > { %v5769_v40 = vpop.xlane.xlu1 %5768 }
0x2c9a   : > { %15112 = vrcp.f32 %v5769_v40 }
0x2ca4   : > { %v15113_v42 = vpop.eup %15112 }
0x2ca5   : > { %v5771_v43 = vmul.f32 %v15113_v42, %v15111_v37 }
0x2ca7   : > { %13534 = vmatmul.mubr.msk.f32.vlgmr.msra.gmra.mrb[62].mxu1 %vm762_vm2, %v5771_v43 }
0x2ca8   : > { %13572 = vmatpush3.msra.mxu1 %v16149_v18  ;;  %13573 = vmatprep.mubr.msk.f32.mxu1 %vm15407_vm0, %v15408_v23 }
0x2ca9   : > { %14640 = vmatprep.subr.bf16.mxu1 %v15406_v20 }
0x2cab   : > { %13574 = vmatmul.mubr.msk.f32.vlgmr.msra.gmra.mrb[64].mxu1 %vm762_vm2, %v5685_v17 }
0x2cac   : > { %14642 = vmatpush3.bf16.msra.mxu1 %v15732_v5  ;;  %13580 = vmatprep.mubr.msk.f32.mxu1 %vm15407_vm0, %v15408_v23 }
0x2cad   : > { %14643 = vmatprep.subr.bf16.mxu1 %v15406_v20 }
0x2d7a   : > { %v5841_v46 = vpop.f32.mrb[62].mxu1 }
0x2d7b   : > { %v5845_v47 = vmul.f32 %v5841_v46, %v16281_v15  ;;  %v13535_v31 = vpop.f32.mrb[63].mxu1 }
0x2d7d   : > { %13569 = vmatmul.mubr.f32.vlgmr.msra.gmra.mrb[68].mxu0 %v5845_v47 }
0x2d7e   : > { %v5982_v52 = vpop.f32.mrb[64].mxu1  ;;  %13621 = vmatpush3.msra.mxu0 %v16164_v32  ;;  %13622 = vmatprep.mubr.msk.f32.mxu0 %vm15407_vm0, %v15408_v23 }
0x2d7f   : > { %v13575_v53 = vpop.f32.mrb[65].mxu1  ;;  %13660 = vmatprep.subr.mxu0 %v15408_v23 }
0x2e50   : > { %v5912_v56 = vpop.f32.mrb[68].mxu0 }
0x2e51   : > { %v13570_v59 = vpop.f32.mrb[69].mxu0  ;;  %13581 = vmatmul.mubr.msk.f32.vlgmr.msra.gmra.mrb[66].mxu1 %vm1061_vm3, %v5912_v56 }
0x2e52   : > { %14645 = vmatpush3.bf16.msra.mxu1 %v15768_v13  ;;  %13587 = vmatprep.mubr.msk.f32.mxu1 %vm15407_vm0, %v15408_v23 }
0x2e53   : > { %14646 = vmatprep.subr.bf16.mxu1 %v15406_v20 }
0x2e55   : > { %13588 = vmatmul.mubr.msk.f32.vlgmr.msra.gmra.mrb[68].mxu1 %vm1061_vm3, %v6080_v61 }
0x2e56   : > { %14648 = vmatpush3.bf16.msra.mxu1 %v15784_v25  ;;  %13594 = vmatprep.mubr.msk.f32.mxu1 %vm15407_vm0, %v15408_v23 }
0x2e57   : > { %14649 = vmatprep.subr.bf16.mxu1 %v15406_v20 }
0x2f24   : > { %v6055_v55 = vpop.f32.mrb[66].mxu1 }
0x2f25   : > { %v16331_v0 = vadd.f32 %v6055_v55, %v5982_v52  ;;  %v13582_v1 = vpop.f32.mrb[67].mxu1 }
0x2f28   : > { %v6149_v4 = vpop.f32.mrb[68].mxu1 }
0x2f29   : > { %v6150_v27 = vadd.f32 %v16185_v45, %v6149_v4  ;;  %v13589_v62 = vpop.f32.mrb[69].mxu1 }
0x2f2b   : > { %v12155_v58 = vmul.f32 -1.442695, %v6150_v27  ;;  %15114 = vtanh.f32 %v6150_v27 }
0x2f2d   : > { %15116 = vpow2.f32 %v12155_v58 }
0x2f35   : > { %v15115_v6 = vpop.eup %15114 }
0x2f36   : > { %6234 = vrot.lane.b32.xlu0 %v15115_v6, %s15410_s0 }
0x2f37   : > { %v15117_v8 = vpop.eup %15116 }
0x2f38   : > { %v6156_v9 = vadd.f32 1.0, %v15117_v8 }
0x2f3a   : > { %15118 = vrcp.f32 %v6156_v9 }
0x2f44   : > { %v15119_v11 = vpop.eup %15118 }
0x2f45   : > { %13595 = vmatmul.mubr.msk.f32.vlgmr.msra.gmra.mrb[70].mxu1 %vm1061_vm3, %v15119_v11 }
0x2f46   : > { %14651 = vmatpush3.bf16.msra.mxu1 %v15784_v25  ;;  %13601 = vmatprep.mubr.msk.f32.mxu1 %vm15407_vm0, %v15408_v23 }
0x2f47   : > { %14652 = vmatprep.subr.bf16.mxu1 %v15406_v20 }
0x2fa8   : > { %v6235_v3 = vpop.permute.xlu0 %6234 }
0x2fa9   : > { %13602 = vmatmul.mubr.msk.f32.vlgmr.msra.gmra.mrb[72].mxu1 %vm1061_vm3, %v6235_v3 }
0x2faa   : > { %14654 = vmatpush3.bf16.msra.mxu1 %v15587_v21  ;;  %13612 = vmatprep.mubr.msk.f32.mxu1 %vm15407_vm0, %v15408_v23 }
0x2fab   : > { %14655 = vmatprep.subr.bf16.mxu1 %v15406_v20 }
0x2fae   : > { %14657 = vmatpush3.bf16.msra.mxu1 %v15602_v24 }
0x2faf   : > { %13615 = vmatprep.subr.mxu1 %v15408_v23 }
0x2fb1   : > { %13613 = vmatmul.mubr.msk.f32.vlgmr.msra.gmra.mrb[74].mxu1 %vm688_vm1, %v12158_v12 }
0x2fb2   : > { %13616 = vmatpush3.msra.mxu1 %v16108_v50  ;;  %13617 = vmatprep.mubr.msk.f32.mxu1 %vm15407_vm0, %v15408_v23 }
0x2fb3   : > { %14658 = vmatprep.subr.bf16.mxu1 %v15406_v20 }
0x3018   : > { %v6229_v14 = vpop.f32.mrb[70].mxu1 }
0x3019   : > { %v6308_v16 = vmul.f32 %v6229_v14, %v5841_v46  ;;  %v13596_v17 = vpop.f32.mrb[71].mxu1 }
0x301b   : > { %v6309_v19 = vsub.f32 1.0, %v6308_v16 }
0x301d   : > { %v6310_v10 = vmul.f32 %v6309_v19, %v16281_v15 }
0x307c   : > { %v6304_v7 = vpop.f32.mrb[72].mxu1 }
0x307d   : > { %v6311_v22 = vmul.f32 %v6304_v7, %v5841_v46  ;;  %v13603_v28 = vpop.f32.mrb[73].mxu1 }
0x307e   : > { %v12169_v28 = vld [vmem:[%s15606_s21 + $0x48] sm:$0xff] }
0x307f   : > { %v16354_v34 = vadd.f32 %v6311_v22, %v6310_v10 }
0x3084   : > { %v6384_v39 = vpop.f32.mrb[74].mxu1 }
0x3085   : > { %v6385_v37 = vadd.f32 %v16120_v26, %v6384_v39  ;;  %v13614_v38 = vpop.f32.mrb[75].mxu1 }
0x3087   : > { %13618 = vmatmul.mubr.msk.f32.vlgmr.msra.gmra.mrb[76].mxu1 %vm762_vm2, %v6385_v37 }
0x3088   : > { %14660 = vmatpush3.bf16.msra.mxu1 %v15649_v44  ;;  %13657 = vmatprep.mubr.msk.f32.mxu1 %vm15407_vm0, %v15408_v23 }
0x3089   : > { %14661 = vmatprep.subr.bf16.mxu1 %v15406_v20 }
0x308c   : > { %14663 = vmatpush3.bf16.msra.mxu1 %v15659_v48 }
0x308d   : > { %14664 = vmatprep.subr.bf16.mxu1 %v15406_v20 }
0x3090   : > { %14666 = vmatpush3.bf16.msra.mxu1 %v15671_v51 }
0x3091   : > { %14667 = vmatprep.subr.bf16.mxu1 %v15406_v20 }
0x3094   : > { %14669 = vmatpush3.bf16.msra.mxu1 %v15681_v54 }
0x3095   : > { %14670 = vmatprep.subr.bf16.mxu1 %v15406_v20 }
0x3098   : > { %14672 = vmatpush3.bf16.msra.mxu1 %v15691_v57 }
0x3099   : > { %14673 = vmatprep.subr.bf16.mxu1 %v15406_v20 }
0x309c   : > { %14675 = vmatpush3.bf16.msra.mxu1 %v15701_v60 }
0x309d   : > { %14676 = vmatprep.subr.bf16.mxu1 %v15406_v20 }
0x30a0   : > { %14678 = vmatpush3.bf16.msra.mxu1 %v15711_v63 }
0x30a1   : > { %14679 = vmatprep.subr.bf16.mxu1 %v15406_v20 }
0x30a4   : > { %14681 = vmatpush3.bf16.msra.mxu1 %v15722_v2 }
0x30a5   : > { %13709 = vmatprep.subr.mxu1 %v15408_v23 }
0x315a   : > { %v6457_v15 = vpop.f32.mrb[76].mxu1 }
0x315b   : > { %v13619_v40 = vpop.f32.mrb[77].mxu1  ;;  %v6461_v42 = vsel %vm762_vm2, %v6457_v15, -inf }
0x315c   : > { %6462 = vmax.xlane.f32.xlu0 %v6461_v42 }
0x31e9   : > { %v6463_v43 = vpop.xlane.xlu0 %6462 }
0x31ea   : > { %v6464_v46 = vsub.f32 %v6457_v15, %v6463_v43 }
0x31ec   : > { %v6465_v47 = vmul.f32 1.442695, %v6464_v46 }
0x31ee   : > { %15120 = vpow2.f32 %v6465_v47 }
0x31f8   : > { %v15121_v31 = vpop.eup %15120 }
0x31f9   : > { %v6467_v52 = vsel %vm762_vm2, %v15121_v31, 0.0 }
0x31fa   : > { %6468 = vadd.xlane.f32.xlu1 %v6467_v52 }
0x320b   : > { %6779 = vrot.lane.b32.xlu1 %v6385_v37, %s17196_s30 }
0x3287   : > { %v6469_v53 = vpop.xlane.xlu1 %6468 }
0x3288   : > { %15122 = vrcp.f32 %v6469_v53 }
0x328b   : > { %v6780_v6 = vpop.permute.xlu1 %6779 }
0x3292   : > { %v15123_v56 = vpop.eup %15122 }
0x3293   : > { %v6471_v59 = vmul.f32 %v15123_v56, %v15121_v31 }
0x3295   : > { %13623 = vmatmul.mubr.msk.f32.vlgmr.msra.gmra.mrb[70].mxu0 %vm762_vm2, %v6471_v59 }
0x3296   : > { %13661 = vmatpush3.msra.mxu0 %v16149_v18  ;;  %13662 = vmatprep.mubr.msk.f32.mxu0 %vm15407_vm0, %v15408_v23 }
0x3297   : > { %14682 = vmatprep.subr.bf16.mxu0 %v15406_v20 }
0x3299   : > { %13663 = vmatmul.mubr.msk.f32.vlgmr.msra.gmra.mrb[72].mxu0 %vm762_vm2, %v6385_v37 }
0x329a   : > { %14684 = vmatpush3.bf16.msra.mxu0 %v15732_v5  ;;  %13669 = vmatprep.mubr.msk.f32.mxu0 %vm15407_vm0, %v15408_v23 }
0x329b   : > { %14685 = vmatprep.subr.bf16.mxu0 %v15406_v20 }
0x3368   : > { %v6541_v61 = vpop.f32.mrb[70].mxu0 }
0x3369   : > { %v6545_v55 = vmul.f32 %v6541_v61, %v16354_v34  ;;  %v13624_v1 = vpop.f32.mrb[71].mxu0 }
0x336b   : > { %13658 = vmatmul.mubr.f32.vlgmr.msra.gmra.mrb[78].mxu1 %v6545_v55 }
0x336c   : > { %v6682_v4 = vpop.f32.mrb[72].mxu0  ;;  %13710 = vmatpush3.msra.mxu1 %v16164_v32  ;;  %13711 = vmatprep.mubr.msk.f32.mxu1 %vm15407_vm0, %v15408_v23 }
0x336d   : > { %v13664_v27 = vpop.f32.mrb[73].mxu0  ;;  %13749 = vmatprep.subr.mxu1 %v15408_v23 }
0x343e   : > { %v6612_v62 = vpop.f32.mrb[78].mxu1 }
0x343f   : > { %v13659_v58 = vpop.f32.mrb[79].mxu1  ;;  %13670 = vmatmul.mubr.msk.f32.vlgmr.msra.gmra.mrb[74].mxu0 %vm1061_vm3, %v6612_v62 }
0x3440   : > { %14687 = vmatpush3.bf16.msra.mxu0 %v15768_v13  ;;  %13676 = vmatprep.mubr.msk.f32.mxu0 %vm15407_vm0, %v15408_v23 }
0x3441   : > { %14688 = vmatprep.subr.bf16.mxu0 %v15406_v20 }
0x3443   : > { %13677 = vmatmul.mubr.msk.f32.vlgmr.msra.gmra.mrb[76].mxu0 %vm1061_vm3, %v6780_v6 }
0x3444   : > { %14690 = vmatpush3.bf16.msra.mxu0 %v15784_v25  ;;  %13683 = vmatprep.mubr.msk.f32.mxu0 %vm15407_vm0, %v15408_v23 }
0x3445   : > { %14691 = vmatprep.subr.bf16.mxu0 %v15406_v20 }
0x3512   : > { %v6755_v8 = vpop.f32.mrb[74].mxu0 }
0x3513   : > { %v16404_v9 = vadd.f32 %v6755_v8, %v6682_v4  ;;  %v13671_v11 = vpop.f32.mrb[75].mxu0 }
0x3516   : > { %v6849_v3 = vpop.f32.mrb[76].mxu0 }
0x3517   : > { %v6850_v12 = vadd.f32 %v16185_v45, %v6849_v3  ;;  %v13678_v14 = vpop.f32.mrb[77].mxu0 }
0x3519   : > { %v12166_v16 = vmul.f32 -1.442695, %v6850_v12  ;;  %15124 = vtanh.f32 %v6850_v12 }
0x351b   : > { %15126 = vpow2.f32 %v12166_v16 }
0x3523   : > { %v15125_v17 = vpop.eup %15124 }
0x3524   : > { %6934 = vrot.lane.b32.xlu1 %v15125_v17, %s15410_s0 }
0x3525   : > { %v15127_v19 = vpop.eup %15126 }
0x3526   : > { %v6856_v7 = vadd.f32 1.0, %v15127_v19 }
0x3528   : > { %15128 = vrcp.f32 %v6856_v7 }
0x3532   : > { %v15129_v10 = vpop.eup %15128 }
0x3533   : > { %13684 = vmatmul.mubr.msk.f32.vlgmr.msra.gmra.mrb[78].mxu0 %vm1061_vm3, %v15129_v10 }
0x3534   : > { %14693 = vmatpush3.bf16.msra.mxu0 %v15784_v25  ;;  %13690 = vmatprep.mubr.msk.f32.mxu0 %vm15407_vm0, %v15408_v23 }
0x3535   : > { %14694 = vmatprep.subr.bf16.mxu0 %v15406_v20 }
0x3596   : > { %v6935_v22 = vpop.permute.xlu1 %6934 }
0x3597   : > { %13691 = vmatmul.mubr.msk.f32.vlgmr.msra.gmra.mrb[80].mxu0 %vm1061_vm3, %v6935_v22 }
0x3598   : > { %14696 = vmatpush3.bf16.msra.mxu0 %v15587_v21  ;;  %13701 = vmatprep.mubr.msk.f32.mxu0 %vm15407_vm0, %v15408_v23 }
0x3599   : > { %14697 = vmatprep.subr.bf16.mxu0 %v15406_v20 }
0x359c   : > { %14699 = vmatpush3.bf16.msra.mxu0 %v15602_v24 }
0x359d   : > { %13704 = vmatprep.subr.mxu0 %v15408_v23 }
0x359f   : > { %13702 = vmatmul.mubr.msk.f32.vlgmr.msra.gmra.mrb[82].mxu0 %vm688_vm1, %v12169_v28 }
0x35a0   : > { %13705 = vmatpush3.msra.mxu0 %v16108_v50  ;;  %13706 = vmatprep.mubr.msk.f32.mxu0 %vm15407_vm0, %v15408_v23 }
0x35a1   : > { %14700 = vmatprep.subr.bf16.mxu0 %v15406_v20 }
0x3606   : > { %v6929_v39 = vpop.f32.mrb[78].mxu0 }
0x3607   : > { %v7008_v37 = vmul.f32 %v6929_v39, %v6541_v61  ;;  %v13685_v38 = vpop.f32.mrb[79].mxu0 }
0x3609   : > { %v7009_v15 = vsub.f32 1.0, %v7008_v37 }
0x360b   : > { %v7010_v42 = vmul.f32 %v7009_v15, %v16354_v34  ;;  %v12180_v15 = vld [vmem:[%s15606_s21 + $0x50] sm:$0xff] }
0x366a   : > { %v7004_v40 = vpop.f32.mrb[80].mxu0 }
0x366b   : > { %v7011_v43 = vmul.f32 %v7004_v40, %v6541_v61  ;;  %v13692_v46 = vpop.f32.mrb[81].mxu0  ;;  %v16498_v40 = vld [vmem:[%s17166_s4] sm:$0xff] }
0x366d   : > { %v16427_v47 = vadd.f32 %v7011_v43, %v7010_v42 }
0x3672   : > { %v7084_v31 = vpop.f32.mrb[82].mxu0 }
0x3673   : > { %v7085_v52 = vadd.f32 %v16120_v26, %v7084_v31  ;;  %v13703_v50 = vpop.f32.mrb[83].mxu0 }
0x3675   : > { %13707 = vmatmul.mubr.msk.f32.vlgmr.msra.gmra.mrb[84].mxu0 %vm762_vm2, %v7085_v52 }
0x3676   : > { %14702 = vmatpush3.bf16.msra.mxu0 %v15649_v44  ;;  %13746 = vmatprep.mubr.msk.f32.mxu0 %vm15407_vm0, %v15408_v23 }
0x3677   : > { %14703 = vmatprep.subr.bf16.mxu0 %v15406_v20 }
0x367a   : > { %14705 = vmatpush3.bf16.msra.mxu0 %v15659_v48 }
0x367b   : > { %14706 = vmatprep.subr.bf16.mxu0 %v15406_v20 }
0x367e   : > { %14708 = vmatpush3.bf16.msra.mxu0 %v15671_v51 }
0x367f   : > { %14709 = vmatprep.subr.bf16.mxu0 %v15406_v20 }
0x3682   : > { %14711 = vmatpush3.bf16.msra.mxu0 %v15681_v54 }
0x3683   : > { %14712 = vmatprep.subr.bf16.mxu0 %v15406_v20 }
0x3686   : > { %14714 = vmatpush3.bf16.msra.mxu0 %v15691_v57 }
0x3687   : > { %14715 = vmatprep.subr.bf16.mxu0 %v15406_v20 }
0x368a   : > { %14717 = vmatpush3.bf16.msra.mxu0 %v15701_v60 }
0x368b   : > { %14718 = vmatprep.subr.bf16.mxu0 %v15406_v20 }
0x368e   : > { %14720 = vmatpush3.bf16.msra.mxu0 %v15711_v63 }
0x368f   : > { %14721 = vmatprep.subr.bf16.mxu0 %v15406_v20 }
0x3692   : > { %14723 = vmatpush3.bf16.msra.mxu0 %v15722_v2 }
0x3693   : > { %13798 = vmatprep.subr.mxu0 %v15408_v23 }
0x3748   : > { %v7157_v26 = vpop.f32.mrb[84].mxu0 }
0x3749   : > { %v13708_v34 = vpop.f32.mrb[85].mxu0  ;;  %v7161_v53 = vsel %vm762_vm2, %v7157_v26, -inf }
0x374a   : > { %7162 = vmax.xlane.f32.xlu0 %v7161_v53 }
0x3760   : > { %7479 = vrot.lane.b32.xlu0 %v7085_v52, %s17196_s30 }
0x37d7   : > { %v7163_v56 = vpop.xlane.xlu0 %7162 }
0x37d8   : > { %v7164_v59 = vsub.f32 %v7157_v26, %v7163_v56 }
0x37da   : > { %v7165_v61 = vmul.f32 1.442695, %v7164_v59  ;;  %v16510_v59 = vld [vmem:[%s17165_s3] ss:$0 sm:$0xff] }
0x37db   : > { %v7480_v14 = vpop.permute.xlu0 %7479 }
0x37dc   : > { %15130 = vpow2.f32 %v7165_v61 }
0x37e6   : > { %v15131_v55 = vpop.eup %15130 }
0x37e7   : > { %v7167_v1 = vsel %vm762_vm2, %v15131_v55, 0.0 }
0x37e8   : > { %7168 = vadd.xlane.f32.xlu1 %v7167_v1 }
0x3875   : > { %v7169_v4 = vpop.xlane.xlu1 %7168 }
0x3876   : > { %15132 = vrcp.f32 %v7169_v4 }
0x3880   : > { %v15133_v27 = vpop.eup %15132 }
0x3881   : > { %v7171_v62 = vmul.f32 %v15133_v27, %v15131_v55 }
0x3883   : > { %13712 = vmatmul.mubr.msk.f32.vlgmr.msra.gmra.mrb[80].mxu1 %vm762_vm2, %v7171_v62 }
0x3884   : > { %13750 = vmatpush3.msra.mxu1 %v16149_v18  ;;  %13751 = vmatprep.mubr.msk.f32.mxu1 %vm15407_vm0, %v15408_v23 }
0x3885   : > { %14724 = vmatprep.subr.bf16.mxu1 %v15406_v20 }
0x3887   : > { %13752 = vmatmul.mubr.msk.f32.vlgmr.msra.gmra.mrb[82].mxu1 %vm762_vm2, %v7085_v52 }
0x3888   : > { %14726 = vmatpush3.bf16.msra.mxu1 %v15732_v5  ;;  %13758 = vmatprep.mubr.msk.f32.mxu1 %vm15407_vm0, %v15408_v23 }
0x3889   : > { %14727 = vmatprep.subr.bf16.mxu1 %v15406_v20 }
0x3956   : > { %v7241_v58 = vpop.f32.mrb[80].mxu1 }
0x3957   : > { %v7245_v6 = vmul.f32 %v7241_v58, %v16427_v47  ;;  %v13713_v8 = vpop.f32.mrb[81].mxu1 }
0x3959   : > { %13747 = vmatmul.mubr.f32.vlgmr.msra.gmra.mrb[86].mxu0 %v7245_v6 }
0x395a   : > { %v7382_v18 = vpop.f32.mrb[82].mxu1  ;;  %13799 = vmatpush3.msra.mxu0 %v16164_v32  ;;  %13800 = vmatprep.mubr.msk.f32.mxu0 %vm15407_vm0, %v15408_v23 }
0x395b   : > { %v13753_v11 = vpop.f32.mrb[83].mxu1  ;;  %13838 = vmatprep.subr.mxu0 %v15408_v23 }
0x3a2c   : > { %v7312_v3 = vpop.f32.mrb[86].mxu0 }
0x3a2d   : > { %v13748_v12 = vpop.f32.mrb[87].mxu0  ;;  %13759 = vmatmul.mubr.msk.f32.vlgmr.msra.gmra.mrb[84].mxu1 %vm1061_vm3, %v7312_v3 }
0x3a2e   : > { %14729 = vmatpush3.bf16.msra.mxu1 %v15768_v13  ;;  %13765 = vmatprep.mubr.msk.f32.mxu1 %vm15407_vm0, %v15408_v23  ;;  %v16539_v12 = vld [vmem:[%s17168_s6] sm:$0xff] }
0x3a2f   : > { %14730 = vmatprep.subr.bf16.mxu1 %v15406_v20 }
0x3a31   : > { %13766 = vmatmul.mubr.msk.f32.vlgmr.msra.gmra.mrb[86].mxu1 %vm1061_vm3, %v7480_v14 }
0x3a32   : > { %14732 = vmatpush3.bf16.msra.mxu1 %v15784_v25  ;;  %13772 = vmatprep.mubr.msk.f32.mxu1 %vm15407_vm0, %v15408_v23 }
0x3a33   : > { %14733 = vmatprep.subr.bf16.mxu1 %v15406_v20 }
0x3b00   : > { %v7455_v32 = vpop.f32.mrb[84].mxu1 }
0x3b01   : > { %v16477_v16 = vadd.f32 %v7455_v32, %v7382_v18  ;;  %v13760_v17 = vpop.f32.mrb[85].mxu1 }
0x3b04   : > { %v7549_v19 = vpop.f32.mrb[86].mxu1 }
0x3b05   : > { %v7550_v7 = vadd.f32 %v16185_v45, %v7549_v19  ;;  %v13767_v10 = vpop.f32.mrb[87].mxu1 }
0x3b07   : > { %v12177_v22 = vmul.f32 -1.442695, %v7550_v7  ;;  %15134 = vtanh.f32 %v7550_v7  ;;  %v16554_v7 = vld [vmem:[%s17174_s12] sm:$0xff] }
0x3b09   : > { %15136 = vpow2.f32 %v12177_v22 }
0x3b11   : > { %v15135_v28 = vpop.eup %15134 }
0x3b12   : > { %7634 = vrot.lane.b32.xlu0 %v15135_v28, %s15410_s0 }
0x3b13   : > { %v15137_v39 = vpop.eup %15136 }
0x3b14   : > { %v7556_v37 = vadd.f32 1.0, %v15137_v39 }
0x3b16   : > { %15138 = vrcp.f32 %v7556_v37 }
0x3b20   : > { %v15139_v38 = vpop.eup %15138 }
0x3b21   : > { %13773 = vmatmul.mubr.msk.f32.vlgmr.msra.gmra.mrb[88].mxu1 %vm1061_vm3, %v15139_v38 }
0x3b22   : > { %14735 = vmatpush3.bf16.msra.mxu1 %v15784_v25  ;;  %13779 = vmatprep.mubr.msk.f32.mxu1 %vm15407_vm0, %v15408_v23 }
0x3b23   : > { %14736 = vmatprep.subr.bf16.mxu1 %v15406_v20 }
0x3b84   : > { %v7635_v45 = vpop.permute.xlu0 %7634 }
0x3b85   : > { %13780 = vmatmul.mubr.msk.f32.vlgmr.msra.gmra.mrb[90].mxu1 %vm1061_vm3, %v7635_v45 }
0x3b86   : > { %14738 = vmatpush3.bf16.msra.mxu1 %v15587_v21  ;;  %13790 = vmatprep.mubr.msk.f32.mxu1 %vm15407_vm0, %v15408_v23 }
0x3b87   : > { %14739 = vmatprep.subr.bf16.mxu1 %v15406_v20 }
0x3b8a   : > { %14741 = vmatpush3.bf16.msra.mxu1 %v15602_v24 }
0x3b8b   : > { %13793 = vmatprep.subr.mxu1 %v15408_v23 }
0x3b8d   : > { %13791 = vmatmul.mubr.msk.f32.vlgmr.msra.gmra.mrb[92].mxu1 %vm688_vm1, %v12180_v15 }
0x3b8e   : > { %13794 = vmatpush3.msra.mxu1 %v16498_v40  ;;  %13795 = vmatprep.mubr.msk.f32.mxu1 %vm15407_vm0, %v15408_v23 }
0x3b8f   : > { %14742 = vmatprep.subr.bf16.mxu1 %v15406_v20 }
0x3bf4   : > { %v7629_v42 = vpop.f32.mrb[88].mxu1 }
0x3bf5   : > { %v7708_v43 = vmul.f32 %v7629_v42, %v7241_v58  ;;  %v13774_v46 = vpop.f32.mrb[89].mxu1  ;;  %v16575_v42 = vld [vmem:[%s17173_s11] ss:$0 sm:$0xff] }
0x3bf7   : > { %v7709_v31 = vsub.f32 1.0, %v7708_v43 }
0x3bf9   : > { %v7710_v50 = vmul.f32 %v7709_v31, %v16427_v47 }
0x3c58   : > { %v7704_v52 = vpop.f32.mrb[90].mxu1 }
0x3c59   : > { %v7711_v26 = vmul.f32 %v7704_v52, %v7241_v58  ;;  %v13781_v34 = vpop.f32.mrb[91].mxu1 }
0x3c5b   : > { %v16505_v53 = vadd.f32 %v7711_v26, %v7710_v50 }
0x3c60   : > { %v7784_v56 = vpop.f32.mrb[92].mxu1 }
0x3c61   : > { %v7785_v61 = vadd.f32 %v16510_v59, %v7784_v56  ;;  %v13792_v55 = vpop.f32.mrb[93].mxu1 }
0x3c63   : > { %13796 = vmatmul.mubr.msk.f32.vlgmr.msra.gmra.mrb[94].mxu1 %vm762_vm2, %v7785_v61 }
0x3c64   : > { %14744 = vmatpush3.bf16.msra.mxu1 %v15649_v44  ;;  %13835 = vmatprep.mubr.msk.f32.mxu1 %vm15407_vm0, %v15408_v23 }
0x3c65   : > { %14745 = vmatprep.subr.bf16.mxu1 %v15406_v20 }
0x3c68   : > { %14747 = vmatpush3.bf16.msra.mxu1 %v15659_v48 }
0x3c69   : > { %14748 = vmatprep.subr.bf16.mxu1 %v15406_v20 }
0x3c6c   : > { %14750 = vmatpush3.bf16.msra.mxu1 %v15671_v51 }
0x3c6d   : > { %14751 = vmatprep.subr.bf16.mxu1 %v15406_v20 }
0x3c70   : > { %14753 = vmatpush3.bf16.msra.mxu1 %v15681_v54 }
0x3c71   : > { %14754 = vmatprep.subr.bf16.mxu1 %v15406_v20 }
0x3c74   : > { %14756 = vmatpush3.bf16.msra.mxu1 %v15691_v57 }
0x3c75   : > { %14757 = vmatprep.subr.bf16.mxu1 %v15406_v20 }
0x3c78   : > { %14759 = vmatpush3.bf16.msra.mxu1 %v15701_v60 }
0x3c79   : > { %14760 = vmatprep.subr.bf16.mxu1 %v15406_v20 }
0x3c7c   : > { %14762 = vmatpush3.bf16.msra.mxu1 %v15711_v63 }
0x3c7d   : > { %14763 = vmatprep.subr.bf16.mxu1 %v15406_v20 }
0x3c80   : > { %14765 = vmatpush3.bf16.msra.mxu1 %v15722_v2 }
0x3c81   : > { %13887 = vmatprep.subr.mxu1 %v15408_v23 }
0x3d36   : > { %v7857_v47 = vpop.f32.mrb[94].mxu1 }
0x3d37   : > { %v13797_v1 = vpop.f32.mrb[95].mxu1  ;;  %v7861_v4 = vsel %vm762_vm2, %v7857_v47, -inf }
0x3d38   : > { %7862 = vmax.xlane.f32.xlu0 %v7861_v4 }
0x3dc5   : > { %v7863_v27 = vpop.xlane.xlu0 %7862 }
0x3dc6   : > { %v7864_v62 = vsub.f32 %v7857_v47, %v7863_v27 }
0x3dc8   : > { %v7865_v58 = vmul.f32 1.442695, %v7864_v62 }
0x3dca   : > { %15140 = vpow2.f32 %v7865_v58 }
0x3dd4   : > { %v15141_v6 = vpop.eup %15140 }
0x3dd5   : > { %v7867_v8 = vsel %vm762_vm2, %v15141_v6, 0.0 }
0x3dd6   : > { %7868 = vadd.xlane.f32.xlu1 %v7867_v8 }
0x3de7   : > { %8179 = vrot.lane.b32.xlu1 %v7785_v61, %s17196_s30 }
0x3e63   : > { %v7869_v18 = vpop.xlane.xlu1 %7868 }
0x3e64   : > { %15142 = vrcp.f32 %v7869_v18 }
0x3e67   : > { %v8180_v39 = vpop.permute.xlu1 %8179 }
0x3e6e   : > { %v15143_v11 = vpop.eup %15142 }
0x3e6f   : > { %v7871_v3 = vmul.f32 %v15143_v11, %v15141_v6 }
0x3e71   : > { %13801 = vmatmul.mubr.msk.f32.vlgmr.msra.gmra.mrb[88].mxu0 %vm762_vm2, %v7871_v3 }
0x3e72   : > { %13839 = vmatpush3.msra.mxu0 %v16539_v12  ;;  %13840 = vmatprep.mubr.msk.f32.mxu0 %vm15407_vm0, %v15408_v23 }
0x3e73   : > { %14766 = vmatprep.subr.bf16.mxu0 %v15406_v20 }
0x3e75   : > { %13841 = vmatmul.mubr.msk.f32.vlgmr.msra.gmra.mrb[90].mxu0 %vm762_vm2, %v7785_v61  ;;  %v12191_v61 = vld [vmem:[%s15606_s21 + $0x58] sm:$0xff] }
0x3e76   : > { %14768 = vmatpush3.bf16.msra.mxu0 %v15732_v5  ;;  %13847 = vmatprep.mubr.msk.f32.mxu0 %vm15407_vm0, %v15408_v23 }
0x3e77   : > { %14769 = vmatprep.subr.bf16.mxu0 %v15406_v20 }
0x3f44   : > { %v7941_v14 = vpop.f32.mrb[88].mxu0 }
0x3f45   : > { %v7945_v32 = vmul.f32 %v7941_v14, %v16505_v53  ;;  %v13802_v17 = vpop.f32.mrb[89].mxu0 }
0x3f47   : > { %13836 = vmatmul.mubr.f32.vlgmr.msra.gmra.mrb[96].mxu1 %v7945_v32 }
0x3f48   : > { %v8082_v19 = vpop.f32.mrb[90].mxu0  ;;  %13888 = vmatpush3.msra.mxu1 %v16554_v7  ;;  %13889 = vmatprep.mubr.msk.f32.mxu1 %vm15407_vm0, %v15408_v23 }
0x3f49   : > { %v13842_v10 = vpop.f32.mrb[91].mxu0  ;;  %13927 = vmatprep.subr.mxu1 %v15408_v23 }
0x401a   : > { %v8012_v22 = vpop.f32.mrb[96].mxu1 }
0x401b   : > { %v13837_v28 = vpop.f32.mrb[97].mxu1  ;;  %13848 = vmatmul.mubr.msk.f32.vlgmr.msra.gmra.mrb[92].mxu0 %vm1061_vm3, %v8012_v22 }
0x401c   : > { %14771 = vmatpush3.bf16.msra.mxu0 %v15768_v13  ;;  %13854 = vmatprep.mubr.msk.f32.mxu0 %vm15407_vm0, %v15408_v23 }
0x401d   : > { %14772 = vmatprep.subr.bf16.mxu0 %v15406_v20 }
0x401f   : > { %13855 = vmatmul.mubr.msk.f32.vlgmr.msra.gmra.mrb[94].mxu0 %vm1061_vm3, %v8180_v39 }
0x4020   : > { %14774 = vmatpush3.bf16.msra.mxu0 %v15784_v25  ;;  %13861 = vmatprep.mubr.msk.f32.mxu0 %vm15407_vm0, %v15408_v23 }
0x4021   : > { %14775 = vmatprep.subr.bf16.mxu0 %v15406_v20 }
0x40ee   : > { %v8155_v37 = vpop.f32.mrb[92].mxu0 }
0x40ef   : > { %v16570_v38 = vadd.f32 %v8155_v37, %v8082_v19  ;;  %v13849_v45 = vpop.f32.mrb[93].mxu0 }
0x40f2   : > { %v8249_v15 = vpop.f32.mrb[94].mxu0 }
0x40f3   : > { %v8250_v43 = vadd.f32 %v16575_v42, %v8249_v15  ;;  %v13856_v46 = vpop.f32.mrb[95].mxu0 }
0x40f5   : > { %v12188_v31 = vmul.f32 -1.442695, %v8250_v43  ;;  %15144 = vtanh.f32 %v8250_v43 }
0x40f7   : > { %15146 = vpow2.f32 %v12188_v31 }
0x40ff   : > { %v15145_v52 = vpop.eup %15144 }
0x4100   : > { %8334 = vrot.lane.b32.xlu1 %v15145_v52, %s15410_s0 }
0x4101   : > { %v15147_v50 = vpop.eup %15146 }
0x4102   : > { %v8256_v26 = vadd.f32 1.0, %v15147_v50 }
0x4104   : > { %15148 = vrcp.f32 %v8256_v26 }
0x410e   : > { %v15149_v34 = vpop.eup %15148 }
0x410f   : > { %13862 = vmatmul.mubr.msk.f32.vlgmr.msra.gmra.mrb[96].mxu0 %vm1061_vm3, %v15149_v34 }
0x4110   : > { %14777 = vmatpush3.bf16.msra.mxu0 %v15784_v25  ;;  %13868 = vmatprep.mubr.msk.f32.mxu0 %vm15407_vm0, %v15408_v23 }
0x4111   : > { %14778 = vmatprep.subr.bf16.mxu0 %v15406_v20 }
0x4172   : > { %v8335_v56 = vpop.permute.xlu1 %8334 }
0x4173   : > { %13869 = vmatmul.mubr.msk.f32.vlgmr.msra.gmra.mrb[98].mxu0 %vm1061_vm3, %v8335_v56 }
0x4174   : > { %14780 = vmatpush3.bf16.msra.mxu0 %v15587_v21  ;;  %13879 = vmatprep.mubr.msk.f32.mxu0 %vm15407_vm0, %v15408_v23 }
0x4175   : > { %14781 = vmatprep.subr.bf16.mxu0 %v15406_v20 }
0x4178   : > { %14783 = vmatpush3.bf16.msra.mxu0 %v15602_v24 }
0x4179   : > { %13882 = vmatprep.subr.mxu0 %v15408_v23 }
0x417b   : > { %13880 = vmatmul.mubr.msk.f32.vlgmr.msra.gmra.mrb[100].mxu0 %vm688_vm1, %v12191_v61 }
0x417c   : > { %13883 = vmatpush3.msra.mxu0 %v16498_v40  ;;  %13884 = vmatprep.mubr.msk.f32.mxu0 %vm15407_vm0, %v15408_v23 }
0x417d   : > { %14784 = vmatprep.subr.bf16.mxu0 %v15406_v20 }
0x41e2   : > { %v8329_v55 = vpop.f32.mrb[96].mxu0 }
0x41e3   : > { %v8408_v47 = vmul.f32 %v8329_v55, %v7941_v14  ;;  %v13863_v1 = vpop.f32.mrb[97].mxu0 }
0x41e5   : > { %v8409_v4 = vsub.f32 1.0, %v8408_v47 }
0x41e7   : > { %v8410_v62 = vmul.f32 %v8409_v4, %v16505_v53 }
0x4246   : > { %v8404_v27 = vpop.f32.mrb[98].mxu0 }
0x4247   : > { %v8411_v58 = vmul.f32 %v8404_v27, %v7941_v14  ;;  %v13870_v6 = vpop.f32.mrb[99].mxu0 }
0x4249   : > { %v16598_v8 = vadd.f32 %v8411_v58, %v8410_v62 }
0x424e   : > { %v8484_v18 = vpop.f32.mrb[100].mxu0 }
0x424f   : > { %v8485_v11 = vadd.f32 %v16510_v59, %v8484_v18  ;;  %v13881_v3 = vpop.f32.mrb[101].mxu0 }
0x4250   : > { %v12202_v3 = vld [vmem:[%s15606_s21 + $0x60] sm:$0xff] }
0x4251   : > { %13885 = vmatmul.mubr.msk.f32.vlgmr.msra.gmra.mrb[102].mxu0 %vm762_vm2, %v8485_v11 }
0x4252   : > { %14786 = vmatpush3.bf16.msra.mxu0 %v15649_v44  ;;  %13924 = vmatprep.mubr.msk.f32.mxu0 %vm15407_vm0, %v15408_v23 }
0x4253   : > { %14787 = vmatprep.subr.bf16.mxu0 %v15406_v20 }
0x4256   : > { %14789 = vmatpush3.bf16.msra.mxu0 %v15659_v48 }
0x4257   : > { %14790 = vmatprep.subr.bf16.mxu0 %v15406_v20 }
0x425a   : > { %14792 = vmatpush3.bf16.msra.mxu0 %v15671_v51 }
0x425b   : > { %14793 = vmatprep.subr.bf16.mxu0 %v15406_v20 }
0x425e   : > { %14795 = vmatpush3.bf16.msra.mxu0 %v15681_v54 }
0x425f   : > { %14796 = vmatprep.subr.bf16.mxu0 %v15406_v20 }
0x4262   : > { %14798 = vmatpush3.bf16.msra.mxu0 %v15691_v57 }
0x4263   : > { %14799 = vmatprep.subr.bf16.mxu0 %v15406_v20 }
0x4266   : > { %14801 = vmatpush3.bf16.msra.mxu0 %v15701_v60 }
0x4267   : > { %14802 = vmatprep.subr.bf16.mxu0 %v15406_v20 }
0x426a   : > { %14804 = vmatpush3.bf16.msra.mxu0 %v15711_v63 }
0x426b   : > { %14805 = vmatprep.subr.bf16.mxu0 %v15406_v20 }
0x426e   : > { %14807 = vmatpush3.bf16.msra.mxu0 %v15722_v2 }
0x426f   : > { %13976 = vmatprep.subr.mxu0 %v15408_v23 }
0x4324   : > { %v8557_v53 = vpop.f32.mrb[102].mxu0 }
0x4325   : > { %v13886_v14 = vpop.f32.mrb[103].mxu0  ;;  %v8561_v32 = vsel %vm762_vm2, %v8557_v53, -inf }
0x4326   : > { %8562 = vmax.xlane.f32.xlu0 %v8561_v32 }
0x433c   : > { %8879 = vrot.lane.b32.xlu0 %v8485_v11, %s17196_s30 }
0x43b3   : > { %v8563_v17 = vpop.xlane.xlu0 %8562 }
0x43b4   : > { %v8564_v19 = vsub.f32 %v8557_v53, %v8563_v17 }
0x43b6   : > { %v8565_v10 = vmul.f32 1.442695, %v8564_v19 }
0x43b7   : > { %v8880_v34 = vpop.permute.xlu0 %8879 }
0x43b8   : > { %15150 = vpow2.f32 %v8565_v10 }
0x43c2   : > { %v15151_v22 = vpop.eup %15150 }
0x43c3   : > { %v8567_v28 = vsel %vm762_vm2, %v15151_v22, 0.0 }
0x43c4   : > { %8568 = vadd.xlane.f32.xlu1 %v8567_v28 }
0x4451   : > { %v8569_v39 = vpop.xlane.xlu1 %8568 }
0x4452   : > { %15152 = vrcp.f32 %v8569_v39 }
0x445c   : > { %v15153_v37 = vpop.eup %15152 }
0x445d   : > { %v8571_v45 = vmul.f32 %v15153_v37, %v15151_v22 }
0x445f   : > { %13890 = vmatmul.mubr.msk.f32.vlgmr.msra.gmra.mrb[98].mxu1 %vm762_vm2, %v8571_v45 }
0x4460   : > { %13928 = vmatpush3.msra.mxu1 %v16539_v12  ;;  %13929 = vmatprep.mubr.msk.f32.mxu1 %vm15407_vm0, %v15408_v23 }
0x4461   : > { %14808 = vmatprep.subr.bf16.mxu1 %v15406_v20 }
0x4463   : > { %13930 = vmatmul.mubr.msk.f32.vlgmr.msra.gmra.mrb[100].mxu1 %vm762_vm2, %v8485_v11 }
0x4464   : > { %14810 = vmatpush3.bf16.msra.mxu1 %v15732_v5  ;;  %13936 = vmatprep.mubr.msk.f32.mxu1 %vm15407_vm0, %v15408_v23 }
0x4465   : > { %14811 = vmatprep.subr.bf16.mxu1 %v15406_v20 }
0x4532   : > { %v8641_v15 = vpop.f32.mrb[98].mxu1 }
0x4533   : > { %v8645_v43 = vmul.f32 %v8641_v15, %v16598_v8  ;;  %v13891_v46 = vpop.f32.mrb[99].mxu1 }
0x4535   : > { %13925 = vmatmul.mubr.f32.vlgmr.msra.gmra.mrb[104].mxu0 %v8645_v43 }
0x4536   : > { %v8782_v31 = vpop.f32.mrb[100].mxu1  ;;  %13977 = vmatpush3.msra.mxu0 %v16554_v7  ;;  %13978 = vmatprep.mubr.msk.f32.mxu0 %vm15407_vm0, %v15408_v23 }
0x4537   : > { %v13931_v52 = vpop.f32.mrb[101].mxu1  ;;  %14016 = vmatprep.subr.mxu0 %v15408_v23 }
0x4608   : > { %v8712_v50 = vpop.f32.mrb[104].mxu0 }
0x4609   : > { %v13926_v26 = vpop.f32.mrb[105].mxu0  ;;  %13937 = vmatmul.mubr.msk.f32.vlgmr.msra.gmra.mrb[102].mxu1 %vm1061_vm3, %v8712_v50 }
0x460a   : > { %14813 = vmatpush3.bf16.msra.mxu1 %v15768_v13  ;;  %13943 = vmatprep.mubr.msk.f32.mxu1 %vm15407_vm0, %v15408_v23 }
0x460b   : > { %14814 = vmatprep.subr.bf16.mxu1 %v15406_v20 }
0x460d   : > { %13944 = vmatmul.mubr.msk.f32.vlgmr.msra.gmra.mrb[104].mxu1 %vm1061_vm3, %v8880_v34 }
0x460e   : > { %14816 = vmatpush3.bf16.msra.mxu1 %v15784_v25  ;;  %13950 = vmatprep.mubr.msk.f32.mxu1 %vm15407_vm0, %v15408_v23 }
0x460f   : > { %14817 = vmatprep.subr.bf16.mxu1 %v15406_v20 }
0x46dc   : > { %v8855_v56 = vpop.f32.mrb[102].mxu1 }
0x46dd   : > { %v16648_v61 = vadd.f32 %v8855_v56, %v8782_v31  ;;  %v13938_v55 = vpop.f32.mrb[103].mxu1 }
0x46e0   : > { %v8949_v47 = vpop.f32.mrb[104].mxu1 }
0x46e1   : > { %v8950_v1 = vadd.f32 %v16575_v42, %v8949_v47  ;;  %v13945_v4 = vpop.f32.mrb[105].mxu1 }
0x46e3   : > { %v12199_v27 = vmul.f32 -1.442695, %v8950_v1  ;;  %15154 = vtanh.f32 %v8950_v1 }
0x46e5   : > { %15156 = vpow2.f32 %v12199_v27 }
0x46ed   : > { %v15155_v62 = vpop.eup %15154 }
0x46ee   : > { %9034 = vrot.lane.b32.xlu0 %v15155_v62, %s15410_s0 }
0x46ef   : > { %v15157_v58 = vpop.eup %15156 }
0x46f0   : > { %v8956_v6 = vadd.f32 1.0, %v15157_v58 }
0x46f2   : > { %15158 = vrcp.f32 %v8956_v6 }
0x46fc   : > { %v15159_v18 = vpop.eup %15158 }
0x46fd   : > { %13951 = vmatmul.mubr.msk.f32.vlgmr.msra.gmra.mrb[106].mxu1 %vm1061_vm3, %v15159_v18 }
0x46fe   : > { %14819 = vmatpush3.bf16.msra.mxu1 %v15784_v25  ;;  %13957 = vmatprep.mubr.msk.f32.mxu1 %vm15407_vm0, %v15408_v23 }
0x46ff   : > { %14820 = vmatprep.subr.bf16.mxu1 %v15406_v20 }
0x4760   : > { %v9035_v11 = vpop.permute.xlu0 %9034 }
0x4761   : > { %13958 = vmatmul.mubr.msk.f32.vlgmr.msra.gmra.mrb[108].mxu1 %vm1061_vm3, %v9035_v11 }
0x4762   : > { %14822 = vmatpush3.bf16.msra.mxu1 %v15587_v21  ;;  %13968 = vmatprep.mubr.msk.f32.mxu1 %vm15407_vm0, %v15408_v23 }
0x4763   : > { %14823 = vmatprep.subr.bf16.mxu1 %v15406_v20 }
0x4766   : > { %14825 = vmatpush3.bf16.msra.mxu1 %v15602_v24 }
0x4767   : > { %13971 = vmatprep.subr.mxu1 %v15408_v23 }
0x4769   : > { %13969 = vmatmul.mubr.msk.f32.vlgmr.msra.gmra.mrb[110].mxu1 %vm688_vm1, %v12202_v3 }
0x476a   : > { %13972 = vmatpush3.msra.mxu1 %v16498_v40  ;;  %13973 = vmatprep.mubr.msk.f32.mxu1 %vm15407_vm0, %v15408_v23 }
0x476b   : > { %14826 = vmatprep.subr.bf16.mxu1 %v15406_v20 }
0x47d0   : > { %v9029_v53 = vpop.f32.mrb[106].mxu1 }
0x47d1   : > { %v9108_v14 = vmul.f32 %v9029_v53, %v8641_v15  ;;  %v13952_v32 = vpop.f32.mrb[107].mxu1 }
0x47d3   : > { %v9109_v17 = vsub.f32 1.0, %v9108_v14 }
0x47d5   : > { %v9110_v10 = vmul.f32 %v9109_v17, %v16598_v8 }
0x4834   : > { %v9104_v19 = vpop.f32.mrb[108].mxu1 }
0x4835   : > { %v9111_v22 = vmul.f32 %v9104_v19, %v8641_v15  ;;  %v13959_v28 = vpop.f32.mrb[109].mxu1 }
0x4837   : > { %v16671_v39 = vadd.f32 %v9111_v22, %v9110_v10 }
0x483c   : > { %v9184_v37 = vpop.f32.mrb[110].mxu1 }
0x483d   : > { %v9185_v45 = vadd.f32 %v16510_v59, %v9184_v37  ;;  %v13970_v43 = vpop.f32.mrb[111].mxu1 }
0x483f   : > { %13974 = vmatmul.mubr.msk.f32.vlgmr.msra.gmra.mrb[112].mxu1 %vm762_vm2, %v9185_v45 }
0x4840   : > { %14828 = vmatpush3.bf16.msra.mxu1 %v15649_v44  ;;  %14013 = vmatprep.mubr.msk.f32.mxu1 %vm15407_vm0, %v15408_v23 }
0x4841   : > { %14829 = vmatprep.subr.bf16.mxu1 %v15406_v20 }
0x4844   : > { %14831 = vmatpush3.bf16.msra.mxu1 %v15659_v48 }
0x4845   : > { %14832 = vmatprep.subr.bf16.mxu1 %v15406_v20 }
0x4848   : > { %14834 = vmatpush3.bf16.msra.mxu1 %v15671_v51 }
0x4849   : > { %14835 = vmatprep.subr.bf16.mxu1 %v15406_v20 }
0x484c   : > { %14837 = vmatpush3.bf16.msra.mxu1 %v15681_v54 }
0x484d   : > { %14838 = vmatprep.subr.bf16.mxu1 %v15406_v20 }
0x4850   : > { %14840 = vmatpush3.bf16.msra.mxu1 %v15691_v57 }
0x4851   : > { %14841 = vmatprep.subr.bf16.mxu1 %v15406_v20 }
0x4854   : > { %14843 = vmatpush3.bf16.msra.mxu1 %v15701_v60 }
0x4855   : > { %14844 = vmatprep.subr.bf16.mxu1 %v15406_v20 }
0x4858   : > { %14846 = vmatpush3.bf16.msra.mxu1 %v15711_v63 }
0x4859   : > { %14847 = vmatprep.subr.bf16.mxu1 %v15406_v20 }
0x485c   : > { %14849 = vmatpush3.bf16.msra.mxu1 %v15722_v2 }
0x485d   : > { %14065 = vmatprep.subr.mxu1 %v15408_v23 }
0x4912   : > { %v9257_v8 = vpop.f32.mrb[112].mxu1 }
0x4913   : > { %v13975_v15 = vpop.f32.mrb[113].mxu1  ;;  %v9261_v46 = vsel %vm762_vm2, %v9257_v8, -inf }
0x4914   : > { %9262 = vmax.xlane.f32.xlu0 %v9261_v46 }
0x49a1   : > { %v9263_v31 = vpop.xlane.xlu0 %9262 }
0x49a2   : > { %v9264_v52 = vsub.f32 %v9257_v8, %v9263_v31  ;;  %v12213_v8 = vld [vmem:[%s15606_s21 + $0x68] sm:$0xff] }
0x49a4   : > { %v9265_v50 = vmul.f32 1.442695, %v9264_v52 }
0x49a6   : > { %15160 = vpow2.f32 %v9265_v50 }
0x49b0   : > { %v15161_v26 = vpop.eup %15160 }
0x49b1   : > { %v9267_v34 = vsel %vm762_vm2, %v15161_v26, 0.0 }
0x49b2   : > { %9268 = vadd.xlane.f32.xlu1 %v9267_v34 }
0x49c3   : > { %9579 = vrot.lane.b32.xlu1 %v9185_v45, %s17196_s30 }
0x4a3f   : > { %v9269_v56 = vpop.xlane.xlu1 %9268 }
0x4a40   : > { %15162 = vrcp.f32 %v9269_v56 }
0x4a43   : > { %v9580_v11 = vpop.permute.xlu1 %9579 }
0x4a4a   : > { %v15163_v55 = vpop.eup %15162 }
0x4a4b   : > { %v9271_v47 = vmul.f32 %v15163_v55, %v15161_v26 }
0x4a4d   : > { %13979 = vmatmul.mubr.msk.f32.vlgmr.msra.gmra.mrb[106].mxu0 %vm762_vm2, %v9271_v47 }
0x4a4e   : > { %14017 = vmatpush3.msra.mxu0 %v16539_v12  ;;  %14018 = vmatprep.mubr.msk.f32.mxu0 %vm15407_vm0, %v15408_v23 }
0x4a4f   : > { %14850 = vmatprep.subr.bf16.mxu0 %v15406_v20 }
0x4a51   : > { %14019 = vmatmul.mubr.msk.f32.vlgmr.msra.gmra.mrb[108].mxu0 %vm762_vm2, %v9185_v45 }
0x4a52   : > { %14852 = vmatpush3.bf16.msra.mxu0 %v15732_v5  ;;  %14025 = vmatprep.mubr.msk.f32.mxu0 %vm15407_vm0, %v15408_v23 }
0x4a53   : > { %14853 = vmatprep.subr.bf16.mxu0 %v15406_v20 }
0x4b20   : > { %v9341_v1 = vpop.f32.mrb[106].mxu0 }
0x4b21   : > { %v9345_v4 = vmul.f32 %v9341_v1, %v16671_v39  ;;  %v13980_v27 = vpop.f32.mrb[107].mxu0 }
0x4b23   : > { %14014 = vmatmul.mubr.f32.vlgmr.msra.gmra.mrb[114].mxu1 %v9345_v4 }
0x4b24   : > { %v9482_v62 = vpop.f32.mrb[108].mxu0  ;;  %14066 = vmatpush3.msra.mxu1 %v16554_v7  ;;  %14067 = vmatprep.mubr.msk.f32.mxu1 %vm15407_vm0, %v15408_v23 }
0x4b25   : > { %v14020_v58 = vpop.f32.mrb[109].mxu0  ;;  %14105 = vmatprep.subr.mxu1 %v15408_v23 }
0x4bf6   : > { %v9412_v6 = vpop.f32.mrb[114].mxu1 }
0x4bf7   : > { %v14015_v18 = vpop.f32.mrb[115].mxu1  ;;  %14026 = vmatmul.mubr.msk.f32.vlgmr.msra.gmra.mrb[110].mxu0 %vm1061_vm3, %v9412_v6 }
0x4bf8   : > { %14855 = vmatpush3.bf16.msra.mxu0 %v15768_v13  ;;  %14032 = vmatprep.mubr.msk.f32.mxu0 %vm15407_vm0, %v15408_v23 }
0x4bf9   : > { %14856 = vmatprep.subr.bf16.mxu0 %v15406_v20 }
0x4bfb   : > { %14033 = vmatmul.mubr.msk.f32.vlgmr.msra.gmra.mrb[112].mxu0 %vm1061_vm3, %v9580_v11 }
0x4bfc   : > { %14858 = vmatpush3.bf16.msra.mxu0 %v15784_v25  ;;  %14039 = vmatprep.mubr.msk.f32.mxu0 %vm15407_vm0, %v15408_v23 }
0x4bfd   : > { %14859 = vmatprep.subr.bf16.mxu0 %v15406_v20 }
0x4cca   : > { %v9555_v3 = vpop.f32.mrb[110].mxu0 }
0x4ccb   : > { %v16721_v53 = vadd.f32 %v9555_v3, %v9482_v62  ;;  %v14027_v14 = vpop.f32.mrb[111].mxu0 }
0x4cce   : > { %v9649_v32 = vpop.f32.mrb[112].mxu0 }
0x4ccf   : > { %v9650_v17 = vadd.f32 %v16575_v42, %v9649_v32  ;;  %v14034_v19 = vpop.f32.mrb[113].mxu0 }
0x4cd1   : > { %v12210_v10 = vmul.f32 -1.442695, %v9650_v17  ;;  %15164 = vtanh.f32 %v9650_v17 }
0x4cd3   : > { %15166 = vpow2.f32 %v12210_v10 }
0x4cdb   : > { %v15165_v22 = vpop.eup %15164 }
0x4cdc   : > { %9734 = vrot.lane.b32.xlu1 %v15165_v22, %s15410_s0 }
0x4cdd   : > { %v15167_v28 = vpop.eup %15166 }
0x4cde   : > { %v9656_v37 = vadd.f32 1.0, %v15167_v28 }
0x4ce0   : > { %15168 = vrcp.f32 %v9656_v37 }
0x4cea   : > { %v15169_v45 = vpop.eup %15168 }
0x4ceb   : > { %14040 = vmatmul.mubr.msk.f32.vlgmr.msra.gmra.mrb[114].mxu0 %vm1061_vm3, %v15169_v45 }
0x4cec   : > { %14861 = vmatpush3.bf16.msra.mxu0 %v15784_v25  ;;  %14046 = vmatprep.mubr.msk.f32.mxu0 %vm15407_vm0, %v15408_v23 }
0x4ced   : > { %14862 = vmatprep.subr.bf16.mxu0 %v15406_v20 }
0x4d4e   : > { %v9735_v43 = vpop.permute.xlu1 %9734 }
0x4d4f   : > { %14047 = vmatmul.mubr.msk.f32.vlgmr.msra.gmra.mrb[116].mxu0 %vm1061_vm3, %v9735_v43 }
0x4d50   : > { %14864 = vmatpush3.bf16.msra.mxu0 %v15587_v21  ;;  %14057 = vmatprep.mubr.msk.f32.mxu0 %vm15407_vm0, %v15408_v23 }
0x4d51   : > { %14865 = vmatprep.subr.bf16.mxu0 %v15406_v20 }
0x4d54   : > { %14867 = vmatpush3.bf16.msra.mxu0 %v15602_v24 }
0x4d55   : > { %14060 = vmatprep.subr.mxu0 %v15408_v23 }
0x4d57   : > { %14058 = vmatmul.mubr.msk.f32.vlgmr.msra.gmra.mrb[118].mxu0 %vm688_vm1, %v12213_v8 }
0x4d58   : > { %14061 = vmatpush3.msra.mxu0 %v16498_v40  ;;  %14062 = vmatprep.mubr.msk.f32.mxu0 %vm15407_vm0, %v15408_v23 }
0x4d59   : > { %14868 = vmatprep.subr.bf16.mxu0 %v15406_v20 }
0x4dbe   : > { %v9729_v15 = vpop.f32.mrb[114].mxu0 }
0x4dbf   : > { %v9808_v46 = vmul.f32 %v9729_v15, %v9341_v1  ;;  %v14041_v31 = vpop.f32.mrb[115].mxu0 }
0x4dc1   : > { %v9809_v52 = vsub.f32 1.0, %v9808_v46 }
0x4dc3   : > { %v9810_v26 = vmul.f32 %v9809_v52, %v16671_v39 }
0x4e22   : > { %v9804_v50 = vpop.f32.mrb[116].mxu0 }
0x4e23   : > { %v9811_v34 = vmul.f32 %v9804_v50, %v9341_v1  ;;  %v14048_v56 = vpop.f32.mrb[117].mxu0 }
0x4e25   : > { %v16744_v55 = vadd.f32 %v9811_v34, %v9810_v26 }
0x4e2a   : > { %v9884_v47 = vpop.f32.mrb[118].mxu0 }
0x4e2b   : > { %v9885_v4 = vadd.f32 %v16510_v59, %v9884_v47  ;;  %v14059_v27 = vpop.f32.mrb[119].mxu0 }
0x4e2d   : > { %14063 = vmatmul.mubr.msk.f32.vlgmr.msra.gmra.mrb[120].mxu0 %vm762_vm2, %v9885_v4 }
0x4e2e   : > { %14870 = vmatpush3.bf16.msra.mxu0 %v15649_v44  ;;  %14102 = vmatprep.mubr.msk.f32.mxu0 %vm15407_vm0, %v15408_v23 }
0x4e2f   : > { %14871 = vmatprep.subr.bf16.mxu0 %v15406_v20 }
0x4e32   : > { %14873 = vmatpush3.bf16.msra.mxu0 %v15659_v48 }
0x4e33   : > { %14874 = vmatprep.subr.bf16.mxu0 %v15406_v20 }
0x4e36   : > { %14876 = vmatpush3.bf16.msra.mxu0 %v15671_v51 }
0x4e37   : > { %14877 = vmatprep.subr.bf16.mxu0 %v15406_v20 }
0x4e3a   : > { %14879 = vmatpush3.bf16.msra.mxu0 %v15681_v54 }
0x4e3b   : > { %14880 = vmatprep.subr.bf16.mxu0 %v15406_v20 }
0x4e3e   : > { %14882 = vmatpush3.bf16.msra.mxu0 %v15691_v57 }
0x4e3f   : > { %14883 = vmatprep.subr.bf16.mxu0 %v15406_v20 }
0x4e42   : > { %14885 = vmatpush3.bf16.msra.mxu0 %v15701_v60 }
0x4e43   : > { %14886 = vmatprep.subr.bf16.mxu0 %v15406_v20 }
0x4e46   : > { %14888 = vmatpush3.bf16.msra.mxu0 %v15711_v63 }
0x4e47   : > { %14889 = vmatprep.subr.bf16.mxu0 %v15406_v20 }
0x4e4a   : > { %14891 = vmatpush3.bf16.msra.mxu0 %v15722_v2 }
0x4e4b   : > { %14154 = vmatprep.subr.mxu0 %v15408_v23 }
0x4f00   : > { %v9957_v39 = vpop.f32.mrb[120].mxu0 }
0x4f01   : > { %v14064_v1 = vpop.f32.mrb[121].mxu0  ;;  %v9961_v62 = vsel %vm762_vm2, %v9957_v39, -inf }
0x4f02   : > { %9962 = vmax.xlane.f32.xlu0 %v9961_v62  ;;  %v12224_v1 = vld [vmem:[%s15606_s21 + $0x70] sm:$0xff] }
0x4f18   : > { %10279 = vrot.lane.b32.xlu0 %v9885_v4, %s17196_s30 }
0x4f8f   : > { %v9963_v58 = vpop.xlane.xlu0 %9962 }
0x4f90   : > { %v9964_v6 = vsub.f32 %v9957_v39, %v9963_v58 }
0x4f92   : > { %v9965_v18 = vmul.f32 1.442695, %v9964_v6 }
0x4f93   : > { %v10280_v8 = vpop.permute.xlu0 %10279 }
0x4f94   : > { %15170 = vpow2.f32 %v9965_v18 }
0x4f9e   : > { %v15171_v11 = vpop.eup %15170 }
0x4f9f   : > { %v9967_v3 = vsel %vm762_vm2, %v15171_v11, 0.0 }
0x4fa0   : > { %9968 = vadd.xlane.f32.xlu1 %v9967_v3 }
0x502d   : > { %v9969_v14 = vpop.xlane.xlu1 %9968 }
0x502e   : > { %15172 = vrcp.f32 %v9969_v14 }
0x5038   : > { %v15173_v32 = vpop.eup %15172 }
0x5039   : > { %v9971_v17 = vmul.f32 %v15173_v32, %v15171_v11 }
0x503b   : > { %14068 = vmatmul.mubr.msk.f32.vlgmr.msra.gmra.mrb[116].mxu1 %vm762_vm2, %v9971_v17 }
0x503c   : > { %14106 = vmatpush3.msra.mxu1 %v16539_v12  ;;  %14107 = vmatprep.mubr.msk.f32.mxu1 %vm15407_vm0, %v15408_v23 }
0x503d   : > { %14892 = vmatprep.subr.bf16.mxu1 %v15406_v20 }
0x503f   : > { %14108 = vmatmul.mubr.msk.f32.vlgmr.msra.gmra.mrb[118].mxu1 %vm762_vm2, %v9885_v4 }
0x5040   : > { %14894 = vmatpush3.bf16.msra.mxu1 %v15732_v5  ;;  %14114 = vmatprep.mubr.msk.f32.mxu1 %vm15407_vm0, %v15408_v23 }
0x5041   : > { %14895 = vmatprep.subr.bf16.mxu1 %v15406_v20 }
0x510e   : > { %v10041_v19 = vpop.f32.mrb[116].mxu1 }
0x510f   : > { %v10045_v10 = vmul.f32 %v10041_v19, %v16744_v55  ;;  %v14069_v22 = vpop.f32.mrb[117].mxu1 }
0x5111   : > { %14103 = vmatmul.mubr.f32.vlgmr.msra.gmra.mrb[122].mxu0 %v10045_v10 }
0x5112   : > { %v10182_v28 = vpop.f32.mrb[118].mxu1  ;;  %14155 = vmatpush3.msra.mxu0 %v16554_v7  ;;  %14156 = vmatprep.mubr.msk.f32.mxu0 %vm15407_vm0, %v15408_v23 }
0x5113   : > { %v14109_v37 = vpop.f32.mrb[119].mxu1  ;;  %14194 = vmatprep.subr.mxu0 %v15408_v23 }
0x51e4   : > { %v10112_v45 = vpop.f32.mrb[122].mxu0 }
0x51e5   : > { %v14104_v43 = vpop.f32.mrb[123].mxu0  ;;  %14115 = vmatmul.mubr.msk.f32.vlgmr.msra.gmra.mrb[120].mxu1 %vm1061_vm3, %v10112_v45 }
0x51e6   : > { %14897 = vmatpush3.bf16.msra.mxu1 %v15768_v13  ;;  %14121 = vmatprep.mubr.msk.f32.mxu1 %vm15407_vm0, %v15408_v23 }
0x51e7   : > { %14898 = vmatprep.subr.bf16.mxu1 %v15406_v20 }
0x51e9   : > { %14122 = vmatmul.mubr.msk.f32.vlgmr.msra.gmra.mrb[122].mxu1 %vm1061_vm3, %v10280_v8 }
0x51ea   : > { %14900 = vmatpush3.bf16.msra.mxu1 %v15784_v25  ;;  %14128 = vmatprep.mubr.msk.f32.mxu1 %vm15407_vm0, %v15408_v23 }
0x51eb   : > { %14901 = vmatprep.subr.bf16.mxu1 %v15406_v20 }
0x52b8   : > { %v10255_v15 = vpop.f32.mrb[120].mxu1 }
0x52b9   : > { %v16794_v46 = vadd.f32 %v10255_v15, %v10182_v28  ;;  %v14116_v31 = vpop.f32.mrb[121].mxu1 }
0x52bc   : > { %v10349_v52 = vpop.f32.mrb[122].mxu1 }
0x52bd   : > { %v10350_v50 = vadd.f32 %v16575_v42, %v10349_v52  ;;  %v14123_v26 = vpop.f32.mrb[123].mxu1 }
0x52bf   : > { %v12221_v34 = vmul.f32 -1.442695, %v10350_v50  ;;  %15174 = vtanh.f32 %v10350_v50 }
0x52c1   : > { %15176 = vpow2.f32 %v12221_v34 }
0x52c9   : > { %v15175_v56 = vpop.eup %15174 }
0x52ca   : > { %10434 = vrot.lane.b32.xlu0 %v15175_v56, %s15410_s0 }
0x52cb   : > { %v15177_v47 = vpop.eup %15176 }
0x52cc   : > { %v10356_v4 = vadd.f32 1.0, %v15177_v47 }
0x52ce   : > { %15178 = vrcp.f32 %v10356_v4 }
0x52d8   : > { %v15179_v27 = vpop.eup %15178 }
0x52d9   : > { %14129 = vmatmul.mubr.msk.f32.vlgmr.msra.gmra.mrb[124].mxu1 %vm1061_vm3, %v15179_v27 }
0x52da   : > { %14903 = vmatpush3.bf16.msra.mxu1 %v15784_v25  ;;  %14135 = vmatprep.mubr.msk.f32.mxu1 %vm15407_vm0, %v15408_v23 }
0x52db   : > { %14904 = vmatprep.subr.bf16.mxu1 %v15406_v20 }
0x533c   : > { %v10435_v39 = vpop.permute.xlu0 %10434 }
0x533d   : > { %14136 = vmatmul.mubr.msk.f32.vlgmr.msra.gmra.mrb[126].mxu1 %vm1061_vm3, %v10435_v39 }
0x533e   : > { %14906 = vmatpush3.bf16.msra.mxu1 %v15587_v21  ;;  %14146 = vmatprep.mubr.msk.f32.mxu1 %vm15407_vm0, %v15408_v23 }
0x533f   : > { %14907 = vmatprep.subr.bf16.mxu1 %v15406_v20 }
0x5342   : > { %14909 = vmatpush3.bf16.msra.mxu1 %v15602_v24 }
0x5343   : > { %14149 = vmatprep.subr.mxu1 %v15408_v23 }
0x5345   : > { %14147 = vmatmul.mubr.msk.f32.vlgmr.msra.gmra.mrb[128].mxu1 %vm688_vm1, %v12224_v1 }
0x5346   : > { %14150 = vmatpush3.msra.mxu1 %v16498_v40  ;;  %14151 = vmatprep.mubr.msk.f32.mxu1 %vm15407_vm0, %v15408_v23 }
0x5347   : > { %14910 = vmatprep.subr.bf16.mxu1 %v15406_v20 }
0x53ac   : > { %v10429_v62 = vpop.f32.mrb[124].mxu1 }
0x53ad   : > { %v10508_v58 = vmul.f32 %v10429_v62, %v10041_v19  ;;  %v14130_v6 = vpop.f32.mrb[125].mxu1 }
0x53af   : > { %v10509_v18 = vsub.f32 1.0, %v10508_v58 }
0x53b1   : > { %v10510_v3 = vmul.f32 %v10509_v18, %v16744_v55 }
0x5410   : > { %v10504_v11 = vpop.f32.mrb[126].mxu1 }
0x5411   : > { %v10511_v14 = vmul.f32 %v10504_v11, %v10041_v19  ;;  %v14137_v32 = vpop.f32.mrb[127].mxu1 }
0x5413   : > { %v16817_v17 = vadd.f32 %v10511_v14, %v10510_v3 }
0x5418   : > { %v10584_v10 = vpop.f32.mrb[128].mxu1 }
0x5419   : > { %v10585_v22 = vadd.f32 %v16510_v59, %v10584_v10  ;;  %v14148_v40 = vpop.f32.mrb[129].mxu1  ;;  %v12235_v10 = vld [vmem:[%s15606_s21 + $0x78] sm:$0xff]  ;;  %s15412_s21 = smov [#allocation6]  }
0x541b   : > { %14152 = vmatmul.mubr.msk.f32.vlgmr.msra.gmra.mrb[130].mxu1 %vm762_vm2, %v10585_v22 }
0x541c   : > { %14912 = vmatpush3.bf16.msra.mxu1 %v15649_v44  ;;  %14191 = vmatprep.mubr.msk.f32.mxu1 %vm15407_vm0, %v15408_v23 }
0x541d   : > { %14913 = vmatprep.subr.bf16.mxu1 %v15406_v20 }
0x5420   : > { %14915 = vmatpush3.bf16.msra.mxu1 %v15659_v48 }
0x5421   : > { %14916 = vmatprep.subr.bf16.mxu1 %v15406_v20 }
0x5424   : > { %14918 = vmatpush3.bf16.msra.mxu1 %v15671_v51 }
0x5425   : > { %14919 = vmatprep.subr.bf16.mxu1 %v15406_v20 }
0x5428   : > { %14921 = vmatpush3.bf16.msra.mxu1 %v15681_v54 }
0x5429   : > { %14922 = vmatprep.subr.bf16.mxu1 %v15406_v20 }
0x542c   : > { %14924 = vmatpush3.bf16.msra.mxu1 %v15691_v57 }
0x542d   : > { %14925 = vmatprep.subr.bf16.mxu1 %v15406_v20 }
0x5430   : > { %14927 = vmatpush3.bf16.msra.mxu1 %v15701_v60 }
0x5431   : > { %14928 = vmatprep.subr.bf16.mxu1 %v15406_v20 }
0x5434   : > { %14930 = vmatpush3.bf16.msra.mxu1 %v15711_v63 }
0x5435   : > { %14931 = vmatprep.subr.bf16.mxu1 %v15406_v20 }
0x5438   : > { %14933 = vmatpush3.bf16.msra.mxu1 %v15722_v2 }
0x5439   : > { %14243 = vmatprep.subr.mxu1 %v15408_v23 }
0x54ee   : > { %v10657_v59 = vpop.f32.mrb[130].mxu1 }
0x54ef   : > { %v14153_v55 = vpop.f32.mrb[131].mxu1  ;;  %v10661_v19 = vsel %vm762_vm2, %v10657_v59, -inf }
0x54f0   : > { %10662 = vmax.xlane.f32.xlu0 %v10661_v19 }
0x557d   : > { %v10663_v28 = vpop.xlane.xlu0 %10662 }
0x557e   : > { %v10664_v37 = vsub.f32 %v10657_v59, %v10663_v28 }
0x5580   : > { %v10665_v45 = vmul.f32 1.442695, %v10664_v37 }
0x5582   : > { %15180 = vpow2.f32 %v10665_v45 }
0x558c   : > { %v15181_v43 = vpop.eup %15180 }
0x558d   : > { %v10667_v8 = vsel %vm762_vm2, %v15181_v43, 0.0 }
0x558e   : > { %10668 = vadd.xlane.f32.xlu1 %v10667_v8  ;;  %v15307_v8 = vld [vmem:[%s17165_s3] ss:$0 sm:$0xff] }
0x559f   : > { %10979 = vrot.lane.b32.xlu1 %v10585_v22, %s17196_s30 }
0x561b   : > { %v10669_v15 = vpop.xlane.xlu1 %10668 }
0x561c   : > { %15182 = vrcp.f32 %v10669_v15 }
0x561f   : > { %v10980_v27 = vpop.permute.xlu1 %10979 }
0x5626   : > { %v15183_v31 = vpop.eup %15182 }
0x5627   : > { %v10671_v52 = vmul.f32 %v15183_v31, %v15181_v43 }
0x5629   : > { %14157 = vmatmul.mubr.msk.f32.vlgmr.msra.gmra.mrb[124].mxu0 %vm762_vm2, %v10671_v52 }
0x562a   : > { %14195 = vmatpush3.msra.mxu0 %v16539_v12  ;;  %14196 = vmatprep.mubr.msk.f32.mxu0 %vm15407_vm0, %v15408_v23 }
0x562b   : > { %14934 = vmatprep.subr.bf16.mxu0 %v15406_v20 }
0x562d   : > { %14197 = vmatmul.mubr.msk.f32.vlgmr.msra.gmra.mrb[126].mxu0 %vm762_vm2, %v10585_v22  ;;  %v15306_v22 = vld [vmem:[%s17166_s4] sm:$0xff] }
0x562e   : > { %14936 = vmatpush3.bf16.msra.mxu0 %v15732_v5  ;;  %14203 = vmatprep.mubr.msk.f32.mxu0 %vm15407_vm0, %v15408_v23 }
0x562f   : > { %14937 = vmatprep.subr.bf16.mxu0 %v15406_v20 }
0x56fc   : > { %v10741_v50 = vpop.f32.mrb[124].mxu0 }
0x56fd   : > { %v10745_v26 = vmul.f32 %v10741_v50, %v16817_v17  ;;  %v14158_v34 = vpop.f32.mrb[125].mxu0 }
0x56ff   : > { %14192 = vmatmul.mubr.f32.vlgmr.msra.gmra.mrb[132].mxu1 %v10745_v26 }
0x5700   : > { %v10882_v12 = vpop.f32.mrb[126].mxu0  ;;  %14244 = vmatpush3.msra.mxu1 %v16554_v7  ;;  %14245 = vmatprep.mubr.msk.f32.mxu1 %vm15407_vm0, %v15408_v23 }
0x5701   : > { %v14198_v56 = vpop.f32.mrb[127].mxu0  ;;  %14283 = vmatprep.subr.mxu1 %v15408_v23 }
0x57d2   : > { %v10812_v47 = vpop.f32.mrb[132].mxu1 }
0x57d3   : > { %v14193_v4 = vpop.f32.mrb[133].mxu1  ;;  %14204 = vmatmul.mubr.msk.f32.vlgmr.msra.gmra.mrb[128].mxu0 %vm1061_vm3, %v10812_v47 }
0x57d4   : > { %14939 = vmatpush3.bf16.msra.mxu0 %v15768_v13  ;;  %14210 = vmatprep.mubr.msk.f32.mxu0 %vm15407_vm0, %v15408_v23 }
0x57d5   : > { %14940 = vmatprep.subr.bf16.mxu0 %v15406_v20 }
0x57d7   : > { %14211 = vmatmul.mubr.msk.f32.vlgmr.msra.gmra.mrb[130].mxu0 %vm1061_vm3, %v10980_v27 }
0x57d8   : > { %14942 = vmatpush3.bf16.msra.mxu0 %v15784_v25  ;;  %14217 = vmatprep.mubr.msk.f32.mxu0 %vm15407_vm0, %v15408_v23 }
0x57d9   : > { %14943 = vmatprep.subr.bf16.mxu0 %v15406_v20 }
0x58a6   : > { %v10955_v7 = vpop.f32.mrb[128].mxu0 }
0x58a7   : > { %v16867_v39 = vadd.f32 %v10955_v7, %v10882_v12  ;;  %v14205_v1 = vpop.f32.mrb[129].mxu0 }
0x58aa   : > { %v11049_v62 = vpop.f32.mrb[130].mxu0 }
0x58ab   : > { %v11050_v58 = vadd.f32 %v16575_v42, %v11049_v62  ;;  %v14212_v6 = vpop.f32.mrb[131].mxu0 }
0x58ad   : > { %v12232_v18 = vmul.f32 -1.442695, %v11050_v58  ;;  %15184 = vtanh.f32 %v11050_v58 }
0x58af   : > { %15186 = vpow2.f32 %v12232_v18 }
0x58b7   : > { %v15185_v11 = vpop.eup %15184 }
0x58b8   : > { %11134 = vrot.lane.b32.xlu1 %v15185_v11, %s15410_s0 }
0x58b9   : > { %v15187_v3 = vpop.eup %15186 }
0x58ba   : > { %v11056_v14 = vadd.f32 1.0, %v15187_v3 }
0x58bc   : > { %15188 = vrcp.f32 %v11056_v14 }
0x58c6   : > { %v15189_v32 = vpop.eup %15188 }
0x58c7   : > { %14218 = vmatmul.mubr.msk.f32.vlgmr.msra.gmra.mrb[132].mxu0 %vm1061_vm3, %v15189_v32 }
0x58c8   : > { %14945 = vmatpush3.bf16.msra.mxu0 %v15784_v25  ;;  %14224 = vmatprep.mubr.msk.f32.mxu0 %vm15407_vm0, %v15408_v23 }
0x58c9   : > { %14946 = vmatprep.subr.bf16.mxu0 %v15406_v20 }
0x592a   : > { %v11135_v42 = vpop.permute.xlu1 %11134 }
0x592b   : > { %14225 = vmatmul.mubr.msk.f32.vlgmr.msra.gmra.mrb[134].mxu0 %vm1061_vm3, %v11135_v42 }
0x592c   : > { %14948 = vmatpush3.bf16.msra.mxu0 %v15587_v21  ;;  %14235 = vmatprep.mubr.msk.f32.mxu0 %vm15407_vm0, %v15408_v23 }
0x592d   : > { %14949 = vmatprep.subr.bf16.mxu0 %v15406_v20 }
0x5930   : > { %14951 = vmatpush3.bf16.msra.mxu0 %v15602_v24 }
0x5931   : > { %14238 = vmatprep.subr.mxu0 %v15408_v23 }
0x5933   : > { %14236 = vmatmul.mubr.msk.f32.vlgmr.msra.gmra.mrb[136].mxu0 %vm688_vm1, %v12235_v10 }
0x5934   : > { %14239 = vmatpush3.msra.mxu0 %v15306_v22  ;;  %14240 = vmatprep.mubr.msk.f32.mxu0 %vm15407_vm0, %v15408_v23 }
0x5935   : > { %14952 = vmatprep.subr.bf16.mxu0 %v15406_v20 }
0x599a   : > { %v11129_v21 = vpop.f32.mrb[132].mxu0 }
0x599b   : > { %v11208_v40 = vmul.f32 %v11129_v21, %v10741_v50  ;;  %v14219_v59 = vpop.f32.mrb[133].mxu0 }
0x599d   : > { %v11209_v55 = vsub.f32 1.0, %v11208_v40 }
0x599f   : > { %v11210_v19 = vmul.f32 %v11209_v55, %v16817_v17 }
0x59fe   : > { %v11204_v24 = vpop.f32.mrb[134].mxu0 }
0x59ff   : > { %v11211_v28 = vmul.f32 %v11204_v24, %v10741_v50  ;;  %v14226_v37 = vpop.f32.mrb[135].mxu0 }
0x5a01   : > { %v16892_v45 = vadd.f32 %v11211_v28, %v11210_v19 }
0x5a06   : > { %v11284_v43 = vpop.f32.mrb[136].mxu0 }
0x5a07   : > { %v16897_v15 = vadd.f32 %v15307_v8, %v11284_v43  ;;  %v14237_v31 = vpop.f32.mrb[137].mxu0 }
0x5a09   : > { %14241 = vmatmul.mubr.msk.f32.vlgmr.msra.gmra.mrb[138].mxu0 %vm762_vm2, %v16897_v15 }
0x5a0a   : > { %14954 = vmatpush3.bf16.msra.mxu0 %v15649_v44  ;;  %14280 = vmatprep.mubr.msk.f32.mxu0 %vm15407_vm0, %v15408_v23 }
0x5a0b   : > { %14955 = vmatprep.subr.bf16.mxu0 %v15406_v20 }
0x5a0e   : > { %14957 = vmatpush3.bf16.msra.mxu0 %v15659_v48 }
0x5a0f   : > { %14958 = vmatprep.subr.bf16.mxu0 %v15406_v20 }
0x5a12   : > { %14960 = vmatpush3.bf16.msra.mxu0 %v15671_v51 }
0x5a13   : > { %14961 = vmatprep.subr.bf16.mxu0 %v15406_v20 }
0x5a16   : > { %14963 = vmatpush3.bf16.msra.mxu0 %v15681_v54  ;;  %v16924_v54 = vld [vmem:[%s17169_s7] ss:$0 sm:$0xff] }
0x5a17   : > { %14964 = vmatprep.subr.bf16.mxu0 %v15406_v20  ;;  %v3259_v52 = vadd.f32 %v16924_v54, %v16014_v36  ;;  %v3959_v50 = vadd.f32 %v16924_v54, %v16087_v35  ;;  %v6059_v35 = vadd.f32 %v16924_v54, %v16331_v0  ;;  %v6759_v27 = vadd.f32 %v16924_v54, %v16404_v9 }
0x5a18   : > { %v7459_v0 = vadd.f32 %v16924_v54, %v16477_v16  ;;  %v8159_v9 = vadd.f32 %v16924_v54, %v16570_v38  ;;  %v8859_v16 = vadd.f32 %v16924_v54, %v16648_v61  ;;  %v9559_v38 = vadd.f32 %v16924_v54, %v16721_v53 }
0x5a19   : > { %v10259_v61 = vadd.f32 %v16924_v54, %v16794_v46  ;;  %v10959_v53 = vadd.f32 %v16924_v54, %v16867_v39 }
0x5a1a   : > { %14966 = vmatpush3.bf16.msra.mxu0 %v15691_v57  ;;  %v1859_v57 = vadd.f32 %v16924_v54, %v15868_v30  ;;  %v4659_v30 = vadd.f32 %v16924_v54, %v16180_v41 }
0x5a1b   : > { %14967 = vmatprep.subr.bf16.mxu0 %v15406_v20 }
0x5a1c   : > { %15190 = vtanh.f32 %v1859_v57 }
0x5a1e   : > { %14969 = vmatpush3.bf16.msra.mxu0 %v15701_v60 }
0x5a1f   : > { %14970 = vmatprep.subr.bf16.mxu0 %v15406_v20 }
0x5a22   : > { %14972 = vmatpush3.bf16.msra.mxu0 %v15711_v63 }
0x5a23   : > { %14973 = vmatprep.subr.bf16.mxu0 %v15406_v20 }
0x5a26   : > { %14975 = vmatpush3.bf16.msra.mxu0 %v15722_v2  ;;  %v2559_v2 = vadd.f32 %v16924_v54, %v15941_v33  ;;  %v15191_v26 = vpop.eup %15190  ;;  %v16941_v33 = vld [vmem:[%s17170_s8] ss:$0 sm:$0xff] }
0x5a27   : > { %v1861_v36 = vmul.f32 %v15191_v26, %v16941_v33  ;;  %v15308_v26 = vld [vmem:[%s17168_s6] sm:$0xff] }
0x5a29   : > { %v1862_v47 = vsel %vm1061_vm3, %v1861_v36, 0.0 }
0x5adc   : > { %v11357_v44 = vpop.f32.mrb[138].mxu0 }
0x5add   : > { %v14242_v48 = vpop.f32.mrb[139].mxu0  ;;  %v11361_v51 = vsel %vm762_vm2, %v11357_v44, -inf }
0x5ade   : > { %11362 = vmax.xlane.f32.xlu0 %v11361_v51 }
0x5af4   : > { %11679 = vrot.lane.b32.xlu0 %v16897_v15, %s17196_s30  ;;  %s15314_s30 = sshll.u32 %s15412_s21, 4  ;;  %s15315_s30 = int_to_ptr.vmem [resolvable:$false] %s15314_s30 }
0x5af5   : > { %s15316_s27 = scalar_lea.vmem %s15315_s30, 256 }
0x5b6b   : > { %v11363_v60 = vpop.xlane.xlu0 %11362 }
0x5b6c   : > { %v11364_v63 = vsub.f32 %v11357_v44, %v11363_v60 }
0x5b6e   : > { %v11365_v17 = vmul.f32 1.442695, %v11364_v63 }
0x5b70   : > { %15192 = vpow2.f32 %v11365_v17 }
0x5b71   : > { %15194 = vtanh.f32 %v2559_v2 }
0x5b72   : > { %15196 = vtanh.f32 %v3259_v52 }
0x5b73   : > { %15198 = vtanh.f32 %v3959_v50 }
0x5b74   : > { %15200 = vtanh.f32 %v4659_v30 }
0x5b75   : > { %15202 = vtanh.f32 %v6059_v35 }
0x5b76   : > { %15204 = vtanh.f32 %v6759_v27 }
0x5b77   : > { %15206 = vtanh.f32 %v7459_v0 }
0x5b78   : > { %15208 = vtanh.f32 %v8159_v9  ;;  %v5359_v9 = vadd.f32 %v16924_v54, %v16258_v49 }
0x5b79   : > { %15210 = vtanh.f32 %v8859_v16 }
0x5b7a   : > { %v16934_v34 = vpop.eup %15192  ;;  %15212 = vtanh.f32 %v9559_v38 }
0x5b7b   : > { %v11367_v12 = vsel %vm762_vm2, %v16934_v34, 0.0  ;;  %v15195_v56 = vpop.eup %15194  ;;  %15214 = vtanh.f32 %v10259_v61 }
0x5b7c   : > { %11368 = vadd.xlane.f32.xlu1 %v11367_v12  ;;  %v2561_v41 = vmul.f32 %v15195_v56, %v16941_v33  ;;  %v15197_v4 = vpop.eup %15196  ;;  %15216 = vtanh.f32 %v10959_v53 }
0x5b7d   : > { %v3261_v1 = vmul.f32 %v15197_v4, %v16941_v33  ;;  %v15199_v62 = vpop.eup %15198 }
0x5b7e   : > { %v2562_v7 = vsel %vm1061_vm3, %v2561_v41, 0.0  ;;  %v3961_v6 = vmul.f32 %v15199_v62, %v16941_v33  ;;  %v15201_v18 = vpop.eup %15200 }
0x5b7f   : > { %v3262_v58 = vsel %vm1061_vm3, %v3261_v1, 0.0  ;;  %v4661_v3 = vmul.f32 %v15201_v18, %v16941_v33  ;;  %v15203_v14 = vpop.eup %15202  ;;  %v1141_v18 = vadd.f32 %v16924_v54, %v15788_v29 }
0x5b80   : > { %1863 = vadd.xlane.f32.xlu1 %v1862_v47  ;;  %v3962_v11 = vsel %vm1061_vm3, %v3961_v6, 0.0  ;;  %v6061_v42 = vmul.f32 %v15203_v14, %v16941_v33  ;;  %v15205_v10 = vpop.eup %15204 }
0x5b81   : > { %v4662_v32 = vsel %vm1061_vm3, %v4661_v3, 0.0  ;;  %v6761_v21 = vmul.f32 %v15205_v10, %v16941_v33  ;;  %v15207_v40 = vpop.eup %15206 }
0x5b82   : > { %v6062_v22 = vsel %vm1061_vm3, %v6061_v42, 0.0  ;;  %v7461_v55 = vmul.f32 %v15207_v40, %v16941_v33  ;;  %v15209_v24 = vpop.eup %15208 }
0x5b83   : > { %v6762_v59 = vsel %vm1061_vm3, %v6761_v21, 0.0  ;;  %v8161_v28 = vmul.f32 %v15209_v24, %v16941_v33  ;;  %v15211_v37 = vpop.eup %15210 }
0x5b84   : > { %2563 = vadd.xlane.f32.xlu1 %v2562_v7  ;;  %v7462_v19 = vsel %vm1061_vm3, %v7461_v55, 0.0  ;;  %v8861_v46 = vmul.f32 %v15211_v37, %v16941_v33  ;;  %v15213_v8 = vpop.eup %15212  ;;  %v15309_v7 = vld [vmem:[%s17173_s11] ss:$0 sm:$0xff] }
0x5b85   : > { %v8162_v43 = vsel %vm1061_vm3, %v8161_v28, 0.0  ;;  %v9561_v44 = vmul.f32 %v15213_v8, %v16941_v33  ;;  %v15215_v48 = vpop.eup %15214 }
0x5b86   : > { %v8862_v31 = vsel %vm1061_vm3, %v8861_v46, 0.0  ;;  %v10261_v51 = vmul.f32 %v15215_v48, %v16941_v33  ;;  %v15217_v57 = vpop.eup %15216 }
0x5b87   : > { %v9562_v39 = vsel %vm1061_vm3, %v9561_v44, 0.0  ;;  %v10961_v63 = vmul.f32 %v15217_v57, %v16941_v33 }
0x5b88   : > { %3263 = vadd.xlane.f32.xlu1 %v3262_v58  ;;  %v10262_v60 = vsel %vm1061_vm3, %v10261_v51, 0.0 }
0x5b89   : > { %v10962_v2 = vsel %vm1061_vm3, %v10961_v63, 0.0 }
0x5b8c   : > { %3963 = vadd.xlane.f32.xlu1 %v3962_v11 }
0x5b90   : > { %4663 = vadd.xlane.f32.xlu1 %v4662_v32  ;;  %v17028_v32 = vld [vmem:[#allocation2] ss:$0 sm:$0xff] }
0x5b94   : > { %6063 = vadd.xlane.f32.xlu1 %v6062_v22 }
0x5b98   : > { %6763 = vadd.xlane.f32.xlu1 %v6762_v59 }
0x5b9c   : > { %7463 = vadd.xlane.f32.xlu1 %v7462_v19 }
0x5ba0   : > { %8163 = vadd.xlane.f32.xlu1 %v8162_v43 }
0x5ba4   : > { %8863 = vadd.xlane.f32.xlu1 %v8862_v31 }
0x5ba8   : > { %9563 = vadd.xlane.f32.xlu1 %v9562_v39 }
0x5bac   : > { %10263 = vadd.xlane.f32.xlu1 %v10262_v60 }
0x5bb0   : > { %10963 = vadd.xlane.f32.xlu1 %v10962_v2 }
0x5c09   : > { %v11369_v17 = vpop.xlane.xlu1 %11368 }
0x5c0a   : > { %15218 = vrcp.f32 %v11369_v17 }
0x5c0d   : > { %v1864_v3 = vpop.xlane.xlu1 %1863 }
0x5c0e   : > { %v1865_v42 = vadd.f32 %v17028_v32, %v1864_v3 }
0x5c10   : > { %v12087_v22 = vmul.f32 -1.442695, %v1865_v42 }
0x5c11   : > { %v2564_v16 = vpop.xlane.xlu1 %2563 }
0x5c12   : > { %v2565_v57 = vadd.f32 %v17028_v32, %v2564_v16 }
0x5c14   : > { %v15219_v52 = vpop.eup %15218  ;;  %v12098_v60 = vmul.f32 -1.442695, %v2565_v57 }
0x5c15   : > { %v11371_v50 = vmul.f32 %v15219_v52, %v16934_v34  ;;  %v3264_v49 = vpop.xlane.xlu1 %3263 }
0x5c17   : > { %14246 = vmatmul.mubr.msk.f32.vlgmr.msra.gmra.mrb[134].mxu1 %vm762_vm2, %v11371_v50 }
0x5c18   : > { %14284 = vmatpush3.msra.mxu1 %v15308_v26  ;;  %14285 = vmatprep.mubr.msk.f32.mxu1 %vm15407_vm0, %v15408_v23 }
0x5c19   : > { %14976 = vmatprep.subr.bf16.mxu1 %v15406_v20  ;;  %v3964_v8 = vpop.xlane.xlu1 %3963 }
0x5c1a   : > { %v3965_v2 = vadd.f32 %v17028_v32, %v3964_v8 }
0x5c1b   : > { %14286 = vmatmul.mubr.msk.f32.vlgmr.msra.gmra.mrb[136].mxu1 %vm762_vm2, %v16897_v15  ;;  %v15411_v15 = vmov 0  }
0x5c1c   : > { %14978 = vmatpush3.bf16.msra.mxu1 %v15732_v5  ;;  %14292 = vmatprep.mubr.msk.f32.mxu1 %vm15407_vm0, %v15408_v23  ;;  %v11680_v5 = vpop.permute.xlu0 %11679  ;;  %v12120_v26 = vmul.f32 -1.442695, %v3965_v2 }
0x5c1d   : > { %14979 = vmatprep.subr.bf16.mxu1 %v15406_v20  ;;  %15039 = vset.pattern.permute.xlu0 %v15411_v15 }
0x5c1e   : > { %15038 = vset.pattern.permute.xlu1 %v15411_v15 }
0x5cea   : > { %v17001_v34 = vpop.f32.mrb[134].mxu1 }
0x5ceb   : > { %v11445_v30 = vmul.f32 %v17001_v34, %v16892_v45  ;;  %v14247_v12 = vpop.f32.mrb[135].mxu1 }
0x5ced   : > { %14281 = vmatmul.mubr.f32.vlgmr.msra.gmra.mrb[140].mxu0 %v11445_v30 }
0x5cee   : > { %v11582_v36 = vpop.f32.mrb[136].mxu1 }
0x5cef   : > { %v14287_v56 = vpop.f32.mrb[137].mxu1 }
0x5dc0   : > { %v11512_v35 = vpop.f32.mrb[140].mxu0 }
0x5dc1   : > { %v14282_v47 = vpop.f32.mrb[141].mxu0  ;;  %14293 = vmatmul.mubr.msk.f32.vlgmr.msra.gmra.mrb[138].mxu1 %vm1061_vm3, %v11512_v35 }
0x5dc2   : > { %14981 = vmatpush3.bf16.msra.mxu1 %v15768_v13  ;;  %14299 = vmatprep.mubr.msk.f32.mxu1 %vm15407_vm0, %v15408_v23 }
0x5dc3   : > { %14982 = vmatprep.subr.bf16.mxu1 %v15406_v20 }
0x5dc5   : > { %14300 = vmatmul.mubr.msk.f32.vlgmr.msra.gmra.mrb[140].mxu1 %vm1061_vm3, %v11680_v5 }
0x5dc6   : > { %14984 = vmatpush3.bf16.msra.mxu1 %v15784_v25  ;;  %14306 = vmatprep.mubr.msk.f32.mxu1 %vm15407_vm0, %v15408_v23 }
0x5dc7   : > { %14985 = vmatprep.subr.bf16.mxu1 %v15406_v20 }
0x5e94   : > { %v11655_v41 = vpop.f32.mrb[138].mxu1 }
0x5e95   : > { %v11656_v13 = vadd.f32 %v11655_v41, %v11582_v36  ;;  %v14294_v4 = vpop.f32.mrb[139].mxu1 }
0x5e97   : > { %v11659_v14 = vadd.f32 %v16924_v54, %v11656_v13 }
0x5e98   : > { %v11749_v27 = vpop.f32.mrb[140].mxu1 }
0x5e99   : > { %v11750_v1 = vadd.f32 %v15309_v7, %v11749_v27  ;;  %v14301_v62 = vpop.f32.mrb[141].mxu1 }
0x5e9b   : > { %v12243_v0 = vmul.f32 -1.442695, %v11750_v1  ;;  %15220 = vtanh.f32 %v11750_v1 }
0x5e9d   : > { %15222 = vpow2.f32 %v12243_v0 }
0x5ea5   : > { %v15221_v58 = vpop.eup %15220 }
0x5ea6   : > { %11834 = vrot.lane.b32.xlu0 %v15221_v58, %s15410_s0  ;;  %s17183_s0 = sshll.u32 %s15595_s19, 3 }
0x5ea7   : > { %v15223_v20 = vpop.eup %15222  ;;  %s639_s20 = scalar_lea.vmem [#allocation6], %s17183_s0 }
0x5ea8   : > { %v11756_v6 = vadd.f32 1.0, %v15223_v20  ;;  %s11947_s22 = sshll.u32 %s639_s20, 4  ;;  %s17070_s22 = int_to_ptr.vmem [resolvable:$true] %s11947_s22 }
0x5ea9   : > { %s15310_s2 = scalar_lea.vmem %s17070_s22, 128  ;;  %p15317_p3 = scmp.lt.s32.totalorder %s17070_s22, %s15315_s30 }
0x5eaa   : > { %15224 = vrcp.f32 %v11756_v6  ;;  %p15311_p0 = scmp.ne.s32.totalorder %s17070_s22, %s15310_s2  ;;  %p15318_p4 = scmp.lt.s32.totalorder %s15316_s27, %s15310_s2 }
0x5eab   : > { %15226 = vtanh.f32 %v1141_v18 }
0x5eac   : > { %15228 = vtanh.f32 %v5359_v9  ;;  %p15312_p1 = pnand %p15311_p0, %p15541_p6  ;;  %p15319_p5 = por %p15318_p4, %p15317_p3 }
0x5ead   : > { %15230 = vtanh.f32 %v11659_v14 }
0x5eae   : > { %15232 = vpow2.f32 %v12087_v22  ;;  %p15313_p2 = pneg %p15312_p1 }
0x5eb0   : > { %p15320_p7 = pnand %p15319_p5, %p15313_p2 }
0x5eb4   : > { %v15225_v11 = vpop.eup %15224 }
0x5eb5   : > { %14307 = vmatmul.mubr.msk.f32.vlgmr.msra.gmra.mrb[142].mxu1 %vm1061_vm3, %v15225_v11  ;;  %v15227_v29 = vpop.eup %15226 }
0x5eb6   : > { %14987 = vmatpush3.bf16.msra.mxu1 %v15784_v25  ;;  %14313 = vmatprep.mubr.msk.f32.mxu1 %vm15407_vm0, %v15408_v23  ;;  %v1149_v10 = vmul.f32 %v15227_v29, %v16941_v33  ;;  %v15229_v38 = vpop.eup %15228  ;;  %v3265_v25 = vadd.f32 %v17028_v32, %v3264_v49 }
0x5eb7   : > { %v5361_v23 = vmul.f32 %v15229_v38, %v16941_v33  ;;  %v15231_v40 = vpop.eup %15230 }
0x5eb8   : > { %v1150_v21 = vsel %vm1061_vm3, %v1149_v10, 0.0  ;;  %v12109_v54 = vmul.f32 -1.442695, %v3265_v25  ;;  %v11661_v59 = vmul.f32 %v15231_v40, %v16941_v33  ;;  %v15233_v24 = vpop.eup %15232  ;;  %v4664_v33 = vpop.xlane.xlu1 %4663 }
0x5eb9   : > { %v5362_v61 = vsel %vm1061_vm3, %v5361_v23, 0.0  ;;  %v1869_v53 = vadd.f32 1.0, %v15233_v24  ;;  %v4665_v30 = vadd.f32 %v17028_v32, %v4664_v33 }
0x5eba   : > { %15234 = vpow2.f32 %v12109_v54  ;;  %v11662_v55 = vsel %vm1061_vm3, %v11661_v59, 0.0 }
0x5ebb   : > { %15236 = vrcp.f32 %v1869_v53  ;;  %v12131_v15 = vmul.f32 -1.442695, %v4665_v30 }
0x5ebc   : > { %v6064_v31 = vpop.xlane.xlu1 %6063 }
0x5ebd   : > { %v6065_v41 = vadd.f32 %v17028_v32, %v6064_v31 }
0x5ebf   : > { %v12153_v1 = vmul.f32 -1.442695, %v6065_v41 }
0x5ec0   : > { %v6764_v44 = vpop.xlane.xlu1 %6763 }
0x5ec1   : > { %v6765_v17 = vadd.f32 %v17028_v32, %v6764_v44 }
0x5ec3   : > { %v12164_v36 = vmul.f32 -1.442695, %v6765_v17 }
0x5ec4   : > { %v15235_v19 = vpop.eup %15234  ;;  %v7464_v48 = vpop.xlane.xlu1 %7463 }
0x5ec5   : > { %1151 = vadd.xlane.f32.xlu0 %v1150_v21  ;;  %v3269_v28 = vadd.f32 1.0, %v15235_v19  ;;  %v15237_v37 = vpop.eup %15236  ;;  %v7465_v0 = vadd.f32 %v17028_v32, %v7464_v48 }
0x5ec7   : > { %15238 = vrcp.f32 %v3269_v28  ;;  %v12175_v9 = vmul.f32 -1.442695, %v7465_v0 }
0x5ec8   : > { %v8164_v39 = vpop.xlane.xlu1 %8163  ;;  %15240 = vpow2.f32 %v12098_v60 }
0x5ec9   : > { %5363 = vadd.xlane.f32.xlu0 %v5362_v61  ;;  %v8165_v47 = vadd.f32 %v17028_v32, %v8164_v39 }
0x5ecb   : > { %v12186_v4 = vmul.f32 -1.442695, %v8165_v47 }
0x5ecc   : > { %v8864_v51 = vpop.xlane.xlu1 %8863 }
0x5ecd   : > { %11663 = vadd.xlane.f32.xlu0 %v11662_v55  ;;  %v8865_v14 = vadd.f32 %v17028_v32, %v8864_v51 }
0x5ecf   : > { %v12197_v22 = vmul.f32 -1.442695, %v8865_v14 }
0x5ed0   : > { %v9564_v63 = vpop.xlane.xlu1 %9563 }
0x5ed1   : > { %v15239_v43 = vpop.eup %15238  ;;  %v9565_v27 = vadd.f32 %v17028_v32, %v9564_v63 }
0x5ed2   : > { %v15241_v62 = vpop.eup %15240 }
0x5ed3   : > { %v12208_v58 = vmul.f32 -1.442695, %v9565_v27  ;;  %v2569_v18 = vadd.f32 1.0, %v15241_v62 }
0x5ed4   : > { %v10264_v56 = vpop.xlane.xlu1 %10263 }
0x5ed5   : > { %v10265_v25 = vadd.f32 %v17028_v32, %v10264_v56 }
0x5ed7   : > { %v12219_v59 = vmul.f32 -1.442695, %v10265_v25 }
0x5ed8   : > { %v10964_v7 = vpop.xlane.xlu1 %10963 }
0x5ed9   : > { %v10965_v20 = vadd.f32 %v17028_v32, %v10964_v7 }
0x5edb   : > { %v12230_v16 = vmul.f32 -1.442695, %v10965_v20 }
0x5ee3   : > { %1875 = vperm.xlu0 %15039, %v15237_v37  }
0x5ee7   : > { %3275 = vperm.xlu0 %15039, %v15239_v43  }
0x5f18   : > { %v11835_v46 = vpop.permute.xlu0 %11834 }
0x5f19   : > { %14314 = vmatmul.mubr.msk.f32.vlgmr.msra.gmra.mrb[144].mxu1 %vm1061_vm3, %v11835_v46 }
0x5f52   : > { %v1152_v52 = vpop.xlane.xlu0 %1151 }
0x5f53   : > { %v1159_v50 = vadd.f32 %v17028_v32, %v1152_v52 }
0x5f55   : > { %v12075_v12 = vmul.f32 -1.442695, %v1159_v50 }
0x5f56   : > { %v5364_v35 = vpop.xlane.xlu0 %5363 }
0x5f57   : > { %15242 = vpow2.f32 %v12075_v12  ;;  %v5365_v5 = vadd.f32 %v17028_v32, %v5364_v35 }
0x5f58   : > { %15244 = vpow2.f32 %v12120_v26 }
0x5f59   : > { %v12142_v13 = vmul.f32 -1.442695, %v5365_v5  ;;  %15246 = vpow2.f32 %v12164_v36 }
0x5f5a   : > { %v11664_v23 = vpop.xlane.xlu0 %11663 }
0x5f5b   : > { %15248 = vpow2.f32 %v12142_v13  ;;  %v11665_v55 = vadd.f32 %v17028_v32, %v11664_v23  ;;  %v678_v13 = vlaneseq }
0x5f5c   : > { %15250 = vpow2.f32 %v12131_v15 }
0x5f5d   : > { %15252 = vpow2.f32 %v12186_v4  ;;  %v12241_v43 = vmul.f32 -1.442695, %v11665_v55  ;;  %v17055_v7 = vand.u32 127, %v678_v13 }
0x5f5e   : > { %15254 = vpow2.f32 %v12153_v1 }
0x5f5f   : > { %15256 = vpow2.f32 %v12208_v58  ;;  %vm1166_vm4 = vcmp.eq.s32.totalorder %v17055_v7, 0  ;;  %vm1872_vm5 = vcmp.eq.s32.totalorder %v17055_v7, 1 }
0x5f61   : > { %v15243_v6 = vpop.eup %15242 }
0x5f62   : > { %v1163_v11 = vadd.f32 1.0, %v15243_v6  ;;  %v15245_v3 = vpop.eup %15244  ;;  %v1876_v27 = vpop.permute.xlu0 %1875 }
0x5f63   : > { %v15247_v29 = vpop.eup %15246  ;;  %v3969_v49 = vadd.f32 1.0, %v15245_v3 }
0x5f64   : > { %15258 = vrcp.f32 %v1163_v11  ;;  %v6769_v21 = vadd.f32 1.0, %v15247_v29 }
0x5f65   : > { %v15249_v42 = vpop.eup %15248  ;;  %15260 = vrcp.f32 %v2569_v18 }
0x5f66   : > { %15262 = vpow2.f32 %v12175_v9  ;;  %v5369_v10 = vadd.f32 1.0, %v15249_v42  ;;  %v15251_v38 = vpop.eup %15250 }
0x5f67   : > { %15264 = vpow2.f32 %v12230_v16  ;;  %v15253_v40 = vpop.eup %15252  ;;  %v4669_v54 = vadd.f32 1.0, %v15251_v38 }
0x5f68   : > { %15266 = vrcp.f32 %v5369_v10  ;;  %v15255_v61 = vpop.eup %15254  ;;  %v8169_v24 = vadd.f32 1.0, %v15253_v40 }
0x5f69   : > { %15268 = vrcp.f32 %v3969_v49  ;;  %v15257_v53 = vpop.eup %15256  ;;  %v6069_v28 = vadd.f32 1.0, %v15255_v61 }
0x5f6a   : > { %15270 = vpow2.f32 %v12197_v22  ;;  %v9569_v8 = vadd.f32 1.0, %v15257_v53 }
0x5f6b   : > { %15272 = vrcp.f32 %v6769_v21 }
0x5f6c   : > { %15274 = vrcp.f32 %v4669_v54 }
0x5f6d   : > { %15276 = vpow2.f32 %v12219_v59 }
0x5f6e   : > { %v15259_v19 = vpop.eup %15258  ;;  %15278 = vrcp.f32 %v8169_v24 }
0x5f6f   : > { %v15261_v37 = vpop.eup %15260  ;;  %1169 = vperm.xlu1 %15038, %v15259_v19   ;;  %15280 = vrcp.f32 %v6069_v28 }
0x5f70   : > { %v15263_v46 = vpop.eup %15262  ;;  %15282 = vpow2.f32 %v12241_v43 }
0x5f71   : > { %v15265_v33 = vpop.eup %15264  ;;  %v7469_v44 = vadd.f32 1.0, %v15263_v46  ;;  %15284 = vrcp.f32 %v9569_v8 }
0x5f72   : > { %v15267_v31 = vpop.eup %15266  ;;  %v10969_v48 = vadd.f32 1.0, %v15265_v33 }
0x5f73   : > { %2575 = vperm.xlu1 %15038, %v15261_v37   ;;  %5375 = vperm.xlu0 %15039, %v15267_v31   ;;  %v15269_v32 = vpop.eup %15268  ;;  %15286 = vrcp.f32 %v7469_v44 }
0x5f74   : > { %v15271_v39 = vpop.eup %15270  ;;  %15288 = vrcp.f32 %v10969_v48 }
0x5f75   : > { %v15273_v51 = vpop.eup %15272  ;;  %v8869_v60 = vadd.f32 1.0, %v15271_v39 }
0x5f76   : > { %v15275_v57 = vpop.eup %15274 }
0x5f77   : > { %3975 = vperm.xlu1 %15038, %v15269_v32   ;;  %6775 = vperm.xlu0 %15039, %v15273_v51   ;;  %v15277_v63 = vpop.eup %15276  ;;  %15290 = vrcp.f32 %v8869_v60 }
0x5f78   : > { %v15279_v2 = vpop.eup %15278  ;;  %v10269_v52 = vadd.f32 1.0, %v15277_v63 }
0x5f79   : > { %v15281_v17 = vpop.eup %15280 }
0x5f7a   : > { %v15283_v50 = vpop.eup %15282  ;;  %15292 = vrcp.f32 %v10269_v52 }
0x5f7b   : > { %4675 = vperm.xlu1 %15038, %v15275_v57   ;;  %8175 = vperm.xlu0 %15039, %v15279_v2   ;;  %v15285_v26 = vpop.eup %15284  ;;  %v11669_v30 = vadd.f32 1.0, %v15283_v50 }
0x5f7d   : > { %v15287_v12 = vpop.eup %15286  ;;  %15294 = vrcp.f32 %v11669_v30 }
0x5f7e   : > { %v15289_v36 = vpop.eup %15288 }
0x5f7f   : > { %6075 = vperm.xlu1 %15038, %v15281_v17   ;;  %9575 = vperm.xlu0 %15039, %v15285_v26  }
0x5f81   : > { %v15291_v56 = vpop.eup %15290 }
0x5f83   : > { %7475 = vperm.xlu1 %15038, %v15287_v12   ;;  %10975 = vperm.xlu0 %15039, %v15289_v36  }
0x5f84   : > { %v15293_v15 = vpop.eup %15292 }
0x5f87   : > { %8875 = vperm.xlu1 %15038, %v15291_v56   ;;  %v15295_v41 = vpop.eup %15294 }
0x5f88   : > { %v11829_v35 = vpop.f32.mrb[142].mxu1 }
0x5f89   : > { %v11908_v47 = vmul.f32 %v11829_v35, %v17001_v34  ;;  %v14308_v5 = vpop.f32.mrb[143].mxu1 }
0x5f8b   : > { %10275 = vperm.xlu1 %15038, %v15293_v15   ;;  %v11909_v4 = vsub.f32 1.0, %v11908_v47 }
0x5f8d   : > { %v11910_v62 = vmul.f32 %v11909_v4, %v16892_v45  ;;  %v3276_v45 = vpop.permute.xlu0 %3275 }
0x5f8f   : > { %11675 = vperm.xlu1 %15038, %v15295_v41  }
0x5fec   : > { %v11904_v1 = vpop.f32.mrb[144].mxu1 }
0x5fed   : > { %v11911_v0 = vmul.f32 %v11904_v1, %v17001_v34  ;;  %v14315_v58 = vpop.f32.mrb[145].mxu1 }
0x5fee   : > { %v1170_v20 = vpop.permute.xlu1 %1169 }
0x5fef   : > { %v11912_v6 = vadd.f32 %v11911_v0, %v11910_v62  ;;  %v1172_v34 = vsel %vm1166_vm4, %v1170_v20, 0.0 }
0x5ff1   : > { %11914 = vst [vmem:[%s639_s20] sm:$0xff] %v11912_v6 }
0x5ff2   : > { %v2576_v18 = vpop.permute.xlu1 %2575 }
0x5ff3   : > { %15323 = shalt.err (!%p15320_p7)
}
0x5ff4   : > { %s15324_s20 = scalar_lea.hbm %s17068_s29, 128  ;;  %s15328_s21 = scalar_lea.hbm %s17178_s16, 256 }
0x5ff5   : > { %p15325_p10 = scmp.ne.s32.totalorder %s17068_s29, %s15324_s20  ;;  %p15329_p13 = scmp.lt.u32.totalorder %s17068_s29, %s17178_s16 }
0x5ff6   : > { %p15330_p0 = scmp.lt.u32.totalorder %s15328_s21, %s15324_s20  ;;  %p15332_p2 = scmp.lt.u32.totalorder %s15324_s20, %s17068_s29 }
0x5ff7   : > { %p15326_p11 = pnand %p15325_p10, %p15541_p6 }
0x5ff8   : > { %p15331_p1 = por %p15330_p0, %p15329_p13 }
0x5ff9   : > { %p15327_p12 = pneg %p15326_p11 }
0x5ffa   : > { %p15333_p3 = por %p15332_p2, %p15331_p1 }
0x5ffc   : > { %p15334_p4 = pnand %p15333_p3, %p15327_p12 }
0x5ffe   : > { %15337 = shalt.err (!%p15334_p4)
}
0x5fff   : > { %14989 = dma.vmem_to_hbm [thread:$0]  (%p15541_p6), %s17070_s22, 128, %s17068_s29, %s11921_s13   ;;  %vm2572_vm6 = vcmp.eq.s32.totalorder %v17055_v7, 2  ;;  %v1878_v9 = vsel %vm1872_vm5, %v1876_v27, %v1172_v34  ;;  %v5376_v11 = vpop.permute.xlu0 %5375  ;;  %vm3272_vm7 = vcmp.eq.s32.totalorder %v17055_v7, 3  ;;  %v3976_v14 = vpop.permute.xlu1 %3975  ;;  %vm3972_vm8 = vcmp.eq.s32.totalorder %v17055_v7, 4 }
0x6000   : > { %v2578_v3 = vsel %vm2572_vm6, %v2576_v18, %v1878_v9  ;;  %vm4672_vm9 = vcmp.eq.s32.totalorder %v17055_v7, 5  ;;  %vm5372_vm10 = vcmp.eq.s32.totalorder %v17055_v7, 6  ;;  %vm6072_vm11 = vcmp.eq.s32.totalorder %v17055_v7, 7  ;;  %s17197_s1 = sshll.u32 %s15595_s19, 3  ;;  %s17198_s22 = sshll.u32 %s15523_s9, 7 }
0x6001   : > { %v3278_v16 = vsel %vm3272_vm7, %v3276_v45, %v2578_v3  ;;  %vm6772_vm12 = vcmp.eq.s32.totalorder %v17055_v7, 8  ;;  %vm7472_vm13 = vcmp.eq.s32.totalorder %v17055_v7, 9  ;;  %vm8172_vm14 = vcmp.eq.s32.totalorder %v17055_v7, 10  ;;  %s632_s0 = scalar_lea.vmem [#allocation4], %s17197_s1  ;;  %s17118_s2 = scalar_lea.hbm %s17177_s15, %s17198_s22 }
0x6002   : > { %v3978_v29 = vsel %vm3972_vm8, %v3976_v14, %v3278_v16  ;;  %vm8872_vm15 = vcmp.eq.s32.totalorder %v17055_v7, 11  ;;  %vm9572_vm0 = vcmp.eq.s32.totalorder %v17055_v7, 12  ;;  %vm10272_vm1 = vcmp.eq.s32.totalorder %v17055_v7, 13  ;;  %s11934_s25 = sshll.u32 %s632_s0, 4  ;;  %s11916_s27 = scalar_lea.sflag [#allocation5], %s15595_s19  ;;  %s17120_s25 = int_to_ptr.vmem [resolvable:$true] %s11934_s25 }
0x6003   : > { %v4676_v42 = vpop.permute.xlu1 %4675  ;;  %v6776_v49 = vpop.permute.xlu0 %6775  ;;  %vm10972_vm2 = vcmp.eq.s32.totalorder %v17055_v7, 14  ;;  %vm11672_vm3 = vcmp.eq.s32.totalorder %v17055_v7, 15  ;;  %s15338_s20 = scalar_lea.vmem %s17120_s25, 128  ;;  %s15413_s21 = smov [#allocation4]  }
0x6004   : > { %v4678_v10 = vsel %vm4672_vm9, %v4676_v42, %v3978_v29  ;;  %p15339_p5 = scmp.ne.s32.totalorder %s17120_s25, %s15338_s20  ;;  %s15342_s9 = sshll.u32 %s15413_s21, 4  ;;  %s15343_s9 = int_to_ptr.vmem [resolvable:$false] %s15342_s9 }
0x6005   : > { %v5378_v22 = vsel %vm5372_vm10, %v5376_v11, %v4678_v10  ;;  %s15344_s30 = scalar_lea.vmem %s15343_s9, 256  ;;  %p15345_p11 = scmp.lt.s32.totalorder %s17120_s25, %s15343_s9 }
0x6006   : > { %p15340_p7 = pnand %p15339_p5, %p15541_p6  ;;  %p15346_p12 = scmp.lt.s32.totalorder %s15344_s30, %s15338_s20 }
0x6007   : > { %v6076_v38 = vpop.permute.xlu1 %6075  ;;  %v8176_v21 = vpop.permute.xlu0 %8175 }
0x6008   : > { %v6078_v25 = vsel %vm6072_vm11, %v6076_v38, %v5378_v22  ;;  %p15341_p10 = pneg %p15340_p7  ;;  %p15347_p13 = por %p15346_p12, %p15345_p11 }
0x6009   : > { %v6778_v40 = vsel %vm6772_vm12, %v6776_v49, %v6078_v25 }
0x600a   : > { %p15348_p0 = pnand %p15347_p13, %p15341_p10 }
0x600b   : > { %v7476_v23 = vpop.permute.xlu1 %7475  ;;  %v9576_v55 = vpop.permute.xlu0 %9575 }
0x600c   : > { %v7478_v54 = vsel %vm7472_vm13, %v7476_v23, %v6778_v40 }
0x600d   : > { %v8178_v59 = vsel %vm8172_vm14, %v8176_v21, %v7478_v54 }
0x600f   : > { %v8876_v61 = vpop.permute.xlu1 %8875  ;;  %v10976_v37 = vpop.permute.xlu0 %10975 }
0x6010   : > { %v8878_v24 = vsel %vm8872_vm15, %v8876_v61, %v8178_v59 }
0x6011   : > { %v9578_v19 = vsel %vm9572_vm0, %v9576_v55, %v8878_v24 }
0x6013   : > { %v10276_v53 = vpop.permute.xlu1 %10275 }
0x6014   : > { %v10278_v28 = vsel %vm10272_vm1, %v10276_v53, %v9578_v19 }
0x6015   : > { %v10978_v46 = vsel %vm10972_vm2, %v10976_v37, %v10278_v28 }
0x6017   : > { %v11676_v43 = vpop.permute.xlu1 %11675 }
0x6018   : > { %v11678_v8 = vsel %vm11672_vm3, %v11676_v43, %v10978_v46 }
0x6019   : > { %11913 = vst [vmem:[%s632_s0] sm:$0xff] %v11678_v8 }
0x601a   : > { %15351 = shalt.err (!%p15348_p0)
}
0x601b   : > { %s15352_s19 = scalar_lea.hbm %s17118_s2, 128  ;;  %s15356_s22 = scalar_lea.hbm %s17177_s15, 256 }
0x601c   : > { %p15353_p1 = scmp.ne.s32.totalorder %s17118_s2, %s15352_s19  ;;  %p15357_p4 = scmp.lt.u32.totalorder %s17118_s2, %s17177_s15 }
0x601d   : > { %p15358_p5 = scmp.lt.u32.totalorder %s15356_s22, %s15352_s19  ;;  %p15360_p10 = scmp.lt.u32.totalorder %s15352_s19, %s17118_s2 }
0x601e   : > { %p15354_p2 = pnand %p15353_p1, %p15541_p6 }
0x601f   : > { %p15359_p7 = por %p15358_p5, %p15357_p4 }
0x6020   : > { %p15355_p3 = pneg %p15354_p2 }
0x6021   : > { %p15361_p11 = por %p15360_p10, %p15359_p7 }
0x6023   : > { %p15362_p12 = pnand %p15361_p11, %p15355_p3 }
0x6025   : > { %15365 = shalt.err (!%p15362_p12)
}
0x6026   : > { %14988 = dma.vmem_to_hbm [thread:$0]  (%p15541_p6), %s17120_s25, 128, %s17118_s2, %s11916_s27  }
0x6027 PF: > { %s11959_s20 = sand.u32 1, %s15392_s23   ;;  %p14993_p13 = pnand %p12058_p9, %p15545_p8 }
0x6028   : > { %s11960_s21 = scalar_lea.sflag [#allocation5], %s11959_s20 }
0x6029   : > { %15383 = dma.done.wait (!%p14993_p13), %s11960_s21, 128  }
0x602a   : > { %15385 = vsyncadd (!%p14993_p13), %s11960_s21, 4294967168  ;;  %s11969_s9 = scalar_lea.sflag [#allocation7], %s11959_s20 }
0x602b   : > { %15387 = dma.done.wait (!%p14993_p13), %s11969_s9, 128  }
0x602c   : > { %15389 = vsyncadd (!%p14993_p13), %s11969_s9, 4294967168  ;;  %s17199_s17 = sld [smem:[#allocation10_spill]]  ;;  %s17200_s25 = sld [smem:[#allocation11_spill]] }
0x602d   : > { %p32_p6 = scmp.ge.s32.totalorder %s15527_s28, 4   ;;  %s17201_s23 = smov %s15396_s24 }
0x602e   : > { %s17203_s26 = smov %s15527_s28 }
0x602f   :  { %34 = sbr.rel (!%p32_p6) target bundleno = 10 (0xa), region = 193 }
0x6032   : > { %s17202_s24 = smov %s17199_s17 }
0x6036   :  { %11974 = vsyncpa [#allocation5], 1 }
0x6037   :  { %11976 = vsyncpa [#allocation5 + $0x1], 1 }
0x6038   :  { %11977 = vsyncpa [#allocation7], 1 }
0x6039   :  { %11979 = vsyncpa [#allocation7 + $0x1], 1 }

</bundles_post_ra>
